<compile_context>
chip_gen: v5e
topology: v5e:2x2
jax: 0.10.0
libtpu: 0.0.40
codegen_flags: <defaults>
</compile_context>

<pallas_src>
import functools

import jax
import jax.numpy as jnp
from jax.experimental import pallas as pl
from jax.experimental.pallas import tpu as pltpu


def _round_up(x, m):
    return (x + m - 1) // m * m


def _pick_batch_block(bp, cap=64):
    """Largest multiple-of-8 divisor of bp not exceeding cap (bp % 8 == 0)."""
    best = 8
    d = 8
    while d <= min(bp, cap):
        if bp % d == 0:
            best = d
        d += 8
    return best


# ----------------------------------------------------------------------------
# Fused kernel: all LSTM layers + relu + [1:] + FC for one batch block.
# refs = [x, (w_ih, w_hh, b) * layer_num, w_fc, b_fc, out, gx_scratch, act_scratch]
# ----------------------------------------------------------------------------
def _fused_lstm_fc_kernel(*refs, layer_num, T, Hp):
    x_ref = refs[0]
    idx = 1
    layer_refs = []
    for _ in range(layer_num):
        layer_refs.append(refs[idx:idx + 3])
        idx += 3
    wfc_ref, bfc_ref = refs[idx], refs[idx + 1]
    out_ref = refs[idx + 2]
    gx_ref, act_ref = refs[idx + 3], refs[idx + 4]

    B_blk = act_ref.shape[1]

    for layer, (wih_ref, whh_ref, b_ref) in enumerate(layer_refs):
        # ---- input projection hoisted out of the recurrence: one big MXU matmul
        if layer == 0:
            inp = x_ref[...].reshape(T * B_blk, x_ref.shape[-1])
        else:
            inp = act_ref[...].reshape(T * B_blk, Hp)
        gx = jnp.dot(inp, wih_ref[...], preferred_element_type=jnp.float32)
        gx = gx + b_ref[...]
        gx_ref[...] = gx.reshape(T, B_blk, 4 * Hp)

        # ---- sequential recurrence; (h, c) carried in registers (loop carry)
        def step(t, carry, whh_ref=whh_ref):
            h, c = carry
            gates = gx_ref[t] + jnp.dot(
                h, whh_ref[...], preferred_element_type=jnp.float32)
            # PyTorch gate order i, f, g, o — Hp(=128k)-wide slices are
            # vreg-aligned, no cross-lane shuffles.
            i = jax.nn.sigmoid(gates[:, 0 * Hp:1 * Hp])
            f = jax.nn.sigmoid(gates[:, 1 * Hp:2 * Hp])
            g = jnp.tanh(gates[:, 2 * Hp:3 * Hp])
            o = jax.nn.sigmoid(gates[:, 3 * Hp:4 * Hp])
            c_new = f * c + i * g
            h_new = o * jnp.tanh(c_new)
            act_ref[t] = h_new
            return (h_new, c_new)

        zeros = jnp.zeros((B_blk, Hp), jnp.float32)
        jax.lax.fori_loop(0, T, step, (zeros, zeros), unroll=True)

    # ---- fused epilogue: relu -> drop first timestep -> FC, lane-dense slab
    h_tail = act_ref[pl.ds(1, T - 1)]                      # (T-1, B, Hp)
    h_relu = jnp.maximum(h_tail, 0.0).reshape((T - 1) * B_blk, Hp)
    y = jnp.dot(h_relu, wfc_ref[...], preferred_element_type=jnp.float32)
    y = y + bfc_ref[...]
    out_ref[...] = y.reshape(T - 1, B_blk, out_ref.shape[-1])


# ----------------------------------------------------------------------------
# Padding of parameters to tile-aligned layouts (exactness preserved by zeros)
# ----------------------------------------------------------------------------
def _pad_params(lstm_params, w_fc, b_fc, D, H, Dp, Hp, Op):
    padded = []
    for layer, (w_ih, w_hh, b) in enumerate(lstm_params):
        din = D if layer == 0 else H
        din_p = Dp if layer == 0 else Hp
        wih_p = jnp.zeros((din_p, 4 * Hp), jnp.float32)
        whh_p = jnp.zeros((Hp, 4 * Hp), jnp.float32)
        b_p = jnp.zeros((1, 4 * Hp), jnp.float32)
        for g in range(4):
            wih_p = wih_p.at[:din, g * Hp:g * Hp + H].set(w_ih[:, g * H:(g + 1) * H])
            whh_p = whh_p.at[:H, g * Hp:g * Hp + H].set(w_hh[:, g * H:(g + 1) * H])
            b_p = b_p.at[0, g * Hp:g * Hp + H].set(b[g * H:(g + 1) * H])
        padded.append((wih_p, whh_p, b_p))
    O = w_fc.shape[1]
    wfc_p = jnp.zeros((Hp, Op), jnp.float32).at[:H, :O].set(w_fc)
    bfc_p = jnp.zeros((1, Op), jnp.float32).at[0, :O].set(b_fc)
    return padded, wfc_p, bfc_p


# ----------------------------------------------------------------------------
# Full forward:  out, _ = LSTM(x);  out = relu(out);  out = out[1:];  fc(out)
# ----------------------------------------------------------------------------
def lstm_model_forward(params, x):
    lstm_params = params["lstm"]
    w_fc, b_fc = params["fc"]
    T, B, D = x.shape
    H = lstm_params[0][1].shape[0]
    O = w_fc.shape[1]

    Hp = _round_up(H, 128)              # lane-aligned hidden / gate blocks
    Dp = _round_up(D, 128)
    Bp = _round_up(B, 8)                # sublane-aligned batch
    Op = _round_up(max(O, 128), 128)    # lane-dense output slab
    B_BLK = _pick_batch_block(Bp)       # batch block per grid step (parallel)

    x_p = jnp.zeros((T, Bp, Dp), jnp.float32).at[:, :B, :D].set(x)
    padded, wfc_p, bfc_p = _pad_params(lstm_params, w_fc, b_fc, D, H, Dp, Hp, Op)

    inputs = [x_p]
    in_specs = [pl.BlockSpec((T, B_BLK, Dp), lambda b: (0, b, 0))]
    for (wih_p, whh_p, b_p) in padded:
        inputs += [wih_p, whh_p, b_p]
        in_specs += [
            pl.BlockSpec(wih_p.shape, lambda b: (0, 0)),
            pl.BlockSpec(whh_p.shape, lambda b: (0, 0)),
            pl.BlockSpec(b_p.shape, lambda b: (0, 0)),
        ]
    inputs += [wfc_p, bfc_p]
    in_specs += [
        pl.BlockSpec(wfc_p.shape, lambda b: (0, 0)),
        pl.BlockSpec(bfc_p.shape, lambda b: (0, 0)),
    ]

    kernel = functools.partial(
        _fused_lstm_fc_kernel, layer_num=len(lstm_params), T=T, Hp=Hp)

    y = pl.pallas_call(
        kernel,
        out_shape=jax.ShapeDtypeStruct((T - 1, Bp, Op), jnp.float32),
        grid_spec=pltpu.PrefetchScalarGridSpec(
            num_scalar_prefetch=0,
            grid=(Bp // B_BLK,),                      # independent batch blocks
            in_specs=in_specs,
            out_specs=pl.BlockSpec((T - 1, B_BLK, Op), lambda b: (0, b, 0)),
            scratch_shapes=[
                pltpu.VMEM((T, B_BLK, 4 * Hp), jnp.float32),  # hoisted x-projection
                pltpu.VMEM((T, B_BLK, Hp), jnp.float32),      # inter-layer activations
            ],
        ),
        compiler_params=pltpu.CompilerParams(
            dimension_semantics=("parallel",),
        ),
        # NOTE: at big (T, B) raise vmem_limit_bytes; default headroom is ample
        # at these shapes.
    )(*inputs)

    return y[:, :B, :O]


# ----------------------------------------------------------------------------
# Parameter init (deterministic, mimics lstmModel.__init__ shapes / weightInit)
# ----------------------------------------------------------------------------
def init_params(key, in_dim, hidden_dim, out_dim, layer_num):
    params = {"lstm": [], "fc": None}
    ortho = jax.nn.initializers.orthogonal()
    k = 1.0 / jnp.sqrt(hidden_dim)
    for layer in range(layer_num):
        d = in_dim if layer == 0 else hidden_dim
        key, k1, k2, k3, k4 = jax.random.split(key, 5)
        w_ih = ortho(k1, (d, 4 * hidden_dim), jnp.float32)           # orthogonal init
        w_hh = ortho(k2, (hidden_dim, 4 * hidden_dim), jnp.float32)  # orthogonal init
        b_ih = jax.random.uniform(k3, (4 * hidden_dim,), jnp.float32, -k, k)
        b_hh = jax.random.uniform(k4, (4 * hidden_dim,), jnp.float32, -k, k)
        params["lstm"].append((w_ih, w_hh, b_ih + b_hh))
    key, k5, k6 = jax.random.split(key, 3)
    w_fc = jax.random.uniform(k5, (hidden_dim, out_dim), jnp.float32, -k, k)
    b_fc = jax.random.uniform(k6, (out_dim,), jnp.float32, -k, k)
    params["fc"] = (w_fc, b_fc)
    return params


# ----------------------------------------------------------------------------
# Pure-JAX reference (for sanity check)
# ----------------------------------------------------------------------------
def reference_forward(params, x):
    h_seq = x
    for (w_ih, w_hh, b) in params["lstm"]:
        T, B, _ = h_seq.shape
        H = w_hh.shape[0]

        def step(carry, x_t, w_ih=w_ih, w_hh=w_hh, b=b, H=H):
            h, c = carry
            gates = x_t @ w_ih + h @ w_hh + b
            i = jax.nn.sigmoid(gates[:, 0:H])
            f = jax.nn.sigmoid(gates[:, H:2 * H])
            g = jnp.tanh(gates[:, 2 * H:3 * H])
            o = jax.nn.sigmoid(gates[:, 3 * H:4 * H])
            c = f * c + i * g
            h = o * jnp.tanh(c)
            return (h, c), h

        init = (jnp.zeros((B, H), jnp.float32), jnp.zeros((B, H), jnp.float32))
        _, h_seq = jax.lax.scan(step, init, h_seq)
    out = jnp.maximum(h_seq, 0.0)[1:]
    w_fc, b_fc = params["fc"]
    return out @ w_fc + b_fc


if __name__ == "__main__":
    # Original script: train.reshape(50, 96, 1); x = train[:-1] -> (49, 96, 1).
    # Small analogous shapes: seq=8, batch=4, in_dim=1, hidden=32, out=1, layers=2.
    seq, batch, in_dim = 8, 4, 1
    hidden_dim, out_dim, layer_num = 32, 1, 2

    key = jax.random.PRNGKey(0)
    key, xk = jax.random.split(key)
    x = jax.random.normal(xk, (seq, batch, in_dim), dtype=jnp.float32)

    params = init_params(key, in_dim, hidden_dim, out_dim, layer_num)

    out = lstm_model_forward(params, x)
    out = jax.block_until_ready(out)

    ref = reference_forward(params, x)
    assert out.shape == (seq - 1, batch, out_dim), out.shape
    assert jnp.allclose(out, ref, atol=1e-3, rtol=1e-3), float(jnp.max(jnp.abs(out - ref)))

    print("KERNEL_OK")
</pallas_src>

<mosaic_0001>
module attributes {stable_mosaic.version = 11 : i64} {
  func.func @_fused_lstm_fc_kernel(%arg0: i32, %arg1: memref<8x8x128xf32, #tpu.memory_space<vmem>>, %arg2: memref<128x512xf32, #tpu.memory_space<vmem>>, %arg3: memref<128x512xf32, #tpu.memory_space<vmem>>, %arg4: memref<1x512xf32, #tpu.memory_space<vmem>>, %arg5: memref<128x512xf32, #tpu.memory_space<vmem>>, %arg6: memref<128x512xf32, #tpu.memory_space<vmem>>, %arg7: memref<1x512xf32, #tpu.memory_space<vmem>>, %arg8: memref<128x128xf32, #tpu.memory_space<vmem>>, %arg9: memref<1x128xf32, #tpu.memory_space<vmem>>, %arg10: memref<7x8x128xf32, #tpu.memory_space<vmem>>, %arg11: memref<8x8x512xf32, #tpu.memory_space<vmem>>, %arg12: memref<8x8x128xf32, #tpu.memory_space<vmem>>) attributes {dimension_semantics = [#tpu.dimension_semantics<parallel>], iteration_bounds = array<i64: 1>, scalar_prefetch = 0 : i64, scratch_operands = 2 : i64, tpu.core_type = #tpu.core_type<tc>, window_params = [{transform_indices = @transform_0, window_bounds = array<i64: 8, 8, 128>}, {pipeline_mode = #tpu.pipeline_mode<synchronous>, transform_indices = @transform_1, window_bounds = array<i64: 128, 512>}, {pipeline_mode = #tpu.pipeline_mode<synchronous>, transform_indices = @transform_2, window_bounds = array<i64: 128, 512>}, {pipeline_mode = #tpu.pipeline_mode<synchronous>, transform_indices = @transform_3, window_bounds = array<i64: 1, 512>}, {pipeline_mode = #tpu.pipeline_mode<synchronous>, transform_indices = @transform_4, window_bounds = array<i64: 128, 512>}, {pipeline_mode = #tpu.pipeline_mode<synchronous>, transform_indices = @transform_5, window_bounds = array<i64: 128, 512>}, {pipeline_mode = #tpu.pipeline_mode<synchronous>, transform_indices = @transform_6, window_bounds = array<i64: 1, 512>}, {pipeline_mode = #tpu.pipeline_mode<synchronous>, transform_indices = @transform_7, window_bounds = array<i64: 128, 128>}, {pipeline_mode = #tpu.pipeline_mode<synchronous>, transform_indices = @transform_8, window_bounds = array<i64: 1, 128>}, {transform_indices = @transform_9, window_bounds = array<i64: 7, 8, 128>}]} {
    %c0 = arith.constant 0 : index
    %c0_0 = arith.constant 0 : index
    %c0_1 = arith.constant 0 : index
    %0 = vector.load %arg1[%c0, %c0_0, %c0_1] : memref<8x8x128xf32, #tpu.memory_space<vmem>>, vector<8x8x128xf32>
    %1 = vector.shape_cast %0 : vector<8x8x128xf32> to vector<64x128xf32>
    %c0_2 = arith.constant 0 : index
    %c0_3 = arith.constant 0 : index
    %2 = vector.load %arg2[%c0_2, %c0_3] : memref<128x512xf32, #tpu.memory_space<vmem>>, vector<128x512xf32>
    %cst = arith.constant dense<0.000000e+00> : vector<64x512xf32>
    %3 = tpu.matmul %1, %2, %cst {dimension_numbers = #tpu.dot_dimension_numbers<[1], [0], [0], [1], [0, 0, 1, 1], [], []>} : vector<64x128xf32>, vector<128x512xf32>, vector<64x512xf32> -> vector<64x512xf32>
    %c0_4 = arith.constant 0 : index
    %c0_5 = arith.constant 0 : index
    %4 = vector.load %arg4[%c0_4, %c0_5] : memref<1x512xf32, #tpu.memory_space<vmem>>, vector<1x512xf32>
    %5 = vector.broadcast %4 : vector<1x512xf32> to vector<64x512xf32>
    %6 = arith.addf %3, %5 : vector<64x512xf32>
    %7 = vector.shape_cast %6 : vector<64x512xf32> to vector<8x8x512xf32>
    %c0_6 = arith.constant 0 : index
    %c0_7 = arith.constant 0 : index
    %c0_8 = arith.constant 0 : index
    %8 = vector.load %arg11[%c0_6, %c0_7, %c0_8] : memref<8x8x512xf32, #tpu.memory_space<vmem>>, vector<8x8x512xf32>
    tpu.vector_store %arg11[%c0_6, %c0_7, %c0_8], %7 {strides = array<i32>} : memref<8x8x512xf32, #tpu.memory_space<vmem>>, vector<8x8x512xf32>,
    %cst_9 = arith.constant 0.000000e+00 : f32
    %9 = vector.broadcast %cst_9 : f32 to vector<8x128xf32>
    %c0_i32 = arith.constant 0 : i32
    %10 = arith.index_cast %c0_i32 : i32 to index
    %c0_10 = arith.constant 0 : index
    %c0_11 = arith.constant 0 : index
    %11 = vector.load %arg11[%10, %c0_10, %c0_11] : memref<8x8x512xf32, #tpu.memory_space<vmem>>, vector<1x8x512xf32>
    %12 = vector.shape_cast %11 : vector<1x8x512xf32> to vector<8x512xf32>
    %c0_12 = arith.constant 0 : index
    %c0_13 = arith.constant 0 : index
    %13 = vector.load %arg3[%c0_12, %c0_13] : memref<128x512xf32, #tpu.memory_space<vmem>>, vector<128x512xf32>
    %cst_14 = arith.constant dense<0.000000e+00> : vector<8x512xf32>
    %14 = tpu.matmul %9, %13, %cst_14 {dimension_numbers = #tpu.dot_dimension_numbers<[1], [0], [0], [1], [0, 0, 1, 1], [], []>} : vector<8x128xf32>, vector<128x512xf32>, vector<8x512xf32> -> vector<8x512xf32>
    %15 = arith.addf %12, %14 : vector<8x512xf32>
    %16 = vector.extract_strided_slice %15 {offsets = [0, 0], sizes = [8, 128], strides = [1, 1]} : vector<8x512xf32> to vector<8x128xf32>
    %17 = arith.negf %16 : vector<8x128xf32>
    %18 = math.exp %17 : vector<8x128xf32>
    %cst_15 = arith.constant 1.000000e+00 : f32
    %19 = vector.broadcast %cst_15 : f32 to vector<8x128xf32>
    %20 = arith.addf %19, %18 : vector<8x128xf32>
    %21 = arith.divf %19, %20 : vector<8x128xf32>
    %22 = vector.extract_strided_slice %15 {offsets = [0, 128], sizes = [8, 128], strides = [1, 1]} : vector<8x512xf32> to vector<8x128xf32>
    %23 = arith.negf %22 : vector<8x128xf32>
    %24 = math.exp %23 : vector<8x128xf32>
    %cst_16 = arith.constant 1.000000e+00 : f32
    %25 = vector.broadcast %cst_16 : f32 to vector<8x128xf32>
    %26 = arith.addf %25, %24 : vector<8x128xf32>
    %27 = arith.divf %25, %26 : vector<8x128xf32>
    %28 = vector.extract_strided_slice %15 {offsets = [0, 256], sizes = [8, 128], strides = [1, 1]} : vector<8x512xf32> to vector<8x128xf32>
    %29 = math.tanh %28 : vector<8x128xf32>
    %30 = vector.extract_strided_slice %15 {offsets = [0, 384], sizes = [8, 128], strides = [1, 1]} : vector<8x512xf32> to vector<8x128xf32>
    %31 = arith.negf %30 : vector<8x128xf32>
    %32 = math.exp %31 : vector<8x128xf32>
    %cst_17 = arith.constant 1.000000e+00 : f32
    %33 = vector.broadcast %cst_17 : f32 to vector<8x128xf32>
    %34 = arith.addf %33, %32 : vector<8x128xf32>
    %35 = arith.divf %33, %34 : vector<8x128xf32>
    %36 = arith.mulf %27, %9 : vector<8x128xf32>
    %37 = arith.mulf %21, %29 : vector<8x128xf32>
    %38 = arith.addf %36, %37 : vector<8x128xf32>
    %39 = math.tanh %38 : vector<8x128xf32>
    %40 = arith.mulf %35, %39 : vector<8x128xf32>
    %41 = arith.index_cast %c0_i32 : i32 to index
    %c0_18 = arith.constant 0 : index
    %c0_19 = arith.constant 0 : index
    %42 = vector.load %arg12[%41, %c0_18, %c0_19] : memref<8x8x128xf32, #tpu.memory_space<vmem>>, vector<1x8x128xf32>
    %43 = vector.shape_cast %42 : vector<1x8x128xf32> to vector<8x128xf32>
    %44 = vector.shape_cast %40 : vector<8x128xf32> to vector<1x8x128xf32>
    tpu.vector_store %arg12[%41, %c0_18, %c0_19], %44 {strides = array<i32>} : memref<8x8x128xf32, #tpu.memory_space<vmem>>, vector<1x8x128xf32>,
    %c1_i32 = arith.constant 1 : i32
    %45 = arith.index_cast %c1_i32 : i32 to index
    %c0_20 = arith.constant 0 : index
    %c0_21 = arith.constant 0 : index
    %46 = vector.load %arg11[%45, %c0_20, %c0_21] : memref<8x8x512xf32, #tpu.memory_space<vmem>>, vector<1x8x512xf32>
    %47 = vector.shape_cast %46 : vector<1x8x512xf32> to vector<8x512xf32>
    %c0_22 = arith.constant 0 : index
    %c0_23 = arith.constant 0 : index
    %48 = vector.load %arg3[%c0_22, %c0_23] : memref<128x512xf32, #tpu.memory_space<vmem>>, vector<128x512xf32>
    %cst_24 = arith.constant dense<0.000000e+00> : vector<8x512xf32>
    %49 = tpu.matmul %40, %48, %cst_24 {dimension_numbers = #tpu.dot_dimension_numbers<[1], [0], [0], [1], [0, 0, 1, 1], [], []>} : vector<8x128xf32>, vector<128x512xf32>, vector<8x512xf32> -> vector<8x512xf32>
    %50 = arith.addf %47, %49 : vector<8x512xf32>
    %51 = vector.extract_strided_slice %50 {offsets = [0, 0], sizes = [8, 128], strides = [1, 1]} : vector<8x512xf32> to vector<8x128xf32>
    %52 = arith.negf %51 : vector<8x128xf32>
    %53 = math.exp %52 : vector<8x128xf32>
    %cst_25 = arith.constant 1.000000e+00 : f32
    %54 = vector.broadcast %cst_25 : f32 to vector<8x128xf32>
    %55 = arith.addf %54, %53 : vector<8x128xf32>
    %56 = arith.divf %54, %55 : vector<8x128xf32>
    %57 = vector.extract_strided_slice %50 {offsets = [0, 128], sizes = [8, 128], strides = [1, 1]} : vector<8x512xf32> to vector<8x128xf32>
    %58 = arith.negf %57 : vector<8x128xf32>
    %59 = math.exp %58 : vector<8x128xf32>
    %cst_26 = arith.constant 1.000000e+00 : f32
    %60 = vector.broadcast %cst_26 : f32 to vector<8x128xf32>
    %61 = arith.addf %60, %59 : vector<8x128xf32>
    %62 = arith.divf %60, %61 : vector<8x128xf32>
    %63 = vector.extract_strided_slice %50 {offsets = [0, 256], sizes = [8, 128], strides = [1, 1]} : vector<8x512xf32> to vector<8x128xf32>
    %64 = math.tanh %63 : vector<8x128xf32>
    %65 = vector.extract_strided_slice %50 {offsets = [0, 384], sizes = [8, 128], strides = [1, 1]} : vector<8x512xf32> to vector<8x128xf32>
    %66 = arith.negf %65 : vector<8x128xf32>
    %67 = math.exp %66 : vector<8x128xf32>
    %cst_27 = arith.constant 1.000000e+00 : f32
    %68 = vector.broadcast %cst_27 : f32 to vector<8x128xf32>
    %69 = arith.addf %68, %67 : vector<8x128xf32>
    %70 = arith.divf %68, %69 : vector<8x128xf32>
    %71 = arith.mulf %62, %38 : vector<8x128xf32>
    %72 = arith.mulf %56, %64 : vector<8x128xf32>
    %73 = arith.addf %71, %72 : vector<8x128xf32>
    %74 = math.tanh %73 : vector<8x128xf32>
    %75 = arith.mulf %70, %74 : vector<8x128xf32>
    %76 = arith.index_cast %c1_i32 : i32 to index
    %c0_28 = arith.constant 0 : index
    %c0_29 = arith.constant 0 : index
    %77 = vector.load %arg12[%76, %c0_28, %c0_29] : memref<8x8x128xf32, #tpu.memory_space<vmem>>, vector<1x8x128xf32>
    %78 = vector.shape_cast %77 : vector<1x8x128xf32> to vector<8x128xf32>
    %79 = vector.shape_cast %75 : vector<8x128xf32> to vector<1x8x128xf32>
    tpu.vector_store %arg12[%76, %c0_28, %c0_29], %79 {strides = array<i32>} : memref<8x8x128xf32, #tpu.memory_space<vmem>>, vector<1x8x128xf32>,
    %c2_i32 = arith.constant 2 : i32
    %80 = arith.index_cast %c2_i32 : i32 to index
    %c0_30 = arith.constant 0 : index
    %c0_31 = arith.constant 0 : index
    %81 = vector.load %arg11[%80, %c0_30, %c0_31] : memref<8x8x512xf32, #tpu.memory_space<vmem>>, vector<1x8x512xf32>
    %82 = vector.shape_cast %81 : vector<1x8x512xf32> to vector<8x512xf32>
    %c0_32 = arith.constant 0 : index
    %c0_33 = arith.constant 0 : index
    %83 = vector.load %arg3[%c0_32, %c0_33] : memref<128x512xf32, #tpu.memory_space<vmem>>, vector<128x512xf32>
    %cst_34 = arith.constant dense<0.000000e+00> : vector<8x512xf32>
    %84 = tpu.matmul %75, %83, %cst_34 {dimension_numbers = #tpu.dot_dimension_numbers<[1], [0], [0], [1], [0, 0, 1, 1], [], []>} : vector<8x128xf32>, vector<128x512xf32>, vector<8x512xf32> -> vector<8x512xf32>
    %85 = arith.addf %82, %84 : vector<8x512xf32>
    %86 = vector.extract_strided_slice %85 {offsets = [0, 0], sizes = [8, 128], strides = [1, 1]} : vector<8x512xf32> to vector<8x128xf32>
    %87 = arith.negf %86 : vector<8x128xf32>
    %88 = math.exp %87 : vector<8x128xf32>
    %cst_35 = arith.constant 1.000000e+00 : f32
    %89 = vector.broadcast %cst_35 : f32 to vector<8x128xf32>
    %90 = arith.addf %89, %88 : vector<8x128xf32>
    %91 = arith.divf %89, %90 : vector<8x128xf32>
    %92 = vector.extract_strided_slice %85 {offsets = [0, 128], sizes = [8, 128], strides = [1, 1]} : vector<8x512xf32> to vector<8x128xf32>
    %93 = arith.negf %92 : vector<8x128xf32>
    %94 = math.exp %93 : vector<8x128xf32>
    %cst_36 = arith.constant 1.000000e+00 : f32
    %95 = vector.broadcast %cst_36 : f32 to vector<8x128xf32>
    %96 = arith.addf %95, %94 : vector<8x128xf32>
    %97 = arith.divf %95, %96 : vector<8x128xf32>
    %98 = vector.extract_strided_slice %85 {offsets = [0, 256], sizes = [8, 128], strides = [1, 1]} : vector<8x512xf32> to vector<8x128xf32>
    %99 = math.tanh %98 : vector<8x128xf32>
    %100 = vector.extract_strided_slice %85 {offsets = [0, 384], sizes = [8, 128], strides = [1, 1]} : vector<8x512xf32> to vector<8x128xf32>
    %101 = arith.negf %100 : vector<8x128xf32>
    %102 = math.exp %101 : vector<8x128xf32>
    %cst_37 = arith.constant 1.000000e+00 : f32
    %103 = vector.broadcast %cst_37 : f32 to vector<8x128xf32>
    %104 = arith.addf %103, %102 : vector<8x128xf32>
    %105 = arith.divf %103, %104 : vector<8x128xf32>
    %106 = arith.mulf %97, %73 : vector<8x128xf32>
    %107 = arith.mulf %91, %99 : vector<8x128xf32>
    %108 = arith.addf %106, %107 : vector<8x128xf32>
    %109 = math.tanh %108 : vector<8x128xf32>
    %110 = arith.mulf %105, %109 : vector<8x128xf32>
    %111 = arith.index_cast %c2_i32 : i32 to index
    %c0_38 = arith.constant 0 : index
    %c0_39 = arith.constant 0 : index
    %112 = vector.load %arg12[%111, %c0_38, %c0_39] : memref<8x8x128xf32, #tpu.memory_space<vmem>>, vector<1x8x128xf32>
    %113 = vector.shape_cast %112 : vector<1x8x128xf32> to vector<8x128xf32>
    %114 = vector.shape_cast %110 : vector<8x128xf32> to vector<1x8x128xf32>
    tpu.vector_store %arg12[%111, %c0_38, %c0_39], %114 {strides = array<i32>} : memref<8x8x128xf32, #tpu.memory_space<vmem>>, vector<1x8x128xf32>,
    %c3_i32 = arith.constant 3 : i32
    %115 = arith.index_cast %c3_i32 : i32 to index
    %c0_40 = arith.constant 0 : index
    %c0_41 = arith.constant 0 : index
    %116 = vector.load %arg11[%115, %c0_40, %c0_41] : memref<8x8x512xf32, #tpu.memory_space<vmem>>, vector<1x8x512xf32>
    %117 = vector.shape_cast %116 : vector<1x8x512xf32> to vector<8x512xf32>
    %c0_42 = arith.constant 0 : index
    %c0_43 = arith.constant 0 : index
    %118 = vector.load %arg3[%c0_42, %c0_43] : memref<128x512xf32, #tpu.memory_space<vmem>>, vector<128x512xf32>
    %cst_44 = arith.constant dense<0.000000e+00> : vector<8x512xf32>
    %119 = tpu.matmul %110, %118, %cst_44 {dimension_numbers = #tpu.dot_dimension_numbers<[1], [0], [0], [1], [0, 0, 1, 1], [], []>} : vector<8x128xf32>, vector<128x512xf32>, vector<8x512xf32> -> vector<8x512xf32>
    %120 = arith.addf %117, %119 : vector<8x512xf32>
    %121 = vector.extract_strided_slice %120 {offsets = [0, 0], sizes = [8, 128], strides = [1, 1]} : vector<8x512xf32> to vector<8x128xf32>
    %122 = arith.negf %121 : vector<8x128xf32>
    %123 = math.exp %122 : vector<8x128xf32>
    %cst_45 = arith.constant 1.000000e+00 : f32
    %124 = vector.broadcast %cst_45 : f32 to vector<8x128xf32>
    %125 = arith.addf %124, %123 : vector<8x128xf32>
    %126 = arith.divf %124, %125 : vector<8x128xf32>
    %127 = vector.extract_strided_slice %120 {offsets = [0, 128], sizes = [8, 128], strides = [1, 1]} : vector<8x512xf32> to vector<8x128xf32>
    %128 = arith.negf %127 : vector<8x128xf32>
    %129 = math.exp %128 : vector<8x128xf32>
    %cst_46 = arith.constant 1.000000e+00 : f32
    %130 = vector.broadcast %cst_46 : f32 to vector<8x128xf32>
    %131 = arith.addf %130, %129 : vector<8x128xf32>
    %132 = arith.divf %130, %131 : vector<8x128xf32>
    %133 = vector.extract_strided_slice %120 {offsets = [0, 256], sizes = [8, 128], strides = [1, 1]} : vector<8x512xf32> to vector<8x128xf32>
    %134 = math.tanh %133 : vector<8x128xf32>
    %135 = vector.extract_strided_slice %120 {offsets = [0, 384], sizes = [8, 128], strides = [1, 1]} : vector<8x512xf32> to vector<8x128xf32>
    %136 = arith.negf %135 : vector<8x128xf32>
    %137 = math.exp %136 : vector<8x128xf32>
    %cst_47 = arith.constant 1.000000e+00 : f32
    %138 = vector.broadcast %cst_47 : f32 to vector<8x128xf32>
    %139 = arith.addf %138, %137 : vector<8x128xf32>
    %140 = arith.divf %138, %139 : vector<8x128xf32>
    %141 = arith.mulf %132, %108 : vector<8x128xf32>
    %142 = arith.mulf %126, %134 : vector<8x128xf32>
    %143 = arith.addf %141, %142 : vector<8x128xf32>
    %144 = math.tanh %143 : vector<8x128xf32>
    %145 = arith.mulf %140, %144 : vector<8x128xf32>
    %146 = arith.index_cast %c3_i32 : i32 to index
    %c0_48 = arith.constant 0 : index
    %c0_49 = arith.constant 0 : index
    %147 = vector.load %arg12[%146, %c0_48, %c0_49] : memref<8x8x128xf32, #tpu.memory_space<vmem>>, vector<1x8x128xf32>
    %148 = vector.shape_cast %147 : vector<1x8x128xf32> to vector<8x128xf32>
    %149 = vector.shape_cast %145 : vector<8x128xf32> to vector<1x8x128xf32>
    tpu.vector_store %arg12[%146, %c0_48, %c0_49], %149 {strides = array<i32>} : memref<8x8x128xf32, #tpu.memory_space<vmem>>, vector<1x8x128xf32>,
    %c4_i32 = arith.constant 4 : i32
    %150 = arith.index_cast %c4_i32 : i32 to index
    %c0_50 = arith.constant 0 : index
    %c0_51 = arith.constant 0 : index
    %151 = vector.load %arg11[%150, %c0_50, %c0_51] : memref<8x8x512xf32, #tpu.memory_space<vmem>>, vector<1x8x512xf32>
    %152 = vector.shape_cast %151 : vector<1x8x512xf32> to vector<8x512xf32>
    %c0_52 = arith.constant 0 : index
    %c0_53 = arith.constant 0 : index
    %153 = vector.load %arg3[%c0_52, %c0_53] : memref<128x512xf32, #tpu.memory_space<vmem>>, vector<128x512xf32>
    %cst_54 = arith.constant dense<0.000000e+00> : vector<8x512xf32>
    %154 = tpu.matmul %145, %153, %cst_54 {dimension_numbers = #tpu.dot_dimension_numbers<[1], [0], [0], [1], [0, 0, 1, 1], [], []>} : vector<8x128xf32>, vector<128x512xf32>, vector<8x512xf32> -> vector<8x512xf32>
    %155 = arith.addf %152, %154 : vector<8x512xf32>
    %156 = vector.extract_strided_slice %155 {offsets = [0, 0], sizes = [8, 128], strides = [1, 1]} : vector<8x512xf32> to vector<8x128xf32>
    %157 = arith.negf %156 : vector<8x128xf32>
    %158 = math.exp %157 : vector<8x128xf32>
    %cst_55 = arith.constant 1.000000e+00 : f32
    %159 = vector.broadcast %cst_55 : f32 to vector<8x128xf32>
    %160 = arith.addf %159, %158 : vector<8x128xf32>
    %161 = arith.divf %159, %160 : vector<8x128xf32>
    %162 = vector.extract_strided_slice %155 {offsets = [0, 128], sizes = [8, 128], strides = [1, 1]} : vector<8x512xf32> to vector<8x128xf32>
    %163 = arith.negf %162 : vector<8x128xf32>
    %164 = math.exp %163 : vector<8x128xf32>
    %cst_56 = arith.constant 1.000000e+00 : f32
    %165 = vector.broadcast %cst_56 : f32 to vector<8x128xf32>
    %166 = arith.addf %165, %164 : vector<8x128xf32>
    %167 = arith.divf %165, %166 : vector<8x128xf32>
    %168 = vector.extract_strided_slice %155 {offsets = [0, 256], sizes = [8, 128], strides = [1, 1]} : vector<8x512xf32> to vector<8x128xf32>
    %169 = math.tanh %168 : vector<8x128xf32>
    %170 = vector.extract_strided_slice %155 {offsets = [0, 384], sizes = [8, 128], strides = [1, 1]} : vector<8x512xf32> to vector<8x128xf32>
    %171 = arith.negf %170 : vector<8x128xf32>
    %172 = math.exp %171 : vector<8x128xf32>
    %cst_57 = arith.constant 1.000000e+00 : f32
    %173 = vector.broadcast %cst_57 : f32 to vector<8x128xf32>
    %174 = arith.addf %173, %172 : vector<8x128xf32>
    %175 = arith.divf %173, %174 : vector<8x128xf32>
    %176 = arith.mulf %167, %143 : vector<8x128xf32>
    %177 = arith.mulf %161, %169 : vector<8x128xf32>
    %178 = arith.addf %176, %177 : vector<8x128xf32>
    %179 = math.tanh %178 : vector<8x128xf32>
    %180 = arith.mulf %175, %179 : vector<8x128xf32>
    %181 = arith.index_cast %c4_i32 : i32 to index
    %c0_58 = arith.constant 0 : index
    %c0_59 = arith.constant 0 : index
    %182 = vector.load %arg12[%181, %c0_58, %c0_59] : memref<8x8x128xf32, #tpu.memory_space<vmem>>, vector<1x8x128xf32>
    %183 = vector.shape_cast %182 : vector<1x8x128xf32> to vector<8x128xf32>
    %184 = vector.shape_cast %180 : vector<8x128xf32> to vector<1x8x128xf32>
    tpu.vector_store %arg12[%181, %c0_58, %c0_59], %184 {strides = array<i32>} : memref<8x8x128xf32, #tpu.memory_space<vmem>>, vector<1x8x128xf32>,
    %c5_i32 = arith.constant 5 : i32
    %185 = arith.index_cast %c5_i32 : i32 to index
    %c0_60 = arith.constant 0 : index
    %c0_61 = arith.constant 0 : index
    %186 = vector.load %arg11[%185, %c0_60, %c0_61] : memref<8x8x512xf32, #tpu.memory_space<vmem>>, vector<1x8x512xf32>
    %187 = vector.shape_cast %186 : vector<1x8x512xf32> to vector<8x512xf32>
    %c0_62 = arith.constant 0 : index
    %c0_63 = arith.constant 0 : index
    %188 = vector.load %arg3[%c0_62, %c0_63] : memref<128x512xf32, #tpu.memory_space<vmem>>, vector<128x512xf32>
    %cst_64 = arith.constant dense<0.000000e+00> : vector<8x512xf32>
    %189 = tpu.matmul %180, %188, %cst_64 {dimension_numbers = #tpu.dot_dimension_numbers<[1], [0], [0], [1], [0, 0, 1, 1], [], []>} : vector<8x128xf32>, vector<128x512xf32>, vector<8x512xf32> -> vector<8x512xf32>
    %190 = arith.addf %187, %189 : vector<8x512xf32>
    %191 = vector.extract_strided_slice %190 {offsets = [0, 0], sizes = [8, 128], strides = [1, 1]} : vector<8x512xf32> to vector<8x128xf32>
    %192 = arith.negf %191 : vector<8x128xf32>
    %193 = math.exp %192 : vector<8x128xf32>
    %cst_65 = arith.constant 1.000000e+00 : f32
    %194 = vector.broadcast %cst_65 : f32 to vector<8x128xf32>
    %195 = arith.addf %194, %193 : vector<8x128xf32>
    %196 = arith.divf %194, %195 : vector<8x128xf32>
    %197 = vector.extract_strided_slice %190 {offsets = [0, 128], sizes = [8, 128], strides = [1, 1]} : vector<8x512xf32> to vector<8x128xf32>
    %198 = arith.negf %197 : vector<8x128xf32>
    %199 = math.exp %198 : vector<8x128xf32>
    %cst_66 = arith.constant 1.000000e+00 : f32
    %200 = vector.broadcast %cst_66 : f32 to vector<8x128xf32>
    %201 = arith.addf %200, %199 : vector<8x128xf32>
    %202 = arith.divf %200, %201 : vector<8x128xf32>
    %203 = vector.extract_strided_slice %190 {offsets = [0, 256], sizes = [8, 128], strides = [1, 1]} : vector<8x512xf32> to vector<8x128xf32>
    %204 = math.tanh %203 : vector<8x128xf32>
    %205 = vector.extract_strided_slice %190 {offsets = [0, 384], sizes = [8, 128], strides = [1, 1]} : vector<8x512xf32> to vector<8x128xf32>
    %206 = arith.negf %205 : vector<8x128xf32>
    %207 = math.exp %206 : vector<8x128xf32>
    %cst_67 = arith.constant 1.000000e+00 : f32
    %208 = vector.broadcast %cst_67 : f32 to vector<8x128xf32>
    %209 = arith.addf %208, %207 : vector<8x128xf32>
    %210 = arith.divf %208, %209 : vector<8x128xf32>
    %211 = arith.mulf %202, %178 : vector<8x128xf32>
    %212 = arith.mulf %196, %204 : vector<8x128xf32>
    %213 = arith.addf %211, %212 : vector<8x128xf32>
    %214 = math.tanh %213 : vector<8x128xf32>
    %215 = arith.mulf %210, %214 : vector<8x128xf32>
    %216 = arith.index_cast %c5_i32 : i32 to index
    %c0_68 = arith.constant 0 : index
    %c0_69 = arith.constant 0 : index
    %217 = vector.load %arg12[%216, %c0_68, %c0_69] : memref<8x8x128xf32, #tpu.memory_space<vmem>>, vector<1x8x128xf32>
    %218 = vector.shape_cast %217 : vector<1x8x128xf32> to vector<8x128xf32>
    %219 = vector.shape_cast %215 : vector<8x128xf32> to vector<1x8x128xf32>
    tpu.vector_store %arg12[%216, %c0_68, %c0_69], %219 {strides = array<i32>} : memref<8x8x128xf32, #tpu.memory_space<vmem>>, vector<1x8x128xf32>,
    %c6_i32 = arith.constant 6 : i32
    %220 = arith.index_cast %c6_i32 : i32 to index
    %c0_70 = arith.constant 0 : index
    %c0_71 = arith.constant 0 : index
    %221 = vector.load %arg11[%220, %c0_70, %c0_71] : memref<8x8x512xf32, #tpu.memory_space<vmem>>, vector<1x8x512xf32>
    %222 = vector.shape_cast %221 : vector<1x8x512xf32> to vector<8x512xf32>
    %c0_72 = arith.constant 0 : index
    %c0_73 = arith.constant 0 : index
    %223 = vector.load %arg3[%c0_72, %c0_73] : memref<128x512xf32, #tpu.memory_space<vmem>>, vector<128x512xf32>
    %cst_74 = arith.constant dense<0.000000e+00> : vector<8x512xf32>
    %224 = tpu.matmul %215, %223, %cst_74 {dimension_numbers = #tpu.dot_dimension_numbers<[1], [0], [0], [1], [0, 0, 1, 1], [], []>} : vector<8x128xf32>, vector<128x512xf32>, vector<8x512xf32> -> vector<8x512xf32>
    %225 = arith.addf %222, %224 : vector<8x512xf32>
    %226 = vector.extract_strided_slice %225 {offsets = [0, 0], sizes = [8, 128], strides = [1, 1]} : vector<8x512xf32> to vector<8x128xf32>
    %227 = arith.negf %226 : vector<8x128xf32>
    %228 = math.exp %227 : vector<8x128xf32>
    %cst_75 = arith.constant 1.000000e+00 : f32
    %229 = vector.broadcast %cst_75 : f32 to vector<8x128xf32>
    %230 = arith.addf %229, %228 : vector<8x128xf32>
    %231 = arith.divf %229, %230 : vector<8x128xf32>
    %232 = vector.extract_strided_slice %225 {offsets = [0, 128], sizes = [8, 128], strides = [1, 1]} : vector<8x512xf32> to vector<8x128xf32>
    %233 = arith.negf %232 : vector<8x128xf32>
    %234 = math.exp %233 : vector<8x128xf32>
    %cst_76 = arith.constant 1.000000e+00 : f32
    %235 = vector.broadcast %cst_76 : f32 to vector<8x128xf32>
    %236 = arith.addf %235, %234 : vector<8x128xf32>
    %237 = arith.divf %235, %236 : vector<8x128xf32>
    %238 = vector.extract_strided_slice %225 {offsets = [0, 256], sizes = [8, 128], strides = [1, 1]} : vector<8x512xf32> to vector<8x128xf32>
    %239 = math.tanh %238 : vector<8x128xf32>
    %240 = vector.extract_strided_slice %225 {offsets = [0, 384], sizes = [8, 128], strides = [1, 1]} : vector<8x512xf32> to vector<8x128xf32>
    %241 = arith.negf %240 : vector<8x128xf32>
    %242 = math.exp %241 : vector<8x128xf32>
    %cst_77 = arith.constant 1.000000e+00 : f32
    %243 = vector.broadcast %cst_77 : f32 to vector<8x128xf32>
    %244 = arith.addf %243, %242 : vector<8x128xf32>
    %245 = arith.divf %243, %244 : vector<8x128xf32>
    %246 = arith.mulf %237, %213 : vector<8x128xf32>
    %247 = arith.mulf %231, %239 : vector<8x128xf32>
    %248 = arith.addf %246, %247 : vector<8x128xf32>
    %249 = math.tanh %248 : vector<8x128xf32>
    %250 = arith.mulf %245, %249 : vector<8x128xf32>
    %251 = arith.index_cast %c6_i32 : i32 to index
    %c0_78 = arith.constant 0 : index
    %c0_79 = arith.constant 0 : index
    %252 = vector.load %arg12[%251, %c0_78, %c0_79] : memref<8x8x128xf32, #tpu.memory_space<vmem>>, vector<1x8x128xf32>
    %253 = vector.shape_cast %252 : vector<1x8x128xf32> to vector<8x128xf32>
    %254 = vector.shape_cast %250 : vector<8x128xf32> to vector<1x8x128xf32>
    tpu.vector_store %arg12[%251, %c0_78, %c0_79], %254 {strides = array<i32>} : memref<8x8x128xf32, #tpu.memory_space<vmem>>, vector<1x8x128xf32>,
    %c7_i32 = arith.constant 7 : i32
    %255 = arith.index_cast %c7_i32 : i32 to index
    %c0_80 = arith.constant 0 : index
    %c0_81 = arith.constant 0 : index
    %256 = vector.load %arg11[%255, %c0_80, %c0_81] : memref<8x8x512xf32, #tpu.memory_space<vmem>>, vector<1x8x512xf32>
    %257 = vector.shape_cast %256 : vector<1x8x512xf32> to vector<8x512xf32>
    %c0_82 = arith.constant 0 : index
    %c0_83 = arith.constant 0 : index
    %258 = vector.load %arg3[%c0_82, %c0_83] : memref<128x512xf32, #tpu.memory_space<vmem>>, vector<128x512xf32>
    %cst_84 = arith.constant dense<0.000000e+00> : vector<8x512xf32>
    %259 = tpu.matmul %250, %258, %cst_84 {dimension_numbers = #tpu.dot_dimension_numbers<[1], [0], [0], [1], [0, 0, 1, 1], [], []>} : vector<8x128xf32>, vector<128x512xf32>, vector<8x512xf32> -> vector<8x512xf32>
    %260 = arith.addf %257, %259 : vector<8x512xf32>
    %261 = vector.extract_strided_slice %260 {offsets = [0, 0], sizes = [8, 128], strides = [1, 1]} : vector<8x512xf32> to vector<8x128xf32>
    %262 = arith.negf %261 : vector<8x128xf32>
    %263 = math.exp %262 : vector<8x128xf32>
    %cst_85 = arith.constant 1.000000e+00 : f32
    %264 = vector.broadcast %cst_85 : f32 to vector<8x128xf32>
    %265 = arith.addf %264, %263 : vector<8x128xf32>
    %266 = arith.divf %264, %265 : vector<8x128xf32>
    %267 = vector.extract_strided_slice %260 {offsets = [0, 128], sizes = [8, 128], strides = [1, 1]} : vector<8x512xf32> to vector<8x128xf32>
    %268 = arith.negf %267 : vector<8x128xf32>
    %269 = math.exp %268 : vector<8x128xf32>
    %cst_86 = arith.constant 1.000000e+00 : f32
    %270 = vector.broadcast %cst_86 : f32 to vector<8x128xf32>
    %271 = arith.addf %270, %269 : vector<8x128xf32>
    %272 = arith.divf %270, %271 : vector<8x128xf32>
    %273 = vector.extract_strided_slice %260 {offsets = [0, 256], sizes = [8, 128], strides = [1, 1]} : vector<8x512xf32> to vector<8x128xf32>
    %274 = math.tanh %273 : vector<8x128xf32>
    %275 = vector.extract_strided_slice %260 {offsets = [0, 384], sizes = [8, 128], strides = [1, 1]} : vector<8x512xf32> to vector<8x128xf32>
    %276 = arith.negf %275 : vector<8x128xf32>
    %277 = math.exp %276 : vector<8x128xf32>
    %cst_87 = arith.constant 1.000000e+00 : f32
    %278 = vector.broadcast %cst_87 : f32 to vector<8x128xf32>
    %279 = arith.addf %278, %277 : vector<8x128xf32>
    %280 = arith.divf %278, %279 : vector<8x128xf32>
    %281 = arith.mulf %272, %248 : vector<8x128xf32>
    %282 = arith.mulf %266, %274 : vector<8x128xf32>
    %283 = arith.addf %281, %282 : vector<8x128xf32>
    %284 = math.tanh %283 : vector<8x128xf32>
    %285 = arith.mulf %280, %284 : vector<8x128xf32>
    %286 = arith.index_cast %c7_i32 : i32 to index
    %c0_88 = arith.constant 0 : index
    %c0_89 = arith.constant 0 : index
    %287 = vector.load %arg12[%286, %c0_88, %c0_89] : memref<8x8x128xf32, #tpu.memory_space<vmem>>, vector<1x8x128xf32>
    %288 = vector.shape_cast %287 : vector<1x8x128xf32> to vector<8x128xf32>
    %289 = vector.shape_cast %285 : vector<8x128xf32> to vector<1x8x128xf32>
    tpu.vector_store %arg12[%286, %c0_88, %c0_89], %289 {strides = array<i32>} : memref<8x8x128xf32, #tpu.memory_space<vmem>>, vector<1x8x128xf32>,
    %c8_i32 = arith.constant 8 : i32
    %c0_90 = arith.constant 0 : index
    %c0_91 = arith.constant 0 : index
    %c0_92 = arith.constant 0 : index
    %290 = vector.load %arg12[%c0_90, %c0_91, %c0_92] : memref<8x8x128xf32, #tpu.memory_space<vmem>>, vector<8x8x128xf32>
    %291 = vector.shape_cast %290 : vector<8x8x128xf32> to vector<64x128xf32>
    %c0_93 = arith.constant 0 : index
    %c0_94 = arith.constant 0 : index
    %292 = vector.load %arg5[%c0_93, %c0_94] : memref<128x512xf32, #tpu.memory_space<vmem>>, vector<128x512xf32>
    %cst_95 = arith.constant dense<0.000000e+00> : vector<64x512xf32>
    %293 = tpu.matmul %291, %292, %cst_95 {dimension_numbers = #tpu.dot_dimension_numbers<[1], [0], [0], [1], [0, 0, 1, 1], [], []>} : vector<64x128xf32>, vector<128x512xf32>, vector<64x512xf32> -> vector<64x512xf32>
    %c0_96 = arith.constant 0 : index
    %c0_97 = arith.constant 0 : index
    %294 = vector.load %arg7[%c0_96, %c0_97] : memref<1x512xf32, #tpu.memory_space<vmem>>, vector<1x512xf32>
    %295 = vector.broadcast %294 : vector<1x512xf32> to vector<64x512xf32>
    %296 = arith.addf %293, %295 : vector<64x512xf32>
    %297 = vector.shape_cast %296 : vector<64x512xf32> to vector<8x8x512xf32>
    %c0_98 = arith.constant 0 : index
    %c0_99 = arith.constant 0 : index
    %c0_100 = arith.constant 0 : index
    %298 = vector.load %arg11[%c0_98, %c0_99, %c0_100] : memref<8x8x512xf32, #tpu.memory_space<vmem>>, vector<8x8x512xf32>
    tpu.vector_store %arg11[%c0_98, %c0_99, %c0_100], %297 {strides = array<i32>} : memref<8x8x512xf32, #tpu.memory_space<vmem>>, vector<8x8x512xf32>,
    %cst_101 = arith.constant 0.000000e+00 : f32
    %299 = vector.broadcast %cst_101 : f32 to vector<8x128xf32>
    %c0_i32_102 = arith.constant 0 : i32
    %300 = arith.index_cast %c0_i32_102 : i32 to index
    %c0_103 = arith.constant 0 : index
    %c0_104 = arith.constant 0 : index
    %301 = vector.load %arg11[%300, %c0_103, %c0_104] : memref<8x8x512xf32, #tpu.memory_space<vmem>>, vector<1x8x512xf32>
    %302 = vector.shape_cast %301 : vector<1x8x512xf32> to vector<8x512xf32>
    %c0_105 = arith.constant 0 : index
    %c0_106 = arith.constant 0 : index
    %303 = vector.load %arg6[%c0_105, %c0_106] : memref<128x512xf32, #tpu.memory_space<vmem>>, vector<128x512xf32>
    %cst_107 = arith.constant dense<0.000000e+00> : vector<8x512xf32>
    %304 = tpu.matmul %299, %303, %cst_107 {dimension_numbers = #tpu.dot_dimension_numbers<[1], [0], [0], [1], [0, 0, 1, 1], [], []>} : vector<8x128xf32>, vector<128x512xf32>, vector<8x512xf32> -> vector<8x512xf32>
    %305 = arith.addf %302, %304 : vector<8x512xf32>
    %306 = vector.extract_strided_slice %305 {offsets = [0, 0], sizes = [8, 128], strides = [1, 1]} : vector<8x512xf32> to vector<8x128xf32>
    %307 = arith.negf %306 : vector<8x128xf32>
    %308 = math.exp %307 : vector<8x128xf32>
    %cst_108 = arith.constant 1.000000e+00 : f32
    %309 = vector.broadcast %cst_108 : f32 to vector<8x128xf32>
    %310 = arith.addf %309, %308 : vector<8x128xf32>
    %311 = arith.divf %309, %310 : vector<8x128xf32>
    %312 = vector.extract_strided_slice %305 {offsets = [0, 128], sizes = [8, 128], strides = [1, 1]} : vector<8x512xf32> to vector<8x128xf32>
    %313 = arith.negf %312 : vector<8x128xf32>
    %314 = math.exp %313 : vector<8x128xf32>
    %cst_109 = arith.constant 1.000000e+00 : f32
    %315 = vector.broadcast %cst_109 : f32 to vector<8x128xf32>
    %316 = arith.addf %315, %314 : vector<8x128xf32>
    %317 = arith.divf %315, %316 : vector<8x128xf32>
    %318 = vector.extract_strided_slice %305 {offsets = [0, 256], sizes = [8, 128], strides = [1, 1]} : vector<8x512xf32> to vector<8x128xf32>
    %319 = math.tanh %318 : vector<8x128xf32>
    %320 = vector.extract_strided_slice %305 {offsets = [0, 384], sizes = [8, 128], strides = [1, 1]} : vector<8x512xf32> to vector<8x128xf32>
    %321 = arith.negf %320 : vector<8x128xf32>
    %322 = math.exp %321 : vector<8x128xf32>
    %cst_110 = arith.constant 1.000000e+00 : f32
    %323 = vector.broadcast %cst_110 : f32 to vector<8x128xf32>
    %324 = arith.addf %323, %322 : vector<8x128xf32>
    %325 = arith.divf %323, %324 : vector<8x128xf32>
    %326 = arith.mulf %317, %299 : vector<8x128xf32>
    %327 = arith.mulf %311, %319 : vector<8x128xf32>
    %328 = arith.addf %326, %327 : vector<8x128xf32>
    %329 = math.tanh %328 : vector<8x128xf32>
    %330 = arith.mulf %325, %329 : vector<8x128xf32>
    %331 = arith.index_cast %c0_i32_102 : i32 to index
    %c0_111 = arith.constant 0 : index
    %c0_112 = arith.constant 0 : index
    %332 = vector.load %arg12[%331, %c0_111, %c0_112] : memref<8x8x128xf32, #tpu.memory_space<vmem>>, vector<1x8x128xf32>
    %333 = vector.shape_cast %332 : vector<1x8x128xf32> to vector<8x128xf32>
    %334 = vector.shape_cast %330 : vector<8x128xf32> to vector<1x8x128xf32>
    tpu.vector_store %arg12[%331, %c0_111, %c0_112], %334 {strides = array<i32>} : memref<8x8x128xf32, #tpu.memory_space<vmem>>, vector<1x8x128xf32>,
    %c1_i32_113 = arith.constant 1 : i32
    %335 = arith.index_cast %c1_i32_113 : i32 to index
    %c0_114 = arith.constant 0 : index
    %c0_115 = arith.constant 0 : index
    %336 = vector.load %arg11[%335, %c0_114, %c0_115] : memref<8x8x512xf32, #tpu.memory_space<vmem>>, vector<1x8x512xf32>
    %337 = vector.shape_cast %336 : vector<1x8x512xf32> to vector<8x512xf32>
    %c0_116 = arith.constant 0 : index
    %c0_117 = arith.constant 0 : index
    %338 = vector.load %arg6[%c0_116, %c0_117] : memref<128x512xf32, #tpu.memory_space<vmem>>, vector<128x512xf32>
    %cst_118 = arith.constant dense<0.000000e+00> : vector<8x512xf32>
    %339 = tpu.matmul %330, %338, %cst_118 {dimension_numbers = #tpu.dot_dimension_numbers<[1], [0], [0], [1], [0, 0, 1, 1], [], []>} : vector<8x128xf32>, vector<128x512xf32>, vector<8x512xf32> -> vector<8x512xf32>
    %340 = arith.addf %337, %339 : vector<8x512xf32>
    %341 = vector.extract_strided_slice %340 {offsets = [0, 0], sizes = [8, 128], strides = [1, 1]} : vector<8x512xf32> to vector<8x128xf32>
    %342 = arith.negf %341 : vector<8x128xf32>
    %343 = math.exp %342 : vector<8x128xf32>
    %cst_119 = arith.constant 1.000000e+00 : f32
    %344 = vector.broadcast %cst_119 : f32 to vector<8x128xf32>
    %345 = arith.addf %344, %343 : vector<8x128xf32>
    %346 = arith.divf %344, %345 : vector<8x128xf32>
    %347 = vector.extract_strided_slice %340 {offsets = [0, 128], sizes = [8, 128], strides = [1, 1]} : vector<8x512xf32> to vector<8x128xf32>
    %348 = arith.negf %347 : vector<8x128xf32>
    %349 = math.exp %348 : vector<8x128xf32>
    %cst_120 = arith.constant 1.000000e+00 : f32
    %350 = vector.broadcast %cst_120 : f32 to vector<8x128xf32>
    %351 = arith.addf %350, %349 : vector<8x128xf32>
    %352 = arith.divf %350, %351 : vector<8x128xf32>
    %353 = vector.extract_strided_slice %340 {offsets = [0, 256], sizes = [8, 128], strides = [1, 1]} : vector<8x512xf32> to vector<8x128xf32>
    %354 = math.tanh %353 : vector<8x128xf32>
    %355 = vector.extract_strided_slice %340 {offsets = [0, 384], sizes = [8, 128], strides = [1, 1]} : vector<8x512xf32> to vector<8x128xf32>
    %356 = arith.negf %355 : vector<8x128xf32>
    %357 = math.exp %356 : vector<8x128xf32>
    %cst_121 = arith.constant 1.000000e+00 : f32
    %358 = vector.broadcast %cst_121 : f32 to vector<8x128xf32>
    %359 = arith.addf %358, %357 : vector<8x128xf32>
    %360 = arith.divf %358, %359 : vector<8x128xf32>
    %361 = arith.mulf %352, %328 : vector<8x128xf32>
    %362 = arith.mulf %346, %354 : vector<8x128xf32>
    %363 = arith.addf %361, %362 : vector<8x128xf32>
    %364 = math.tanh %363 : vector<8x128xf32>
    %365 = arith.mulf %360, %364 : vector<8x128xf32>
    %366 = arith.index_cast %c1_i32_113 : i32 to index
    %c0_122 = arith.constant 0 : index
    %c0_123 = arith.constant 0 : index
    %367 = vector.load %arg12[%366, %c0_122, %c0_123] : memref<8x8x128xf32, #tpu.memory_space<vmem>>, vector<1x8x128xf32>
    %368 = vector.shape_cast %367 : vector<1x8x128xf32> to vector<8x128xf32>
    %369 = vector.shape_cast %365 : vector<8x128xf32> to vector<1x8x128xf32>
    tpu.vector_store %arg12[%366, %c0_122, %c0_123], %369 {strides = array<i32>} : memref<8x8x128xf32, #tpu.memory_space<vmem>>, vector<1x8x128xf32>,
    %c2_i32_124 = arith.constant 2 : i32
    %370 = arith.index_cast %c2_i32_124 : i32 to index
    %c0_125 = arith.constant 0 : index
    %c0_126 = arith.constant 0 : index
    %371 = vector.load %arg11[%370, %c0_125, %c0_126] : memref<8x8x512xf32, #tpu.memory_space<vmem>>, vector<1x8x512xf32>
    %372 = vector.shape_cast %371 : vector<1x8x512xf32> to vector<8x512xf32>
    %c0_127 = arith.constant 0 : index
    %c0_128 = arith.constant 0 : index
    %373 = vector.load %arg6[%c0_127, %c0_128] : memref<128x512xf32, #tpu.memory_space<vmem>>, vector<128x512xf32>
    %cst_129 = arith.constant dense<0.000000e+00> : vector<8x512xf32>
    %374 = tpu.matmul %365, %373, %cst_129 {dimension_numbers = #tpu.dot_dimension_numbers<[1], [0], [0], [1], [0, 0, 1, 1], [], []>} : vector<8x128xf32>, vector<128x512xf32>, vector<8x512xf32> -> vector<8x512xf32>
    %375 = arith.addf %372, %374 : vector<8x512xf32>
    %376 = vector.extract_strided_slice %375 {offsets = [0, 0], sizes = [8, 128], strides = [1, 1]} : vector<8x512xf32> to vector<8x128xf32>
    %377 = arith.negf %376 : vector<8x128xf32>
    %378 = math.exp %377 : vector<8x128xf32>
    %cst_130 = arith.constant 1.000000e+00 : f32
    %379 = vector.broadcast %cst_130 : f32 to vector<8x128xf32>
    %380 = arith.addf %379, %378 : vector<8x128xf32>
    %381 = arith.divf %379, %380 : vector<8x128xf32>
    %382 = vector.extract_strided_slice %375 {offsets = [0, 128], sizes = [8, 128], strides = [1, 1]} : vector<8x512xf32> to vector<8x128xf32>
    %383 = arith.negf %382 : vector<8x128xf32>
    %384 = math.exp %383 : vector<8x128xf32>
    %cst_131 = arith.constant 1.000000e+00 : f32
    %385 = vector.broadcast %cst_131 : f32 to vector<8x128xf32>
    %386 = arith.addf %385, %384 : vector<8x128xf32>
    %387 = arith.divf %385, %386 : vector<8x128xf32>
    %388 = vector.extract_strided_slice %375 {offsets = [0, 256], sizes = [8, 128], strides = [1, 1]} : vector<8x512xf32> to vector<8x128xf32>
    %389 = math.tanh %388 : vector<8x128xf32>
    %390 = vector.extract_strided_slice %375 {offsets = [0, 384], sizes = [8, 128], strides = [1, 1]} : vector<8x512xf32> to vector<8x128xf32>
    %391 = arith.negf %390 : vector<8x128xf32>
    %392 = math.exp %391 : vector<8x128xf32>
    %cst_132 = arith.constant 1.000000e+00 : f32
    %393 = vector.broadcast %cst_132 : f32 to vector<8x128xf32>
    %394 = arith.addf %393, %392 : vector<8x128xf32>
    %395 = arith.divf %393, %394 : vector<8x128xf32>
    %396 = arith.mulf %387, %363 : vector<8x128xf32>
    %397 = arith.mulf %381, %389 : vector<8x128xf32>
    %398 = arith.addf %396, %397 : vector<8x128xf32>
    %399 = math.tanh %398 : vector<8x128xf32>
    %400 = arith.mulf %395, %399 : vector<8x128xf32>
    %401 = arith.index_cast %c2_i32_124 : i32 to index
    %c0_133 = arith.constant 0 : index
    %c0_134 = arith.constant 0 : index
    %402 = vector.load %arg12[%401, %c0_133, %c0_134] : memref<8x8x128xf32, #tpu.memory_space<vmem>>, vector<1x8x128xf32>
    %403 = vector.shape_cast %402 : vector<1x8x128xf32> to vector<8x128xf32>
    %404 = vector.shape_cast %400 : vector<8x128xf32> to vector<1x8x128xf32>
    tpu.vector_store %arg12[%401, %c0_133, %c0_134], %404 {strides = array<i32>} : memref<8x8x128xf32, #tpu.memory_space<vmem>>, vector<1x8x128xf32>,
    %c3_i32_135 = arith.constant 3 : i32
    %405 = arith.index_cast %c3_i32_135 : i32 to index
    %c0_136 = arith.constant 0 : index
    %c0_137 = arith.constant 0 : index
    %406 = vector.load %arg11[%405, %c0_136, %c0_137] : memref<8x8x512xf32, #tpu.memory_space<vmem>>, vector<1x8x512xf32>
    %407 = vector.shape_cast %406 : vector<1x8x512xf32> to vector<8x512xf32>
    %c0_138 = arith.constant 0 : index
    %c0_139 = arith.constant 0 : index
    %408 = vector.load %arg6[%c0_138, %c0_139] : memref<128x512xf32, #tpu.memory_space<vmem>>, vector<128x512xf32>
    %cst_140 = arith.constant dense<0.000000e+00> : vector<8x512xf32>
    %409 = tpu.matmul %400, %408, %cst_140 {dimension_numbers = #tpu.dot_dimension_numbers<[1], [0], [0], [1], [0, 0, 1, 1], [], []>} : vector<8x128xf32>, vector<128x512xf32>, vector<8x512xf32> -> vector<8x512xf32>
    %410 = arith.addf %407, %409 : vector<8x512xf32>
    %411 = vector.extract_strided_slice %410 {offsets = [0, 0], sizes = [8, 128], strides = [1, 1]} : vector<8x512xf32> to vector<8x128xf32>
    %412 = arith.negf %411 : vector<8x128xf32>
    %413 = math.exp %412 : vector<8x128xf32>
    %cst_141 = arith.constant 1.000000e+00 : f32
    %414 = vector.broadcast %cst_141 : f32 to vector<8x128xf32>
    %415 = arith.addf %414, %413 : vector<8x128xf32>
    %416 = arith.divf %414, %415 : vector<8x128xf32>
    %417 = vector.extract_strided_slice %410 {offsets = [0, 128], sizes = [8, 128], strides = [1, 1]} : vector<8x512xf32> to vector<8x128xf32>
    %418 = arith.negf %417 : vector<8x128xf32>
    %419 = math.exp %418 : vector<8x128xf32>
    %cst_142 = arith.constant 1.000000e+00 : f32
    %420 = vector.broadcast %cst_142 : f32 to vector<8x128xf32>
    %421 = arith.addf %420, %419 : vector<8x128xf32>
    %422 = arith.divf %420, %421 : vector<8x128xf32>
    %423 = vector.extract_strided_slice %410 {offsets = [0, 256], sizes = [8, 128], strides = [1, 1]} : vector<8x512xf32> to vector<8x128xf32>
    %424 = math.tanh %423 : vector<8x128xf32>
    %425 = vector.extract_strided_slice %410 {offsets = [0, 384], sizes = [8, 128], strides = [1, 1]} : vector<8x512xf32> to vector<8x128xf32>
    %426 = arith.negf %425 : vector<8x128xf32>
    %427 = math.exp %426 : vector<8x128xf32>
    %cst_143 = arith.constant 1.000000e+00 : f32
    %428 = vector.broadcast %cst_143 : f32 to vector<8x128xf32>
    %429 = arith.addf %428, %427 : vector<8x128xf32>
    %430 = arith.divf %428, %429 : vector<8x128xf32>
    %431 = arith.mulf %422, %398 : vector<8x128xf32>
    %432 = arith.mulf %416, %424 : vector<8x128xf32>
    %433 = arith.addf %431, %432 : vector<8x128xf32>
    %434 = math.tanh %433 : vector<8x128xf32>
    %435 = arith.mulf %430, %434 : vector<8x128xf32>
    %436 = arith.index_cast %c3_i32_135 : i32 to index
    %c0_144 = arith.constant 0 : index
    %c0_145 = arith.constant 0 : index
    %437 = vector.load %arg12[%436, %c0_144, %c0_145] : memref<8x8x128xf32, #tpu.memory_space<vmem>>, vector<1x8x128xf32>
    %438 = vector.shape_cast %437 : vector<1x8x128xf32> to vector<8x128xf32>
    %439 = vector.shape_cast %435 : vector<8x128xf32> to vector<1x8x128xf32>
    tpu.vector_store %arg12[%436, %c0_144, %c0_145], %439 {strides = array<i32>} : memref<8x8x128xf32, #tpu.memory_space<vmem>>, vector<1x8x128xf32>,
    %c4_i32_146 = arith.constant 4 : i32
    %440 = arith.index_cast %c4_i32_146 : i32 to index
    %c0_147 = arith.constant 0 : index
    %c0_148 = arith.constant 0 : index
    %441 = vector.load %arg11[%440, %c0_147, %c0_148] : memref<8x8x512xf32, #tpu.memory_space<vmem>>, vector<1x8x512xf32>
    %442 = vector.shape_cast %441 : vector<1x8x512xf32> to vector<8x512xf32>
    %c0_149 = arith.constant 0 : index
    %c0_150 = arith.constant 0 : index
    %443 = vector.load %arg6[%c0_149, %c0_150] : memref<128x512xf32, #tpu.memory_space<vmem>>, vector<128x512xf32>
    %cst_151 = arith.constant dense<0.000000e+00> : vector<8x512xf32>
    %444 = tpu.matmul %435, %443, %cst_151 {dimension_numbers = #tpu.dot_dimension_numbers<[1], [0], [0], [1], [0, 0, 1, 1], [], []>} : vector<8x128xf32>, vector<128x512xf32>, vector<8x512xf32> -> vector<8x512xf32>
    %445 = arith.addf %442, %444 : vector<8x512xf32>
    %446 = vector.extract_strided_slice %445 {offsets = [0, 0], sizes = [8, 128], strides = [1, 1]} : vector<8x512xf32> to vector<8x128xf32>
    %447 = arith.negf %446 : vector<8x128xf32>
    %448 = math.exp %447 : vector<8x128xf32>
    %cst_152 = arith.constant 1.000000e+00 : f32
    %449 = vector.broadcast %cst_152 : f32 to vector<8x128xf32>
    %450 = arith.addf %449, %448 : vector<8x128xf32>
    %451 = arith.divf %449, %450 : vector<8x128xf32>
    %452 = vector.extract_strided_slice %445 {offsets = [0, 128], sizes = [8, 128], strides = [1, 1]} : vector<8x512xf32> to vector<8x128xf32>
    %453 = arith.negf %452 : vector<8x128xf32>
    %454 = math.exp %453 : vector<8x128xf32>
    %cst_153 = arith.constant 1.000000e+00 : f32
    %455 = vector.broadcast %cst_153 : f32 to vector<8x128xf32>
    %456 = arith.addf %455, %454 : vector<8x128xf32>
    %457 = arith.divf %455, %456 : vector<8x128xf32>
    %458 = vector.extract_strided_slice %445 {offsets = [0, 256], sizes = [8, 128], strides = [1, 1]} : vector<8x512xf32> to vector<8x128xf32>
    %459 = math.tanh %458 : vector<8x128xf32>
    %460 = vector.extract_strided_slice %445 {offsets = [0, 384], sizes = [8, 128], strides = [1, 1]} : vector<8x512xf32> to vector<8x128xf32>
    %461 = arith.negf %460 : vector<8x128xf32>
    %462 = math.exp %461 : vector<8x128xf32>
    %cst_154 = arith.constant 1.000000e+00 : f32
    %463 = vector.broadcast %cst_154 : f32 to vector<8x128xf32>
    %464 = arith.addf %463, %462 : vector<8x128xf32>
    %465 = arith.divf %463, %464 : vector<8x128xf32>
    %466 = arith.mulf %457, %433 : vector<8x128xf32>
    %467 = arith.mulf %451, %459 : vector<8x128xf32>
    %468 = arith.addf %466, %467 : vector<8x128xf32>
    %469 = math.tanh %468 : vector<8x128xf32>
    %470 = arith.mulf %465, %469 : vector<8x128xf32>
    %471 = arith.index_cast %c4_i32_146 : i32 to index
    %c0_155 = arith.constant 0 : index
    %c0_156 = arith.constant 0 : index
    %472 = vector.load %arg12[%471, %c0_155, %c0_156] : memref<8x8x128xf32, #tpu.memory_space<vmem>>, vector<1x8x128xf32>
    %473 = vector.shape_cast %472 : vector<1x8x128xf32> to vector<8x128xf32>
    %474 = vector.shape_cast %470 : vector<8x128xf32> to vector<1x8x128xf32>
    tpu.vector_store %arg12[%471, %c0_155, %c0_156], %474 {strides = array<i32>} : memref<8x8x128xf32, #tpu.memory_space<vmem>>, vector<1x8x128xf32>,
    %c5_i32_157 = arith.constant 5 : i32
    %475 = arith.index_cast %c5_i32_157 : i32 to index
    %c0_158 = arith.constant 0 : index
    %c0_159 = arith.constant 0 : index
    %476 = vector.load %arg11[%475, %c0_158, %c0_159] : memref<8x8x512xf32, #tpu.memory_space<vmem>>, vector<1x8x512xf32>
    %477 = vector.shape_cast %476 : vector<1x8x512xf32> to vector<8x512xf32>
    %c0_160 = arith.constant 0 : index
    %c0_161 = arith.constant 0 : index
    %478 = vector.load %arg6[%c0_160, %c0_161] : memref<128x512xf32, #tpu.memory_space<vmem>>, vector<128x512xf32>
    %cst_162 = arith.constant dense<0.000000e+00> : vector<8x512xf32>
    %479 = tpu.matmul %470, %478, %cst_162 {dimension_numbers = #tpu.dot_dimension_numbers<[1], [0], [0], [1], [0, 0, 1, 1], [], []>} : vector<8x128xf32>, vector<128x512xf32>, vector<8x512xf32> -> vector<8x512xf32>
    %480 = arith.addf %477, %479 : vector<8x512xf32>
    %481 = vector.extract_strided_slice %480 {offsets = [0, 0], sizes = [8, 128], strides = [1, 1]} : vector<8x512xf32> to vector<8x128xf32>
    %482 = arith.negf %481 : vector<8x128xf32>
    %483 = math.exp %482 : vector<8x128xf32>
    %cst_163 = arith.constant 1.000000e+00 : f32
    %484 = vector.broadcast %cst_163 : f32 to vector<8x128xf32>
    %485 = arith.addf %484, %483 : vector<8x128xf32>
    %486 = arith.divf %484, %485 : vector<8x128xf32>
    %487 = vector.extract_strided_slice %480 {offsets = [0, 128], sizes = [8, 128], strides = [1, 1]} : vector<8x512xf32> to vector<8x128xf32>
    %488 = arith.negf %487 : vector<8x128xf32>
    %489 = math.exp %488 : vector<8x128xf32>
    %cst_164 = arith.constant 1.000000e+00 : f32
    %490 = vector.broadcast %cst_164 : f32 to vector<8x128xf32>
    %491 = arith.addf %490, %489 : vector<8x128xf32>
    %492 = arith.divf %490, %491 : vector<8x128xf32>
    %493 = vector.extract_strided_slice %480 {offsets = [0, 256], sizes = [8, 128], strides = [1, 1]} : vector<8x512xf32> to vector<8x128xf32>
    %494 = math.tanh %493 : vector<8x128xf32>
    %495 = vector.extract_strided_slice %480 {offsets = [0, 384], sizes = [8, 128], strides = [1, 1]} : vector<8x512xf32> to vector<8x128xf32>
    %496 = arith.negf %495 : vector<8x128xf32>
    %497 = math.exp %496 : vector<8x128xf32>
    %cst_165 = arith.constant 1.000000e+00 : f32
    %498 = vector.broadcast %cst_165 : f32 to vector<8x128xf32>
    %499 = arith.addf %498, %497 : vector<8x128xf32>
    %500 = arith.divf %498, %499 : vector<8x128xf32>
    %501 = arith.mulf %492, %468 : vector<8x128xf32>
    %502 = arith.mulf %486, %494 : vector<8x128xf32>
    %503 = arith.addf %501, %502 : vector<8x128xf32>
    %504 = math.tanh %503 : vector<8x128xf32>
    %505 = arith.mulf %500, %504 : vector<8x128xf32>
    %506 = arith.index_cast %c5_i32_157 : i32 to index
    %c0_166 = arith.constant 0 : index
    %c0_167 = arith.constant 0 : index
    %507 = vector.load %arg12[%506, %c0_166, %c0_167] : memref<8x8x128xf32, #tpu.memory_space<vmem>>, vector<1x8x128xf32>
    %508 = vector.shape_cast %507 : vector<1x8x128xf32> to vector<8x128xf32>
    %509 = vector.shape_cast %505 : vector<8x128xf32> to vector<1x8x128xf32>
    tpu.vector_store %arg12[%506, %c0_166, %c0_167], %509 {strides = array<i32>} : memref<8x8x128xf32, #tpu.memory_space<vmem>>, vector<1x8x128xf32>,
    %c6_i32_168 = arith.constant 6 : i32
    %510 = arith.index_cast %c6_i32_168 : i32 to index
    %c0_169 = arith.constant 0 : index
    %c0_170 = arith.constant 0 : index
    %511 = vector.load %arg11[%510, %c0_169, %c0_170] : memref<8x8x512xf32, #tpu.memory_space<vmem>>, vector<1x8x512xf32>
    %512 = vector.shape_cast %511 : vector<1x8x512xf32> to vector<8x512xf32>
    %c0_171 = arith.constant 0 : index
    %c0_172 = arith.constant 0 : index
    %513 = vector.load %arg6[%c0_171, %c0_172] : memref<128x512xf32, #tpu.memory_space<vmem>>, vector<128x512xf32>
    %cst_173 = arith.constant dense<0.000000e+00> : vector<8x512xf32>
    %514 = tpu.matmul %505, %513, %cst_173 {dimension_numbers = #tpu.dot_dimension_numbers<[1], [0], [0], [1], [0, 0, 1, 1], [], []>} : vector<8x128xf32>, vector<128x512xf32>, vector<8x512xf32> -> vector<8x512xf32>
    %515 = arith.addf %512, %514 : vector<8x512xf32>
    %516 = vector.extract_strided_slice %515 {offsets = [0, 0], sizes = [8, 128], strides = [1, 1]} : vector<8x512xf32> to vector<8x128xf32>
    %517 = arith.negf %516 : vector<8x128xf32>
    %518 = math.exp %517 : vector<8x128xf32>
    %cst_174 = arith.constant 1.000000e+00 : f32
    %519 = vector.broadcast %cst_174 : f32 to vector<8x128xf32>
    %520 = arith.addf %519, %518 : vector<8x128xf32>
    %521 = arith.divf %519, %520 : vector<8x128xf32>
    %522 = vector.extract_strided_slice %515 {offsets = [0, 128], sizes = [8, 128], strides = [1, 1]} : vector<8x512xf32> to vector<8x128xf32>
    %523 = arith.negf %522 : vector<8x128xf32>
    %524 = math.exp %523 : vector<8x128xf32>
    %cst_175 = arith.constant 1.000000e+00 : f32
    %525 = vector.broadcast %cst_175 : f32 to vector<8x128xf32>
    %526 = arith.addf %525, %524 : vector<8x128xf32>
    %527 = arith.divf %525, %526 : vector<8x128xf32>
    %528 = vector.extract_strided_slice %515 {offsets = [0, 256], sizes = [8, 128], strides = [1, 1]} : vector<8x512xf32> to vector<8x128xf32>
    %529 = math.tanh %528 : vector<8x128xf32>
    %530 = vector.extract_strided_slice %515 {offsets = [0, 384], sizes = [8, 128], strides = [1, 1]} : vector<8x512xf32> to vector<8x128xf32>
    %531 = arith.negf %530 : vector<8x128xf32>
    %532 = math.exp %531 : vector<8x128xf32>
    %cst_176 = arith.constant 1.000000e+00 : f32
    %533 = vector.broadcast %cst_176 : f32 to vector<8x128xf32>
    %534 = arith.addf %533, %532 : vector<8x128xf32>
    %535 = arith.divf %533, %534 : vector<8x128xf32>
    %536 = arith.mulf %527, %503 : vector<8x128xf32>
    %537 = arith.mulf %521, %529 : vector<8x128xf32>
    %538 = arith.addf %536, %537 : vector<8x128xf32>
    %539 = math.tanh %538 : vector<8x128xf32>
    %540 = arith.mulf %535, %539 : vector<8x128xf32>
    %541 = arith.index_cast %c6_i32_168 : i32 to index
    %c0_177 = arith.constant 0 : index
    %c0_178 = arith.constant 0 : index
    %542 = vector.load %arg12[%541, %c0_177, %c0_178] : memref<8x8x128xf32, #tpu.memory_space<vmem>>, vector<1x8x128xf32>
    %543 = vector.shape_cast %542 : vector<1x8x128xf32> to vector<8x128xf32>
    %544 = vector.shape_cast %540 : vector<8x128xf32> to vector<1x8x128xf32>
    tpu.vector_store %arg12[%541, %c0_177, %c0_178], %544 {strides = array<i32>} : memref<8x8x128xf32, #tpu.memory_space<vmem>>, vector<1x8x128xf32>,
    %c7_i32_179 = arith.constant 7 : i32
    %545 = arith.index_cast %c7_i32_179 : i32 to index
    %c0_180 = arith.constant 0 : index
    %c0_181 = arith.constant 0 : index
    %546 = vector.load %arg11[%545, %c0_180, %c0_181] : memref<8x8x512xf32, #tpu.memory_space<vmem>>, vector<1x8x512xf32>
    %547 = vector.shape_cast %546 : vector<1x8x512xf32> to vector<8x512xf32>
    %c0_182 = arith.constant 0 : index
    %c0_183 = arith.constant 0 : index
    %548 = vector.load %arg6[%c0_182, %c0_183] : memref<128x512xf32, #tpu.memory_space<vmem>>, vector<128x512xf32>
    %cst_184 = arith.constant dense<0.000000e+00> : vector<8x512xf32>
    %549 = tpu.matmul %540, %548, %cst_184 {dimension_numbers = #tpu.dot_dimension_numbers<[1], [0], [0], [1], [0, 0, 1, 1], [], []>} : vector<8x128xf32>, vector<128x512xf32>, vector<8x512xf32> -> vector<8x512xf32>
    %550 = arith.addf %547, %549 : vector<8x512xf32>
    %551 = vector.extract_strided_slice %550 {offsets = [0, 0], sizes = [8, 128], strides = [1, 1]} : vector<8x512xf32> to vector<8x128xf32>
    %552 = arith.negf %551 : vector<8x128xf32>
    %553 = math.exp %552 : vector<8x128xf32>
    %cst_185 = arith.constant 1.000000e+00 : f32
    %554 = vector.broadcast %cst_185 : f32 to vector<8x128xf32>
    %555 = arith.addf %554, %553 : vector<8x128xf32>
    %556 = arith.divf %554, %555 : vector<8x128xf32>
    %557 = vector.extract_strided_slice %550 {offsets = [0, 128], sizes = [8, 128], strides = [1, 1]} : vector<8x512xf32> to vector<8x128xf32>
    %558 = arith.negf %557 : vector<8x128xf32>
    %559 = math.exp %558 : vector<8x128xf32>
    %cst_186 = arith.constant 1.000000e+00 : f32
    %560 = vector.broadcast %cst_186 : f32 to vector<8x128xf32>
    %561 = arith.addf %560, %559 : vector<8x128xf32>
    %562 = arith.divf %560, %561 : vector<8x128xf32>
    %563 = vector.extract_strided_slice %550 {offsets = [0, 256], sizes = [8, 128], strides = [1, 1]} : vector<8x512xf32> to vector<8x128xf32>
    %564 = math.tanh %563 : vector<8x128xf32>
    %565 = vector.extract_strided_slice %550 {offsets = [0, 384], sizes = [8, 128], strides = [1, 1]} : vector<8x512xf32> to vector<8x128xf32>
    %566 = arith.negf %565 : vector<8x128xf32>
    %567 = math.exp %566 : vector<8x128xf32>
    %cst_187 = arith.constant 1.000000e+00 : f32
    %568 = vector.broadcast %cst_187 : f32 to vector<8x128xf32>
    %569 = arith.addf %568, %567 : vector<8x128xf32>
    %570 = arith.divf %568, %569 : vector<8x128xf32>
    %571 = arith.mulf %562, %538 : vector<8x128xf32>
    %572 = arith.mulf %556, %564 : vector<8x128xf32>
    %573 = arith.addf %571, %572 : vector<8x128xf32>
    %574 = math.tanh %573 : vector<8x128xf32>
    %575 = arith.mulf %570, %574 : vector<8x128xf32>
    %576 = arith.index_cast %c7_i32_179 : i32 to index
    %c0_188 = arith.constant 0 : index
    %c0_189 = arith.constant 0 : index
    %577 = vector.load %arg12[%576, %c0_188, %c0_189] : memref<8x8x128xf32, #tpu.memory_space<vmem>>, vector<1x8x128xf32>
    %578 = vector.shape_cast %577 : vector<1x8x128xf32> to vector<8x128xf32>
    %579 = vector.shape_cast %575 : vector<8x128xf32> to vector<1x8x128xf32>
    tpu.vector_store %arg12[%576, %c0_188, %c0_189], %579 {strides = array<i32>} : memref<8x8x128xf32, #tpu.memory_space<vmem>>, vector<1x8x128xf32>,
    %c8_i32_190 = arith.constant 8 : i32
    %c1 = arith.constant 1 : index
    %c0_191 = arith.constant 0 : index
    %c0_192 = arith.constant 0 : index
    %580 = vector.load %arg12[%c1, %c0_191, %c0_192] : memref<8x8x128xf32, #tpu.memory_space<vmem>>, vector<7x8x128xf32>
    %cst_193 = arith.constant 0.000000e+00 : f32
    %581 = vector.broadcast %cst_193 : f32 to vector<7x8x128xf32>
    %582 = arith.maximumf %580, %581 : vector<7x8x128xf32>
    %583 = vector.shape_cast %582 : vector<7x8x128xf32> to vector<56x128xf32>
    %c0_194 = arith.constant 0 : index
    %c0_195 = arith.constant 0 : index
    %584 = vector.load %arg8[%c0_194, %c0_195] : memref<128x128xf32, #tpu.memory_space<vmem>>, vector<128x128xf32>
    %cst_196 = arith.constant dense<0.000000e+00> : vector<56x128xf32>
    %585 = tpu.matmul %583, %584, %cst_196 {dimension_numbers = #tpu.dot_dimension_numbers<[1], [0], [0], [1], [0, 0, 1, 1], [], []>} : vector<56x128xf32>, vector<128x128xf32>, vector<56x128xf32> -> vector<56x128xf32>
    %c0_197 = arith.constant 0 : index
    %c0_198 = arith.constant 0 : index
    %586 = vector.load %arg9[%c0_197, %c0_198] : memref<1x128xf32, #tpu.memory_space<vmem>>, vector<1x128xf32>
    %587 = vector.broadcast %586 : vector<1x128xf32> to vector<56x128xf32>
    %588 = arith.addf %585, %587 : vector<56x128xf32>
    %589 = vector.shape_cast %588 : vector<56x128xf32> to vector<7x8x128xf32>
    %c0_199 = arith.constant 0 : index
    %c0_200 = arith.constant 0 : index
    %c0_201 = arith.constant 0 : index
    %590 = vector.load %arg10[%c0_199, %c0_200, %c0_201] : memref<7x8x128xf32, #tpu.memory_space<vmem>>, vector<7x8x128xf32>
    tpu.vector_store %arg10[%c0_199, %c0_200, %c0_201], %589 {strides = array<i32>} : memref<7x8x128xf32, #tpu.memory_space<vmem>>, vector<7x8x128xf32>,
    return
  }
  func.func @transform_0(%arg0: i32) -> (i32, i32, i32) {
    %c0_i32 = arith.constant 0 : i32
    %c0_i32_0 = arith.constant 0 : i32
    %c0_i32_1 = arith.constant 0 : i32
    return %c0_i32, %arg0, %c0_i32_0 : i32, i32, i32
  }
  func.func @transform_1(%arg0: i32) -> (i32, i32) {
    %c0_i32 = arith.constant 0 : i32
    %c0_i32_0 = arith.constant 0 : i32
    %c0_i32_1 = arith.constant 0 : i32
    return %c0_i32, %c0_i32_0 : i32, i32
  }
  func.func @transform_2(%arg0: i32) -> (i32, i32) {
    %c0_i32 = arith.constant 0 : i32
    %c0_i32_0 = arith.constant 0 : i32
    %c0_i32_1 = arith.constant 0 : i32
    return %c0_i32, %c0_i32_0 : i32, i32
  }
  func.func @transform_3(%arg0: i32) -> (i32, i32) {
    %c0_i32 = arith.constant 0 : i32
    %c0_i32_0 = arith.constant 0 : i32
    %c0_i32_1 = arith.constant 0 : i32
    return %c0_i32, %c0_i32_0 : i32, i32
  }
  func.func @transform_4(%arg0: i32) -> (i32, i32) {
    %c0_i32 = arith.constant 0 : i32
    %c0_i32_0 = arith.constant 0 : i32
    %c0_i32_1 = arith.constant 0 : i32
    return %c0_i32, %c0_i32_0 : i32, i32
  }
  func.func @transform_5(%arg0: i32) -> (i32, i32) {
    %c0_i32 = arith.constant 0 : i32
    %c0_i32_0 = arith.constant 0 : i32
    %c0_i32_1 = arith.constant 0 : i32
    return %c0_i32, %c0_i32_0 : i32, i32
  }
  func.func @transform_6(%arg0: i32) -> (i32, i32) {
    %c0_i32 = arith.constant 0 : i32
    %c0_i32_0 = arith.constant 0 : i32
    %c0_i32_1 = arith.constant 0 : i32
    return %c0_i32, %c0_i32_0 : i32, i32
  }
  func.func @transform_7(%arg0: i32) -> (i32, i32) {
    %c0_i32 = arith.constant 0 : i32
    %c0_i32_0 = arith.constant 0 : i32
    %c0_i32_1 = arith.constant 0 : i32
    return %c0_i32, %c0_i32_0 : i32, i32
  }
  func.func @transform_8(%arg0: i32) -> (i32, i32) {
    %c0_i32 = arith.constant 0 : i32
    %c0_i32_0 = arith.constant 0 : i32
    %c0_i32_1 = arith.constant 0 : i32
    return %c0_i32, %c0_i32_0 : i32, i32
  }
  func.func @transform_9(%arg0: i32) -> (i32, i32, i32) {
    %c0_i32 = arith.constant 0 : i32
    %c0_i32_0 = arith.constant 0 : i32
    %c0_i32_1 = arith.constant 0 : i32
    return %c0_i32, %arg0, %c0_i32_0 : i32, i32, i32
  }
}

</mosaic_0001>

<bundles_post_ra>
// kernel: tpu_custom_call.1
= control target key start
LH: loop header
LB: loop body
LE: loop exit
PB: predicated region body
PF: predicated region fallthrough
CT: control target
= control target key end

     0   :  { %14 = vsyncpa [#allocation5], 0  ;;  %s7319_s0 = inlined_call_operand.hbm [shape: f32[8,8,128], index: 0, kind: input, shape index: {}]   ;;  %s7320_s1 = inlined_call_operand.hbm [shape: f32[128,512], index: 1, kind: input, shape index: {}]   ;;  %s7321_s2 = inlined_call_operand.hbm [shape: f32[128,512], index: 2, kind: input, shape index: {}]   ;;  %s7322_s3 = inlined_call_operand.hbm [shape: f32[1,512], index: 3, kind: input, shape index: {}]   ;;  %s7323_s4 = inlined_call_operand.hbm [shape: f32[128,512], index: 4, kind: input, shape index: {}]   ;;  %s7324_s5 = inlined_call_operand.hbm [shape: f32[128,512], index: 5, kind: input, shape index: {}]   ;;  %s7325_s6 = inlined_call_operand.vmem [shape: f32[1,512], index: 6, kind: input, shape index: {}]   ;;  %s7326_s7 = inlined_call_operand.hbm [shape: f32[128,128], index: 7, kind: input, shape index: {}]   ;;  %s7327_s8 = inlined_call_operand.vmem [shape: f32[1,128], index: 8, kind: input, shape index: {}]   ;;  %s7328_s9 = inlined_call_operand.hbm [shape: f32[7,8,128], index: 9, kind: output, shape index: {}]  }
   0x1   :  { %15 = vsyncpa [#allocation8], 0 }
   0x2   :  { %16 = vsyncpa [#allocation11], 0 }
   0x3   :  { %17 = vsyncpa [#allocation14], 0  ;;  %s36_s11 = sshll.u32 %s7320_s1, 4  ;;  %s37_s11 = int_to_ptr.hbm [resolvable:$true] %s36_s11 }
   0x4   :  { %18 = vsyncpa [#allocation6], 0  ;;  %s4803_s12 = smov [#allocation7]   ;;  %s63_s16 = sshll.u32 %s7322_s3, 4  ;;  %s64_s16 = int_to_ptr.hbm [resolvable:$true] %s63_s16 }
   0x5   :  { %s38_s13 = sshll.u32 %s4803_s12, 4  ;;  %s4804_s17 = smov 512   ;;  %s39_s13 = int_to_ptr.vmem [resolvable:$true] %s38_s13 }
   0x6   :  { %s4805_s18 = smov 32   ;;  %s4806_s19 = smov [#allocation10]  }
   0x7   :  { %44 = dma.hbm_to_vmem [thread:$0]  %s37_s11, 8192, %s39_s13, [#allocation8], %s4804_s17, %s4804_s17, %s4805_s18  }
   0x8   :  { %s65_s20 = sshll.u32 %s4806_s19, 4  ;;  %s86_s22 = sshll.u32 %s7324_s5, 4  ;;  %s66_s20 = int_to_ptr.vmem [resolvable:$true] %s65_s20  ;;  %s87_s22 = int_to_ptr.hbm [resolvable:$true] %s86_s22 }
   0x9   :  { %68 = dma.hbm_to_vmem [thread:$0]  %s64_s16, 64, %s66_s20, [#allocation11]  }
   0xa   :  { %s23_s3 = sshll.u32 %s7319_s0, 4  ;;  %s4807_s25 = smov [#allocation13]   ;;  %s24_s3 = int_to_ptr.hbm [resolvable:$true] %s23_s3 }
   0xb   :  { %s88_s26 = sshll.u32 %s4807_s25, 4  ;;  %s4808_s27 = smov [#allocation4]   ;;  %s89_s26 = int_to_ptr.vmem [resolvable:$true] %s88_s26 }
   0xc   :  { %94 = dma.hbm_to_vmem [thread:$0]  %s87_s22, 8192, %s89_s26, [#allocation14], %s4804_s17, %s4804_s17, %s4805_s18  }
   0xd   :  { %s25_s28 = sshll.u32 %s4808_s27, 4  ;;  %s4809_s29 = smov 128   ;;  %s26_s28 = int_to_ptr.vmem [resolvable:$true] %s25_s28 }
   0xe   :  { %s4810_s5 = smov 8   ;;  %s49_s0 = sshll.u32 %s7321_s2, 4  ;;  %s50_s0 = int_to_ptr.hbm [resolvable:$true] %s49_s0 }
   0xf   :  { %31 = dma.hbm_to_vmem [thread:$0]  %s24_s3, 1024, %s26_s28, [#allocation5], %s4809_s29, %s4809_s29, %s4810_s5  }
  0x10   :  { %s4811_s11 = smov [#allocation9]   ;;  %s73_s15 = sshll.u32 %s7323_s4, 4  ;;  %s74_s15 = int_to_ptr.hbm [resolvable:$true] %s73_s15 }
  0x11   :  { %s51_s12 = sshll.u32 %s4811_s11, 4  ;;  %s4812_s16 = smov [#allocation12]   ;;  %s52_s12 = int_to_ptr.vmem [resolvable:$true] %s51_s12 }
  0x12   :  { %57 = dma.hbm_to_vmem [thread:$0]  %s50_s0, 8192, %s52_s12, [#allocation8], %s4804_s17, %s4804_s17, %s4805_s18  }
  0x13   :  { %s75_s19 = sshll.u32 %s4812_s16, 4  ;;  %s101_s1 = sshll.u32 %s7326_s7, 4  ;;  %s76_s19 = int_to_ptr.vmem [resolvable:$true] %s75_s19  ;;  %s102_s1 = int_to_ptr.hbm [resolvable:$true] %s101_s1 }
  0x14   :  { %81 = dma.hbm_to_vmem [thread:$0]  %s74_s15, 8192, %s76_s19, [#allocation11], %s4804_s17, %s4804_s17, %s4805_s18  }
  0x15   :  { %s4813_s2 = smov [#allocation15]  }
  0x16   :  { %s103_s22 = sshll.u32 %s4813_s2, 4  ;;  %s104_s22 = int_to_ptr.vmem [resolvable:$true] %s103_s22 }
  0x17   :  { %109 = dma.hbm_to_vmem [thread:$0]  %s102_s1, 2048, %s104_s22, [#allocation14], %s4809_s29, %s4809_s29, %s4810_s5  }
  0x18   :  { %4793 = dma.done.wait [#allocation5], 1024  }
  0x19   :  { %4794 = vsyncadd [#allocation5], 4294966272 }
  0x1a   :  { %4795 = dma.done.wait [#allocation8], 16384  }
  0x1b   :  { %4796 = vsyncadd [#allocation8], 4294950912 }
  0x1c   :  { %4797 = dma.done.wait [#allocation11], 8256  }
  0x1d   :  { %4798 = vsyncadd [#allocation11], 4294959040 }
  0x1e   :  { %4799 = dma.done.wait [#allocation14], 10240  }
  0x1f   :  { %4800 = vsyncadd [#allocation14], 4294957056  ;;  %v208_v0 = vld [vmem:[#allocation7 + $0x1e0] sm:$0xff]  ;;  %v211_v1 = vld [vmem:[#allocation7 + $0x1f8] sm:$0xff]  ;;  %v7329_v57 = vmov 0.0   ;;  %s4251_s3 = sshll.u32 %s7328_s9, 4  ;;  %s4252_s3 = int_to_ptr.hbm [resolvable:$true] %s4251_s3 }
  0x20   :  { %v204_v2 = vld [vmem:[#allocation7 + $0x1c0] sm:$0xff]  ;;  %222 = vmatpush.msra.mxu1 %v208_v0  ;;  %4315 = vmatpush.msra.mxu2 %v208_v0  ;;  %v207_v3 = vld [vmem:[#allocation7 + $0x1d8] sm:$0xff]  ;;  %v209_v49 = vld [vmem:[#allocation7 + $0x1e8] sm:$0xff] }
  0x21   :  { %v4905_v4 = vld [vmem:[#allocation9 + $0x1e0] sm:$0xff]  ;;  %345 = vmatpush.msra.mxu3 %v211_v1  ;;  %v203_v7 = vld [vmem:[#allocation7 + $0x1b8] sm:$0xff]  ;;  %v210_v50 = vld [vmem:[#allocation7 + $0x1f0] sm:$0xff] }
  0x22   :  { %486 = vmatpush.msra.mxu0 %v4905_v4  ;;  %v200_v5 = vld [vmem:[#allocation7 + $0x1a0] sm:$0xff]  ;;  %223 = vmatpush.msra.mxu1 %v204_v2  ;;  %v199_v10 = vld [vmem:[#allocation7 + $0x198] sm:$0xff]  ;;  %v205_v52 = vld [vmem:[#allocation7 + $0x1c8] sm:$0xff] }
  0x23   :  { %v4908_v6 = vld [vmem:[#allocation9 + $0x1c0] sm:$0xff]  ;;  %4316 = vmatpush.msra.mxu2 %v204_v2  ;;  %346 = vmatpush.msra.mxu3 %v207_v3  ;;  %v195_v13 = vld [vmem:[#allocation7 + $0x178] sm:$0xff]  ;;  %v206_v53 = vld [vmem:[#allocation7 + $0x1d0] sm:$0xff] }
  0x24   :  { %v4910_v8 = vld [vmem:[#allocation9 + $0x1a0] sm:$0xff]  ;;  %487 = vmatpush.msra.mxu0 %v4908_v6  ;;  %224 = vmatpush.msra.mxu1 %v200_v5  ;;  %v191_v16 = vld [vmem:[#allocation7 + $0x158] sm:$0xff]  ;;  %v201_v54 = vld [vmem:[#allocation7 + $0x1a8] sm:$0xff] }
  0x25   :  { %v196_v9 = vld [vmem:[#allocation7 + $0x180] sm:$0xff]  ;;  %4317 = vmatpush.msra.mxu2 %v200_v5  ;;  %347 = vmatpush.msra.mxu3 %v203_v7  ;;  %v187_v19 = vld [vmem:[#allocation7 + $0x138] sm:$0xff]  ;;  %v202_v56 = vld [vmem:[#allocation7 + $0x1b0] sm:$0xff] }
  0x26   :  { %v4913_v11 = vld [vmem:[#allocation9 + $0x180] sm:$0xff]  ;;  %488 = vmatpush.msra.mxu0 %v4910_v8  ;;  %225 = vmatpush.msra.mxu1 %v196_v9  ;;  %v183_v22 = vld [vmem:[#allocation7 + $0x118] sm:$0xff]  ;;  %v197_v58 = vld [vmem:[#allocation7 + $0x188] sm:$0xff] }
  0x27   :  { %v192_v12 = vld [vmem:[#allocation7 + $0x160] sm:$0xff]  ;;  %4318 = vmatpush.msra.mxu2 %v196_v9  ;;  %348 = vmatpush.msra.mxu3 %v199_v10  ;;  %v179_v25 = vld [vmem:[#allocation7 + $0xf8] sm:$0xff]  ;;  %v198_v60 = vld [vmem:[#allocation7 + $0x190] sm:$0xff] }
  0x28   :  { %v4916_v14 = vld [vmem:[#allocation9 + $0x160] sm:$0xff]  ;;  %489 = vmatpush.msra.mxu0 %v4913_v11  ;;  %226 = vmatpush.msra.mxu1 %v192_v12  ;;  %v175_v28 = vld [vmem:[#allocation7 + $0xd8] sm:$0xff]  ;;  %v4965_v61 = vld [vmem:[#allocation4 + $0x8] sm:$0xff] }
  0x29   :  { %v188_v15 = vld [vmem:[#allocation7 + $0x140] sm:$0xff]  ;;  %4319 = vmatpush.msra.mxu2 %v192_v12  ;;  %349 = vmatpush.msra.mxu3 %v195_v13  ;;  %v171_v31 = vld [vmem:[#allocation7 + $0xb8] sm:$0xff]  ;;  %v4968_v62 = vld [vmem:[#allocation4 + $0x28] sm:$0xff] }
  0x2a   :  { %v4919_v17 = vld [vmem:[#allocation9 + $0x140] sm:$0xff]  ;;  %490 = vmatpush.msra.mxu0 %v4916_v14  ;;  %227 = vmatpush.msra.mxu1 %v188_v15  ;;  %v167_v34 = vld [vmem:[#allocation7 + $0x98] sm:$0xff]  ;;  %v193_v63 = vld [vmem:[#allocation7 + $0x168] sm:$0xff] }
  0x2b   :  { %v184_v18 = vld [vmem:[#allocation7 + $0x120] sm:$0xff]  ;;  %4320 = vmatpush.msra.mxu2 %v188_v15  ;;  %350 = vmatpush.msra.mxu3 %v191_v16  ;;  %v163_v37 = vld [vmem:[#allocation7 + $0x78] sm:$0xff]  ;;  %v194_v0 = vld [vmem:[#allocation7 + $0x170] sm:$0xff] }
  0x2c   :  { %v4922_v20 = vld [vmem:[#allocation9 + $0x120] sm:$0xff]  ;;  %491 = vmatpush.msra.mxu0 %v4919_v17  ;;  %228 = vmatpush.msra.mxu1 %v184_v18  ;;  %v159_v40 = vld [vmem:[#allocation7 + $0x58] sm:$0xff]  ;;  %v189_v1 = vld [vmem:[#allocation7 + $0x148] sm:$0xff] }
  0x2d   :  { %v180_v21 = vld [vmem:[#allocation7 + $0x100] sm:$0xff]  ;;  %4321 = vmatpush.msra.mxu2 %v184_v18  ;;  %351 = vmatpush.msra.mxu3 %v187_v19  ;;  %v155_v43 = vld [vmem:[#allocation7 + $0x38] sm:$0xff]  ;;  %v190_v3 = vld [vmem:[#allocation7 + $0x150] sm:$0xff] }
  0x2e   :  { %v4925_v23 = vld [vmem:[#allocation9 + $0x100] sm:$0xff]  ;;  %492 = vmatpush.msra.mxu0 %v4922_v20  ;;  %229 = vmatpush.msra.mxu1 %v180_v21  ;;  %v151_v46 = vld [vmem:[#allocation7 + $0x18] sm:$0xff]  ;;  %v185_v5 = vld [vmem:[#allocation7 + $0x128] sm:$0xff] }
  0x2f   :  { %v176_v24 = vld [vmem:[#allocation7 + $0xe0] sm:$0xff]  ;;  %4322 = vmatpush.msra.mxu2 %v180_v21  ;;  %352 = vmatpush.msra.mxu3 %v183_v22  ;;  %v4959_v55 = vld [vmem:[#allocation9 + $0x1f8] sm:$0xff]  ;;  %v181_v9 = vld [vmem:[#allocation7 + $0x108] sm:$0xff] }
  0x30   :  { %v4928_v26 = vld [vmem:[#allocation9 + $0xe0] sm:$0xff]  ;;  %493 = vmatpush.msra.mxu0 %v4925_v23  ;;  %230 = vmatpush.msra.mxu1 %v176_v24  ;;  %v4963_v59 = vld [vmem:[#allocation9 + $0x1d8] sm:$0xff]  ;;  %v182_v12 = vld [vmem:[#allocation7 + $0x110] sm:$0xff] }
  0x31   :  { %v172_v27 = vld [vmem:[#allocation7 + $0xc0] sm:$0xff]  ;;  %4323 = vmatpush.msra.mxu2 %v176_v24  ;;  %353 = vmatpush.msra.mxu3 %v179_v25  ;;  %v4973_v2 = vld [vmem:[#allocation9 + $0x1b8] sm:$0xff]  ;;  %v4983_v13 = vld [vmem:[#allocation4 + $0x10] sm:$0xff] }
  0x32   :  { %v4931_v29 = vld [vmem:[#allocation9 + $0xc0] sm:$0xff]  ;;  %494 = vmatpush.msra.mxu0 %v4928_v26  ;;  %231 = vmatpush.msra.mxu1 %v172_v27  ;;  %v4977_v7 = vld [vmem:[#allocation9 + $0x198] sm:$0xff]  ;;  %v4986_v15 = vld [vmem:[#allocation4 + $0x30] sm:$0xff] }
  0x33   :  { %v168_v30 = vld [vmem:[#allocation7 + $0xa0] sm:$0xff]  ;;  %4324 = vmatpush.msra.mxu2 %v172_v27  ;;  %354 = vmatpush.msra.mxu3 %v175_v28  ;;  %v4980_v10 = vld [vmem:[#allocation9 + $0x178] sm:$0xff]  ;;  %v177_v16 = vld [vmem:[#allocation7 + $0xe8] sm:$0xff] }
  0x34   :  { %v4934_v32 = vld [vmem:[#allocation9 + $0xa0] sm:$0xff]  ;;  %495 = vmatpush.msra.mxu0 %v4931_v29  ;;  %232 = vmatpush.msra.mxu1 %v168_v30  ;;  %v178_v18 = vld [vmem:[#allocation7 + $0xf0] sm:$0xff]  ;;  %v4991_v19 = vld [vmem:[#allocation9 + $0x158] sm:$0xff] }
  0x35   :  { %v164_v33 = vld [vmem:[#allocation7 + $0x80] sm:$0xff]  ;;  %4325 = vmatpush.msra.mxu2 %v168_v30  ;;  %355 = vmatpush.msra.mxu3 %v171_v31  ;;  %v174_v21 = vld [vmem:[#allocation7 + $0xd0] sm:$0xff]  ;;  %v169_v22 = vld [vmem:[#allocation7 + $0xa8] sm:$0xff] }
  0x36   :  { %v4937_v35 = vld [vmem:[#allocation9 + $0x80] sm:$0xff]  ;;  %496 = vmatpush.msra.mxu0 %v4934_v32  ;;  %233 = vmatpush.msra.mxu1 %v164_v33  ;;  %v4995_v24 = vld [vmem:[#allocation9 + $0x138] sm:$0xff]  ;;  %v165_v25 = vld [vmem:[#allocation7 + $0x88] sm:$0xff] }
  0x37   :  { %v160_v36 = vld [vmem:[#allocation7 + $0x60] sm:$0xff]  ;;  %4326 = vmatpush.msra.mxu2 %v164_v33  ;;  %356 = vmatpush.msra.mxu3 %v167_v34  ;;  %v4998_v27 = vld [vmem:[#allocation9 + $0x118] sm:$0xff]  ;;  %v166_v28 = vld [vmem:[#allocation7 + $0x90] sm:$0xff] }
  0x38   :  { %v4940_v38 = vld [vmem:[#allocation9 + $0x60] sm:$0xff]  ;;  %497 = vmatpush.msra.mxu0 %v4937_v35  ;;  %234 = vmatpush.msra.mxu1 %v160_v36  ;;  %v5001_v30 = vld [vmem:[#allocation4 + $0x18] sm:$0xff]  ;;  %v161_v33 = vld [vmem:[#allocation7 + $0x68] sm:$0xff] }
  0x39   :  { %v156_v39 = vld [vmem:[#allocation7 + $0x40] sm:$0xff]  ;;  %4327 = vmatpush.msra.mxu2 %v160_v36  ;;  %357 = vmatpush.msra.mxu3 %v163_v37  ;;  %v5004_v31 = vld [vmem:[#allocation4 + $0x38] sm:$0xff]  ;;  %v162_v34 = vld [vmem:[#allocation7 + $0x70] sm:$0xff] }
  0x3a   :  { %v4943_v41 = vld [vmem:[#allocation9 + $0x40] sm:$0xff]  ;;  %498 = vmatpush.msra.mxu0 %v4940_v38  ;;  %235 = vmatpush.msra.mxu1 %v156_v39  ;;  %v5009_v36 = vld [vmem:[#allocation9 + $0xf8] sm:$0xff]  ;;  %v158_v37 = vld [vmem:[#allocation7 + $0x50] sm:$0xff] }
  0x3b   :  { %v152_v42 = vld [vmem:[#allocation7 + $0x20] sm:$0xff]  ;;  %4328 = vmatpush.msra.mxu2 %v156_v39  ;;  %358 = vmatpush.msra.mxu3 %v159_v40  ;;  %v153_v39 = vld [vmem:[#allocation7 + $0x28] sm:$0xff]  ;;  %v5013_v40 = vld [vmem:[#allocation9 + $0xd8] sm:$0xff] }
  0x3c   :  { %v4946_v44 = vld [vmem:[#allocation9 + $0x20] sm:$0xff]  ;;  %499 = vmatpush.msra.mxu0 %v4943_v41  ;;  %236 = vmatpush.msra.mxu1 %v152_v42 }
  0x3d   :  { %v148_v45 = vld [vmem:[#allocation7] sm:$0xff]  ;;  %4329 = vmatpush.msra.mxu2 %v152_v42  ;;  %359 = vmatpush.msra.mxu3 %v155_v43  ;;  %v149_v42 = vld [vmem:[#allocation7 + $0x8] sm:$0xff]  ;;  %v5016_v43 = vld [vmem:[#allocation9 + $0xb8] sm:$0xff] }
  0x3e   :  { %v4949_v47 = vld [vmem:[#allocation4] sm:$0xff]  ;;  %500 = vmatpush.msra.mxu0 %v4946_v44  ;;  %237 = vmatpush.msra.mxu1 %v148_v45 }
  0x3f   :  { %v4952_v48 = vld [vmem:[#allocation4 + $0x20] sm:$0xff]  ;;  %4330 = vmatpush.msra.mxu2 %v148_v45  ;;  %360 = vmatpush.msra.mxu3 %v151_v46  ;;  %v150_v45 = vld [vmem:[#allocation7 + $0x10] sm:$0xff]  ;;  %v5020_v46 = vld [vmem:[#allocation9 + $0x1e8] sm:$0xff] }
  0x40   :  { %238 = vmatmul.f32.vlgmr.msra.gmra.mxu1 %v4949_v47  ;;  %v4955_v51 = vld [vmem:[#allocation9] sm:$0xff]  ;;  %250 = vmatmul.f32.vlgmr.msra.gmra.mxu2 %v4952_v48 }
  0x41   :  { %263 = vmatpush.msrb.mxu1 %v209_v49  ;;  %361 = vmatmul.f32.vlgmr.msra.gmra.mxu3 %v4949_v47  ;;  %v5023_v49 = vld [vmem:[#allocation9 + $0x1f0] sm:$0xff] }
  0x42   :  { %304 = vmatpush.msrb.mxu2 %v210_v50  ;;  %501 = vmatpush.msra.mxu0 %v4955_v51  ;;  %v5027_v50 = vld [vmem:[#allocation9 + $0x1c8] sm:$0xff] }
  0x43   :  { %264 = vmatpush.msrb.mxu1 %v205_v52  ;;  %502 = vmatmul.f32.vlgmr.msra.gmra.mxu0 %v7329_v57  ;;  %v5033_v52 = vld [vmem:[#allocation9 + $0x1d0] sm:$0xff] }
  0x44   :  { %305 = vmatpush.msrb.mxu2 %v206_v53  ;;  %546 = vmatpush.msrb.mxu3 %v4959_v55  ;;  %v5039_v53 = vld [vmem:[#allocation9 + $0x78] sm:$0xff] }
  0x45   :  { %265 = vmatpush.msrb.mxu1 %v201_v54  ;;  %703 = vmatpush.msrb.mxu0 %v4905_v4  ;;  %v186_v4 = vld [vmem:[#allocation7 + $0x130] sm:$0xff] }
  0x46   :  { %306 = vmatpush.msrb.mxu2 %v202_v56  ;;  %547 = vmatpush.msrb.mxu3 %v4963_v59  ;;  %v5042_v54 = vld [vmem:[#allocation9 + $0x1b0] sm:$0xff]  ;;  %v5045_v56 = vld [vmem:[#allocation9 + $0x188] sm:$0xff] }
  0x47   :  { %266 = vmatpush.msrb.mxu1 %v197_v58  ;;  %704 = vmatpush.msrb.mxu0 %v4908_v6  ;;  %v173_v6 = vld [vmem:[#allocation7 + $0xc8] sm:$0xff]  ;;  %v5053_v58 = vld [vmem:[#allocation9 + $0x190] sm:$0xff] }
  0x48   :  { %307 = vmatpush.msrb.mxu2 %v198_v60  ;;  %241 = vmatmul.f32.gmra.mxu1 %v4965_v61  ;;  %v5055_v60 = vld [vmem:[#allocation9 + $0x168] sm:$0xff] }
  0x49   :  { %253 = vmatmul.f32.gmra.mxu2 %v4968_v62  ;;  %267 = vmatpush.msrb.mxu1 %v193_v63  ;;  %v5061_v63 = vld [vmem:[#allocation9 + $0x170] sm:$0xff] }
  0x4a   :  { %364 = vmatmul.f32.gmra.mxu3 %v4965_v61  ;;  %308 = vmatpush.msrb.mxu2 %v194_v0  ;;  %v5067_v0 = vld [vmem:[#allocation9 + $0x38] sm:$0xff] }
  0x4b   :  { %268 = vmatpush.msrb.mxu1 %v189_v1  ;;  %548 = vmatpush.msrb.mxu3 %v4973_v2  ;;  %v5071_v1 = vld [vmem:[#allocation9 + $0x150] sm:$0xff] }
  0x4c   :  { %309 = vmatpush.msrb.mxu2 %v190_v3  ;;  %705 = vmatpush.msrb.mxu0 %v4910_v8  ;;  %v170_v8 = vld [vmem:[#allocation7 + $0xb0] sm:$0xff]  ;;  %v5077_v3 = vld [vmem:[#allocation9 + $0x18] sm:$0xff] }
  0x4d   :  { %269 = vmatpush.msrb.mxu1 %v185_v5  ;;  %549 = vmatpush.msrb.mxu3 %v4977_v7  ;;  %v5081_v5 = vld [vmem:[#allocation9 + $0x130] sm:$0xff] }
  0x4e   :  { %310 = vmatpush.msrb.mxu2 %v186_v4  ;;  %706 = vmatpush.msrb.mxu0 %v4913_v11  ;;  %v157_v11 = vld [vmem:[#allocation7 + $0x48] sm:$0xff] }
  0x4f   :  { %270 = vmatpush.msrb.mxu1 %v181_v9  ;;  %550 = vmatpush.msrb.mxu3 %v4980_v10  ;;  %v5083_v4 = vld [vmem:[#allocation9 + $0x108] sm:$0xff] }
  0x50   :  { %311 = vmatpush.msrb.mxu2 %v182_v12  ;;  %244 = vmatmul.f32.gmra.mxu1 %v4983_v13  ;;  %v5091_v9 = vld [vmem:[#allocation9 + $0xe8] sm:$0xff]  ;;  %v5096_v12 = vld [vmem:[#allocation9 + $0xf0] sm:$0xff] }
  0x51   :  { %256 = vmatmul.f32.gmra.mxu2 %v4986_v15  ;;  %271 = vmatpush.msrb.mxu1 %v177_v16  ;;  %v5105_v16 = vld [vmem:[#allocation9 + $0xd0] sm:$0xff] }
  0x52   :  { %367 = vmatmul.f32.gmra.mxu3 %v4983_v13  ;;  %312 = vmatpush.msrb.mxu2 %v178_v18  ;;  %v5108_v18 = vld [vmem:[#allocation9 + $0xa8] sm:$0xff] }
  0x53   :  { %272 = vmatpush.msrb.mxu1 %v173_v6  ;;  %551 = vmatpush.msrb.mxu3 %v4991_v19  ;;  %v5115_v6 = vld [vmem:[#allocation9 + $0x88] sm:$0xff] }
  0x54   :  { %313 = vmatpush.msrb.mxu2 %v174_v21  ;;  %707 = vmatpush.msrb.mxu0 %v4916_v14  ;;  %v154_v14 = vld [vmem:[#allocation7 + $0x30] sm:$0xff]  ;;  %v5123_v21 = vld [vmem:[#allocation9 + $0x68] sm:$0xff] }
  0x55   :  { %273 = vmatpush.msrb.mxu1 %v169_v22  ;;  %552 = vmatpush.msrb.mxu3 %v4995_v24  ;;  %v5130_v22 = vld [vmem:[#allocation9 + $0x48] sm:$0xff] }
  0x56   :  { %314 = vmatpush.msrb.mxu2 %v170_v8  ;;  %708 = vmatpush.msrb.mxu0 %v4919_v17  ;;  %v5029_v17 = vld [vmem:[#allocation9 + $0x98] sm:$0xff]  ;;  %v5137_v8 = vld [vmem:[#allocation9 + $0x50] sm:$0xff] }
  0x57   :  { %274 = vmatpush.msrb.mxu1 %v165_v25  ;;  %553 = vmatpush.msrb.mxu3 %v4998_v27  ;;  %v5144_v25 = vld [vmem:[#allocation9 + $0x30] sm:$0xff] }
  0x58   :  { %315 = vmatpush.msrb.mxu2 %v166_v28  ;;  %247 = vmatmul.f32.gmra.mxu1 %v5001_v30  ;;  %v5148_v28 = vld [vmem:[#allocation9 + $0x8] sm:$0xff] }
  0x59   :  { %259 = vmatmul.f32.gmra.mxu2 %v5004_v31  ;;  %275 = vmatpush.msrb.mxu1 %v161_v33 }
  0x5a   :  { %370 = vmatmul.f32.gmra.mxu3 %v5001_v30  ;;  %316 = vmatpush.msrb.mxu2 %v162_v34 }
  0x5b   :  { %276 = vmatpush.msrb.mxu1 %v157_v11  ;;  %554 = vmatpush.msrb.mxu3 %v5009_v36 }
  0x5c   :  { %317 = vmatpush.msrb.mxu2 %v158_v37  ;;  %709 = vmatpush.msrb.mxu0 %v4922_v20  ;;  %v5036_v20 = vld [vmem:[#allocation9 + $0x1a8] sm:$0xff] }
  0x5d   :  { %277 = vmatpush.msrb.mxu1 %v153_v39  ;;  %555 = vmatpush.msrb.mxu3 %v5013_v40 }
  0x5e   :  { %318 = vmatpush.msrb.mxu2 %v154_v14  ;;  %710 = vmatpush.msrb.mxu0 %v4925_v23  ;;  %v5064_v23 = vld [vmem:[#allocation9 + $0x148] sm:$0xff] }
  0x5f   :  { %278 = vmatpush.msrb.mxu1 %v149_v42  ;;  %556 = vmatpush.msrb.mxu3 %v5016_v43 }
  0x60   :  { %319 = vmatpush.msrb.mxu2 %v150_v45  ;;  %279 = vmatmul.f32.vlgmr.msrb.gmra.mxu1 %v4949_v47 }
  0x61   :  { %320 = vmatmul.f32.vlgmr.msrb.gmra.mxu2 %v4949_v47  ;;  %506 = vmatpush.msra.mxu1 %v5020_v46  ;;  %v5048_v47 = vld [vmem:[#allocation9 + $0x58] sm:$0xff] }
  0x62   :  { %373 = vmatmul.f32.gmra.mxu3 %v4952_v48  ;;  %526 = vmatpush.msra.mxu2 %v5023_v49 }
  0x63   :  { %507 = vmatpush.msra.mxu1 %v5027_v50  ;;  %557 = vmatpush.msrb.mxu3 %v5029_v17 }
  0x64   :  { %527 = vmatpush.msra.mxu2 %v5033_v52  ;;  %711 = vmatpush.msrb.mxu0 %v4928_v26  ;;  %v5074_v26 = vld [vmem:[#allocation9 + $0x128] sm:$0xff] }
  0x65   :  { %508 = vmatpush.msra.mxu1 %v5036_v20  ;;  %558 = vmatpush.msrb.mxu3 %v5039_v53 }
  0x66   :  { %528 = vmatpush.msra.mxu2 %v5042_v54  ;;  %712 = vmatpush.msrb.mxu0 %v4931_v29  ;;  %v5100_v29 = vld [vmem:[#allocation9 + $0xc8] sm:$0xff] }
  0x67   :  { %509 = vmatpush.msra.mxu1 %v5045_v56  ;;  %559 = vmatpush.msrb.mxu3 %v5048_v47 }
  0x68   :  { %282 = vmatmul.f32.gmra.mxu1 %v4965_v61  ;;  %529 = vmatpush.msra.mxu2 %v5053_v58 }
  0x69   :  { %323 = vmatmul.f32.gmra.mxu2 %v4965_v61  ;;  %510 = vmatpush.msra.mxu1 %v5055_v60  ;;  %v5089_v61 = vld [vmem:[#allocation9 + $0x110] sm:$0xff] }
  0x6a   :  { %376 = vmatmul.f32.gmra.mxu3 %v4968_v62  ;;  %530 = vmatpush.msra.mxu2 %v5061_v63 }
  0x6b   :  { %511 = vmatpush.msra.mxu1 %v5064_v23  ;;  %560 = vmatpush.msrb.mxu3 %v5067_v0 }
  0x6c   :  { %531 = vmatpush.msra.mxu2 %v5071_v1  ;;  %713 = vmatpush.msrb.mxu0 %v4934_v32  ;;  %v5112_v32 = vld [vmem:[#allocation9 + $0xb0] sm:$0xff] }
  0x6d   :  { %512 = vmatpush.msra.mxu1 %v5074_v26  ;;  %561 = vmatpush.msrb.mxu3 %v5077_v3 }
  0x6e   :  { %532 = vmatpush.msra.mxu2 %v5081_v5  ;;  %714 = vmatpush.msrb.mxu0 %v4937_v35  ;;  %v5135_v35 = vld [vmem:[#allocation9 + $0x70] sm:$0xff] }
  0x6f   :  { %763 = vmatpush.msra.mxu3 %v4959_v55  ;;  %513 = vmatpush.msra.mxu1 %v5083_v4 }
  0x70   :  { %285 = vmatmul.f32.gmra.mxu1 %v4983_v13  ;;  %533 = vmatpush.msra.mxu2 %v5089_v61 }
  0x71   :  { %326 = vmatmul.f32.gmra.mxu2 %v4983_v13  ;;  %514 = vmatpush.msra.mxu1 %v5091_v9  ;;  %v5120_v13 = vld [vmem:[#allocation9 + $0x90] sm:$0xff] }
  0x72   :  { %379 = vmatmul.f32.gmra.mxu3 %v4986_v15  ;;  %534 = vmatpush.msra.mxu2 %v5096_v12 }
  0x73   :  { %515 = vmatpush.msra.mxu1 %v5100_v29  ;;  %764 = vmatpush.msra.mxu3 %v4963_v59 }
  0x74   :  { %535 = vmatpush.msra.mxu2 %v5105_v16  ;;  %715 = vmatpush.msrb.mxu0 %v4940_v38  ;;  %v5140_v38 = vld [vmem:[#allocation9 + $0x28] sm:$0xff] }
  0x75   :  { %516 = vmatpush.msra.mxu1 %v5108_v18  ;;  %765 = vmatpush.msra.mxu3 %v4973_v2 }
  0x76   :  { %536 = vmatpush.msra.mxu2 %v5112_v32  ;;  %716 = vmatpush.msrb.mxu0 %v4943_v41 }
  0x77   :  { %517 = vmatpush.msra.mxu1 %v5115_v6  ;;  %766 = vmatpush.msra.mxu3 %v4977_v7 }
  0x78   :  { %288 = vmatmul.f32.gmra.mxu1 %v5001_v30  ;;  %537 = vmatpush.msra.mxu2 %v5120_v13 }
  0x79   :  { %329 = vmatmul.f32.gmra.mxu2 %v5001_v30  ;;  %518 = vmatpush.msra.mxu1 %v5123_v21  ;;  %v5152_v30 = vld [vmem:[#allocation9 + $0x10] sm:$0xff] }
  0x7a   :  { %382 = vmatmul.f32.gmra.mxu3 %v5004_v31  ;;  %538 = vmatpush.msra.mxu2 %v5135_v35 }
  0x7b   :  { %519 = vmatpush.msra.mxu1 %v5130_v22  ;;  %767 = vmatpush.msra.mxu3 %v4980_v10 }
  0x7c   :  { %539 = vmatpush.msra.mxu2 %v5137_v8  ;;  %717 = vmatpush.msrb.mxu0 %v4946_v44 }
  0x7d   :  { %520 = vmatpush.msra.mxu1 %v5140_v38  ;;  %768 = vmatpush.msra.mxu3 %v4991_v19 }
  0x7e   :  { %540 = vmatpush.msra.mxu2 %v5144_v25  ;;  %718 = vmatpush.msrb.mxu0 %v4955_v51 }
  0x7f   :  { %521 = vmatpush.msra.mxu1 %v5148_v28  ;;  %769 = vmatpush.msra.mxu3 %v4995_v24 }
  0x80   :  { %291 = vmatmul.f32.gmra.mxu1 %v4952_v48  ;;  %541 = vmatpush.msra.mxu2 %v5152_v30 }
  0x81   :  { %332 = vmatmul.f32.gmra.mxu2 %v4952_v48  ;;  %723 = vmatpush.msrb.mxu1 %v5020_v46 }
  0x82   :  { %562 = vmatmul.f32.vlgmr.msrb.gmra.mxu3 %v7329_v57  ;;  %743 = vmatpush.msrb.mxu2 %v5023_v49 }
  0x83   :  { %724 = vmatpush.msrb.mxu1 %v5027_v50  ;;  %770 = vmatpush.msra.mxu3 %v4998_v27 }
  0x84   :  { %744 = vmatpush.msrb.mxu2 %v5033_v52 }
  0x85   :  { %725 = vmatpush.msrb.mxu1 %v5036_v20  ;;  %771 = vmatpush.msra.mxu3 %v5009_v36 }
  0x86   :  { %745 = vmatpush.msrb.mxu2 %v5042_v54 }
  0x87   :  { %726 = vmatpush.msrb.mxu1 %v5045_v56  ;;  %772 = vmatpush.msra.mxu3 %v5013_v40 }
  0x88   :  { %294 = vmatmul.f32.gmra.mxu1 %v4968_v62  ;;  %746 = vmatpush.msrb.mxu2 %v5053_v58 }
  0x89   :  { %335 = vmatmul.f32.gmra.mxu2 %v4968_v62  ;;  %727 = vmatpush.msrb.mxu1 %v5055_v60 }
  0x8a   :  { %747 = vmatpush.msrb.mxu2 %v5061_v63  ;;  %773 = vmatpush.msra.mxu3 %v5016_v43 }
  0x8b   :  { %728 = vmatpush.msrb.mxu1 %v5064_v23 }
  0x8c   :  { %748 = vmatpush.msrb.mxu2 %v5071_v1  ;;  %774 = vmatpush.msra.mxu3 %v5029_v17 }
  0x8d   :  { %729 = vmatpush.msrb.mxu1 %v5074_v26 }
  0x8e   :  { %749 = vmatpush.msrb.mxu2 %v5081_v5  ;;  %775 = vmatpush.msra.mxu3 %v5039_v53 }
  0x8f   :  { %730 = vmatpush.msrb.mxu1 %v5083_v4 }
  0x90   :  { %297 = vmatmul.f32.gmra.mxu1 %v4986_v15  ;;  %750 = vmatpush.msrb.mxu2 %v5089_v61 }
  0x91   :  { %338 = vmatmul.f32.gmra.mxu2 %v4986_v15  ;;  %731 = vmatpush.msrb.mxu1 %v5091_v9 }
  0x92   :  { %751 = vmatpush.msrb.mxu2 %v5096_v12  ;;  %776 = vmatpush.msra.mxu3 %v5048_v47 }
  0x93   :  { %732 = vmatpush.msrb.mxu1 %v5100_v29 }
  0x94   :  { %752 = vmatpush.msrb.mxu2 %v5105_v16  ;;  %777 = vmatpush.msra.mxu3 %v5067_v0 }
  0x95   :  { %733 = vmatpush.msrb.mxu1 %v5108_v18 }
  0x96   :  { %753 = vmatpush.msrb.mxu2 %v5112_v32  ;;  %778 = vmatpush.msra.mxu3 %v5077_v3 }
  0x97   :  { %734 = vmatpush.msrb.mxu1 %v5115_v6 }
  0x98   :  { %981 = vmatpush.msrb.mxu3 %v4959_v55  ;;  %300 = vmatmul.f32.gmra.mxu1 %v5004_v31 }
  0x99   :  { %754 = vmatpush.msrb.mxu2 %v5120_v13  ;;  %735 = vmatpush.msrb.mxu1 %v5123_v21 }
  0x9a   :  { %341 = vmatmul.f32.gmra.mxu2 %v5004_v31  ;;  %982 = vmatpush.msrb.mxu3 %v4963_v59 }
  0x9b   :  { %755 = vmatpush.msrb.mxu2 %v5135_v35  ;;  %736 = vmatpush.msrb.mxu1 %v5130_v22 }
  0x9c   :  { %983 = vmatpush.msrb.mxu3 %v4973_v2 }
  0x9d   :  { %756 = vmatpush.msrb.mxu2 %v5137_v8  ;;  %737 = vmatpush.msrb.mxu1 %v5140_v38 }
  0x9e   :  { %984 = vmatpush.msrb.mxu3 %v4977_v7 }
  0x9f   :  { %757 = vmatpush.msrb.mxu2 %v5144_v25  ;;  %738 = vmatpush.msrb.mxu1 %v5148_v28 }
  0xa0   :  { %522 = vmatmul.f32.vlgmr.msra.gmra.mxu1 %v7329_v57  ;;  %985 = vmatpush.msrb.mxu3 %v4980_v10 }
  0xa1   :  { %758 = vmatpush.msrb.mxu2 %v5152_v30  ;;  %941 = vmatpush.msra.mxu1 %v5020_v46 }
  0xa2   :  { %542 = vmatmul.f32.vlgmr.msra.gmra.mxu2 %v7329_v57  ;;  %986 = vmatpush.msrb.mxu3 %v4991_v19 }
  0xa3   :  { %961 = vmatpush.msra.mxu2 %v5023_v49  ;;  %942 = vmatpush.msra.mxu1 %v5027_v50 }
  0xa4   :  { %987 = vmatpush.msrb.mxu3 %v4995_v24 }
  0xa5   :  { %962 = vmatpush.msra.mxu2 %v5033_v52  ;;  %943 = vmatpush.msra.mxu1 %v5036_v20 }
  0xa6   :  { %988 = vmatpush.msrb.mxu3 %v4998_v27 }
  0xa7   :  { %963 = vmatpush.msra.mxu2 %v5042_v54  ;;  %944 = vmatpush.msra.mxu1 %v5045_v56 }
  0xa8   :  { %989 = vmatpush.msrb.mxu3 %v5009_v36 }
  0xa9   :  { %964 = vmatpush.msra.mxu2 %v5053_v58  ;;  %945 = vmatpush.msra.mxu1 %v5055_v60 }
  0xaa   :  { %990 = vmatpush.msrb.mxu3 %v5013_v40 }
  0xab   :  { %965 = vmatpush.msra.mxu2 %v5061_v63  ;;  %946 = vmatpush.msra.mxu1 %v5064_v23 }
  0xac   :  { %991 = vmatpush.msrb.mxu3 %v5016_v43  ;;  %v212_v43 = vld [vmem:[#allocation10] sm:$0xf] }
  0xad   :  { %966 = vmatpush.msra.mxu2 %v5071_v1  ;;  %947 = vmatpush.msra.mxu1 %v5074_v26  ;;  %v5301_v45 = vperm.slane %v212_v43, 0  ;;  %v5319_v1 = vperm.slane %v212_v43, 1 }
  0xae   :  { %992 = vmatpush.msrb.mxu3 %v5029_v17 }
  0xaf   :  { %967 = vmatpush.msra.mxu2 %v5081_v5  ;;  %948 = vmatpush.msra.mxu1 %v5083_v4  ;;  %7433 = vst [vmem:[#allocation34_spill] sm:$0xff] %v5301_v45 }
  0xb0   :  { %993 = vmatpush.msrb.mxu3 %v5039_v53  ;;  %7441 = vst [vmem:[#allocation42_spill] sm:$0xff] %v5319_v1 }
  0xb1   :  { %968 = vmatpush.msra.mxu2 %v5089_v61  ;;  %949 = vmatpush.msra.mxu1 %v5091_v9 }
  0xb2   :  { %994 = vmatpush.msrb.mxu3 %v5048_v47  ;;  %v5314_v47 = vperm.slane %v212_v43, 3 }
  0xb3   :  { %969 = vmatpush.msra.mxu2 %v5096_v12  ;;  %950 = vmatpush.msra.mxu1 %v5100_v29 }
  0xb4   :  { %995 = vmatpush.msrb.mxu3 %v5067_v0  ;;  %7439 = vst [vmem:[#allocation40_spill] sm:$0xff] %v5314_v47 }
  0xb5   :  { %970 = vmatpush.msra.mxu2 %v5105_v16  ;;  %951 = vmatpush.msra.mxu1 %v5108_v18 }
  0xb6   :  { %996 = vmatpush.msrb.mxu3 %v5077_v3 }
  0xb7   :  { %971 = vmatpush.msra.mxu2 %v5112_v32  ;;  %952 = vmatpush.msra.mxu1 %v5115_v6 }
  0xb9   :  { %972 = vmatpush.msra.mxu2 %v5120_v13  ;;  %953 = vmatpush.msra.mxu1 %v5123_v21  ;;  %v5326_v21 = vperm.slane %v212_v43, 2 }
  0xbb   :  { %973 = vmatpush.msra.mxu2 %v5135_v35  ;;  %954 = vmatpush.msra.mxu1 %v5130_v22  ;;  %7444 = vst [vmem:[#allocation45_spill] sm:$0xff] %v5326_v21 }
  0xbd   :  { %974 = vmatpush.msra.mxu2 %v5137_v8  ;;  %v239_v41 = vpop.f32.mrf.mxu1  ;;  %955 = vmatpush.msra.mxu1 %v5140_v38 }
  0xbe   :  { %v240_v50 = vadd.f32 %v239_v41, %v5301_v45 }
  0xbf   :  { %975 = vmatpush.msra.mxu2 %v5144_v25  ;;  %956 = vmatpush.msra.mxu1 %v5148_v28 }
  0xc0   :  { %v503_v17 = vpop.f32.mrf.mxu0 }
  0xc1   :  { %976 = vmatpush.msra.mxu2 %v5152_v30  ;;  %v566_v20 = vadd.f32 %v503_v17, %v240_v50 }
  0xc3   :  { %v5261_v44 = vpop.f32.mrf.mxu2  ;;  %v4267_v54 = vmul.f32 -1.442695, %v566_v20 }
  0xc4   :  { %7421 = vst [vmem:[#allocation22_spill] sm:$0xff] %v5261_v44  ;;  %v362_v48 = vpop.f32.mrf.mxu3 }
  0xc5   :  { %v5263_v51 = vpop.f32.mrf.mxu1  ;;  %4345 = vpow2.f32 %v4267_v54  ;;  %v363_v60 = vadd.f32 %v362_v48, %v5314_v47 }
  0xcb   :  { %v4346_v0 = vpop.eup %4345 }
  0xcc   :  { %v5265_v55 = vpop.f32.mrf.mxu2  ;;  %v573_v5 = vadd.f32 1.0, %v4346_v0 }
  0xcd   :  { %7422 = vst [vmem:[#allocation23_spill] sm:$0xff] %v5265_v55  ;;  %v5267_v59 = vpop.f32.mrf.mxu3  ;;  %v5269_v62 = vpop.f32.mrf.mxu1  ;;  %v5578_v55 = vld [vmem:[#allocation9 + $0x10] sm:$0xff] }
  0xce   :  { %vm579_vm1 = vweird.f32 %v573_v5  ;;  %v585_v43 = vand.u32 2147483648, %v573_v5 }
  0xd4   :  { %v5271_v2 = vpop.f32.mrf.mxu2 }
  0xd5   :  { %7423 = vst [vmem:[#allocation24_spill] sm:$0xff] %v5271_v2  ;;  %v5273_v7 = vpop.f32.mrf.mxu1  ;;  %v5275_v10 = vpop.f32.mrf.mxu3 }
  0xd6   :  { %7424 = vst [vmem:[#allocation25_spill] sm:$0xff] %v5273_v7 }
  0xdc   :  { %v5277_v15 = vpop.f32.mrf.mxu2 }
  0xdd   :  { %7425 = vst [vmem:[#allocation26_spill] sm:$0xff] %v5277_v15  ;;  %v280_v19 = vpop.f32.mrf.mxu1  ;;  %v5279_v24 = vpop.f32.mrf.mxu3 }
  0xde   :  { %7426 = vst [vmem:[#allocation27_spill] sm:$0xff] %v5279_v24  ;;  %v281_v4 = vadd.f32 %v280_v19, %v5319_v1 }
  0xe4   :  { %v321_v27 = vpop.f32.mrf.mxu2 }
  0xe5   :  { %v5281_v31 = vpop.f32.mrf.mxu1  ;;  %v5283_v33 = vpop.f32.mrf.mxu3  ;;  %v322_v38 = vadd.f32 %v321_v27, %v5326_v21 }
  0xe6   :  { %7427 = vst [vmem:[#allocation28_spill] sm:$0xff] %v5283_v33 }
  0xec   :  { %v5285_v34 = vpop.f32.mrf.mxu2 }
  0xed   :  { %v5287_v11 = vpop.f32.mrf.mxu1  ;;  %v5289_v36 = vpop.f32.mrf.mxu3 }
  0xee   :  { %7428 = vst [vmem:[#allocation29_spill] sm:$0xff] %v5289_v36  ;;  %v5570_v36 = vld [vmem:[#allocation9 + $0x30] sm:$0xff] }
  0xf4   :  { %v5291_v37 = vpop.f32.mrf.mxu2 }
  0xf5   :  { %v5293_v39 = vpop.f32.mrf.mxu1  ;;  %v5299_v42 = vpop.f32.mrf.mxu3 }
  0xf6   :  { %7429 = vst [vmem:[#allocation30_spill] sm:$0xff] %v5293_v39 }
  0xf7   :  { %7432 = vst [vmem:[#allocation33_spill] sm:$0xff] %v5299_v42 }
  0xfc   :  { %v5295_v40 = vpop.f32.mrf.mxu2 }
  0xfd   :  { %7430 = vst [vmem:[#allocation31_spill] sm:$0xff] %v5295_v40  ;;  %v5297_v14 = vpop.f32.mrf.mxu1  ;;  %v5308_v52 = vpop.f32.mrf.mxu3 }
  0xfe   :  { %7431 = vst [vmem:[#allocation32_spill] sm:$0xff] %v5297_v14 }
  0xff   :  { %7436 = vst [vmem:[#allocation37_spill] sm:$0xff] %v5308_v52 }
 0x104   :  { %v5303_v46 = vpop.f32.mrf.mxu2 }
 0x105   :  { %7434 = vst [vmem:[#allocation35_spill] sm:$0xff] %v5303_v46  ;;  %v5305_v49 = vpop.f32.mrf.mxu1  ;;  %v563_v58 = vpop.f32.mrf.mxu3  ;;  %v5580_v46 = vld [vmem:[#allocation9 + $0x18] sm:$0xff] }
 0x106   :  { %7435 = vst [vmem:[#allocation36_spill] sm:$0xff] %v5305_v49  ;;  %v569_v63 = vadd.f32 %v563_v58, %v363_v60  ;;  %v583_v58 = vand.u32 2147483647, %v573_v5  ;;  %v5576_v49 = vld [vmem:[#allocation9 + $0x8] sm:$0xff] }
 0x108   :  { %v4269_v3 = vmul.f32 -1.442695, %v569_v63  ;;  %vm584_vm6 = vcmp.eq.f32.partialorder %v583_v58, 8.507059e+37  ;;  %v5362_v58 = vld [vmem:[#allocation9 + $0xe0] sm:$0xff] }
 0x10a   :  { %4347 = vpow2.f32 %v4269_v3 }
 0x10b   :  { %4349 = vrcp.f32 %v573_v5 }
 0x10c   :  { %v5312_v56 = vpop.f32.mrf.mxu2 }
 0x10d   :  { %v5310_v53 = vpop.f32.mrf.mxu1  ;;  %7438 = vst [vmem:[#allocation39_spill] sm:$0xff] %v5312_v56  ;;  %v5568_v56 = vld [vmem:[#allocation9 + $0x28] sm:$0xff] }
 0x10e   :  { %7437 = vst [vmem:[#allocation38_spill] sm:$0xff] %v5310_v53  ;;  %v5559_v53 = vld [vmem:[#allocation9 + $0x48] sm:$0xff] }
 0x110   :  { %v4348_v16 = vpop.eup %4347 }
 0x111   :  { %v4350_v18 = vpop.eup %4349  ;;  %v612_v32 = vadd.f32 1.0, %v4348_v16 }
 0x112   :  { %v575_v13 = vmul.f32 %v4350_v18, %v573_v5  ;;  %vm580_vm0 = vweird.f32 %v4350_v18 }
 0x113   :  { %vm581_vm3 = vmor %vm579_vm1, %vm580_vm0  ;;  %vm618_vm9 = vweird.f32 %v612_v32 }
 0x114   :  { %v5321_v26 = vpop.f32.mrf.mxu2  ;;  %v576_v35 = vsub.f32 1.0, %v575_v13 }
 0x115   :  { %v5317_v23 = vpop.f32.mrf.mxu1  ;;  %7442 = vst [vmem:[#allocation43_spill] sm:$0xff] %v5321_v26  ;;  %v5554_v26 = vld [vmem:[#allocation9 + $0x78] sm:$0xff] }
 0x116   :  { %7440 = vst [vmem:[#allocation41_spill] sm:$0xff] %v5317_v23  ;;  %v577_v30 = vmul.f32 %v4350_v18, %v576_v35 }
 0x118   :  { %v578_v17 = vadd.f32 %v4350_v18, %v577_v30 }
 0x11a   :  { %v582_v27 = vsel %vm581_vm3, %v4350_v18, %v578_v17  ;;  %v622_v18 = vand.u32 2147483647, %v612_v32  ;;  %v5350_v17 = vld [vmem:[#allocation9 + $0x160] sm:$0xff] }
 0x11c   :  { %vm623_vm11 = vcmp.eq.f32.partialorder %v622_v18, 8.507059e+37  ;;  %v5386_v18 = vld [vmem:[#allocation9 + $0x20] sm:$0xff] }
 0x11d   :  { %v523_v61 = vpop.f32.mrf.mxu1  ;;  %v5324_v29 = vpop.f32.mrf.mxu2 }
 0x11e   :  { %v567_v9 = vadd.f32 %v523_v61, %v281_v4  ;;  %7443 = vst [vmem:[#allocation44_spill] sm:$0xff] %v5324_v29  ;;  %v586_v61 = vor.u32 1.1754944e-38, %v585_v43  ;;  %v5356_v43 = vld [vmem:[#allocation9 + $0x120] sm:$0xff] }
 0x120   :  { %v4268_v12 = vmul.f32 -1.442695, %v567_v9  ;;  %v587_v16 = vsel %vm584_vm6, %v586_v61, %v582_v27 }
 0x122   :  { %4351 = vpow2.f32 %v4268_v12 }
 0x123   :  { %4353 = vrcp.f32 %v612_v32 }
 0x125   :  { %v543_v8 = vpop.f32.mrf.mxu2 }
 0x126   :  { %v568_v25 = vadd.f32 %v543_v8, %v322_v38  ;;  %v624_v38 = vand.u32 2147483648, %v612_v32 }
 0x128   :  { %v4352_v6 = vpop.eup %4351 }
 0x129   :  { %v592_v22 = vadd.f32 1.0, %v4352_v6  ;;  %v4354_v28 = vpop.eup %4353 }
 0x12a   :  { %v614_v19 = vmul.f32 %v4354_v28, %v612_v32  ;;  %vm619_vm8 = vweird.f32 %v4354_v28  ;;  %v5341_v32 = vld [vmem:[#allocation9 + $0x1c0] sm:$0xff] }
 0x12b   :  { %4355 = vrcp.f32 %v592_v22  ;;  %v604_v20 = vand.u32 2147483648, %v592_v22  ;;  %v602_v60 = vand.u32 2147483647, %v592_v22  ;;  %vm598_vm4 = vweird.f32 %v592_v22  ;;  %vm620_vm10 = vmor %vm618_vm9, %vm619_vm8 }
 0x12c   :  { %4357 = vtanh.f32 %v568_v25  ;;  %v615_v63 = vsub.f32 1.0, %v614_v19  ;;  %v625_v25 = vor.u32 1.1754944e-38, %v624_v38  ;;  %v5338_v19 = vld [vmem:[#allocation9 + $0x1e0] sm:$0xff] }
 0x12d   :  { %v605_v4 = vor.u32 1.1754944e-38, %v604_v20  ;;  %vm603_vm7 = vcmp.eq.f32.partialorder %v602_v60, 8.507059e+37  ;;  %921 = vmatpush.msra.mxu0 %v5338_v19  ;;  %v5353_v20 = vld [vmem:[#allocation9 + $0x140] sm:$0xff]  ;;  %v243_v60 = vadd.f32 %v5263_v51, %v5301_v45 }
 0x12e   :  { %v616_v12 = vmul.f32 %v4354_v28, %v615_v63  ;;  %v284_v63 = vadd.f32 %v5281_v31, %v5319_v1  ;;  %v5375_v51 = vld [vmem:[#allocation9 + $0x80] sm:$0xff]  ;;  %v366_v31 = vadd.f32 %v5267_v59, %v5314_v47 }
 0x12f   :  { %922 = vmatpush.msra.mxu0 %v5341_v32 }
 0x130   :  { %v617_v8 = vadd.f32 %v4354_v28, %v616_v12 }
 0x131   :  { %v4356_v41 = vpop.eup %4355 }
 0x132   :  { %v594_v48 = vmul.f32 %v4356_v41, %v592_v22  ;;  %vm599_vm2 = vweird.f32 %v4356_v41  ;;  %v4358_v3 = vpop.eup %4357  ;;  %v621_v22 = vsel %vm620_vm10, %v4354_v28, %v617_v8  ;;  %v5344_v28 = vld [vmem:[#allocation9 + $0x1a0] sm:$0xff] }
 0x133   :  { %vm600_vm5 = vmor %vm598_vm4, %vm599_vm2  ;;  %v629_v35 = vmul.f32 %v4358_v3, %v587_v16  ;;  %923 = vmatpush.msra.mxu0 %v5344_v28  ;;  %v5369_v3 = vld [vmem:[#allocation9 + $0xc0] sm:$0xff] }
 0x134   :  { %v595_v50 = vsub.f32 1.0, %v594_v48  ;;  %v5383_v8 = vld [vmem:[#allocation9 + $0x40] sm:$0xff] }
 0x136   :  { %v596_v54 = vmul.f32 %v4356_v41, %v595_v50  ;;  %v5347_v50 = vld [vmem:[#allocation9 + $0x180] sm:$0xff] }
 0x137   :  { %924 = vmatpush.msra.mxu0 %v5347_v50 }
 0x138   :  { %v597_v0 = vadd.f32 %v4356_v41, %v596_v54  ;;  %v5359_v54 = vld [vmem:[#allocation9 + $0x100] sm:$0xff] }
 0x139   :  { %925 = vmatpush.msra.mxu0 %v5350_v17 }
 0x13a   :  { %v601_v9 = vsel %vm600_vm5, %v4356_v41, %v597_v0  ;;  %v626_v41 = vsel %vm623_vm11, %v625_v25, %v621_v22  ;;  %v5389_v25 = vld [vmem:[#allocation9] sm:$0xff] }
 0x13b   :  { %v606_v6 = vsel %vm603_vm7, %v605_v4, %v601_v9  ;;  %926 = vmatpush.msra.mxu0 %v5353_v20  ;;  %v5372_v9 = vld [vmem:[#allocation9 + $0xa0] sm:$0xff] }
 0x13c   :  { %v628_v13 = vmul.f32 0.0, %v606_v6  ;;  %v5380_v6 = vld [vmem:[#allocation9 + $0x60] sm:$0xff] }
 0x13d   :  { %927 = vmatpush.msra.mxu0 %v5356_v43 }
 0x13e   :  { %v5329_v5 = vadd.f32 %v629_v35, %v628_v13 }
 0x13f   :  { %928 = vmatpush.msra.mxu0 %v5359_v54 }
 0x140   :  { %4359 = vtanh.f32 %v5329_v5 }
 0x141   :  { %929 = vmatpush.msra.mxu0 %v5362_v58 }
 0x143   :  { %930 = vmatpush.msra.mxu0 %v5369_v3 }
 0x145   :  { %931 = vmatpush.msra.mxu0 %v5372_v9 }
 0x146   :  { %v4360_v30 = vpop.eup %4359 }
 0x147   :  { %v5332_v48 = vmul.f32 %v4360_v30, %v626_v41  ;;  %932 = vmatpush.msra.mxu0 %v5375_v51 }
 0x149   :  { %7445 = vst [vmem:[#allocation46_spill] sm:$0xff] %v5332_v48  ;;  %719 = vmatmul.f32.vlgmr.msrb.gmra.mxu0 %v5332_v48  ;;  %739 = vmatmul.f32.vlgmr.msrb.gmra.mxu1 %v5332_v48 }
 0x14a   :  { %759 = vmatmul.f32.vlgmr.msrb.gmra.mxu2 %v5332_v48  ;;  %779 = vmatmul.f32.vlgmr.msra.gmra.mxu3 %v5332_v48 }
 0x14b   :  { %933 = vmatpush.msra.mxu0 %v5380_v6 }
 0x14d   :  { %934 = vmatpush.msra.mxu0 %v5383_v8 }
 0x14f   :  { %935 = vmatpush.msra.mxu0 %v5386_v18 }
 0x151   :  { %936 = vmatpush.msra.mxu0 %v5389_v25 }
 0x153   :  { %1139 = vmatpush.msrb.mxu0 %v5338_v19 }
 0x155   :  { %1140 = vmatpush.msrb.mxu0 %v5341_v32 }
 0x157   :  { %1141 = vmatpush.msrb.mxu0 %v5344_v28 }
 0x159   :  { %1142 = vmatpush.msrb.mxu0 %v5347_v50 }
 0x15b   :  { %1143 = vmatpush.msrb.mxu0 %v5350_v17 }
 0x15d   :  { %1144 = vmatpush.msrb.mxu0 %v5353_v20 }
 0x15f   :  { %1145 = vmatpush.msrb.mxu0 %v5356_v43 }
 0x161   :  { %1146 = vmatpush.msrb.mxu0 %v5359_v54 }
 0x163   :  { %1147 = vmatpush.msrb.mxu0 %v5362_v58 }
 0x165   :  { %1148 = vmatpush.msrb.mxu0 %v5369_v3 }
 0x167   :  { %1149 = vmatpush.msrb.mxu0 %v5372_v9 }
 0x169   :  { %1150 = vmatpush.msrb.mxu0 %v5375_v51 }
 0x16b   :  { %1151 = vmatpush.msrb.mxu0 %v5380_v6 }
 0x16d   :  { %1152 = vmatpush.msrb.mxu0 %v5383_v8 }
 0x16f   :  { %1153 = vmatpush.msrb.mxu0 %v5386_v18 }
 0x171   :  { %1154 = vmatpush.msrb.mxu0 %v5389_v25 }
 0x1c6   :  { %v720_v27 = vpop.f32.mrf.mxu0  ;;  %v740_v0 = vpop.f32.mrf.mxu1 }
 0x1c7   :  { %v783_v4 = vadd.f32 %v720_v27, %v243_v60  ;;  %v784_v61 = vadd.f32 %v740_v0, %v284_v63  ;;  %v325_v27 = vadd.f32 %v5285_v34, %v5326_v21 }
 0x1c9   :  { %v4270_v12 = vmul.f32 -1.442695, %v783_v4  ;;  %v4271_v16 = vmul.f32 -1.442695, %v784_v61 }
 0x1cb   :  { %4361 = vpow2.f32 %v4270_v12 }
 0x1cc   :  { %4363 = vpow2.f32 %v4271_v16 }
 0x1cd   :  { %v780_v13 = vpop.f32.mrf.mxu3  ;;  %v760_v60 = vpop.f32.mrf.mxu2 }
 0x1ce   :  { %v786_v35 = vadd.f32 %v780_v13, %v366_v31  ;;  %v785_v61 = vadd.f32 %v760_v60, %v325_v27 }
 0x1d0   :  { %v4272_v38 = vmul.f32 -1.442695, %v786_v35 }
 0x1d1   :  { %v4362_v22 = vpop.eup %4361 }
 0x1d2   :  { %v4364_v59 = vpop.eup %4363  ;;  %v790_v30 = vadd.f32 1.0, %v4362_v22  ;;  %4365 = vpow2.f32 %v4272_v38 }
 0x1d3   :  { %v809_v41 = vadd.f32 1.0, %v4364_v59 }
 0x1d4   :  { %4367 = vrcp.f32 %v790_v30  ;;  %v802_v38 = vand.u32 2147483648, %v790_v30  ;;  %v800_v59 = vand.u32 2147483647, %v790_v30  ;;  %vm796_vm14 = vweird.f32 %v790_v30 }
 0x1d5   :  { %4369 = vrcp.f32 %v809_v41  ;;  %v821_v34 = vand.u32 2147483648, %v809_v41  ;;  %v819_v60 = vand.u32 2147483647, %v809_v41  ;;  %vm815_vm15 = vweird.f32 %v809_v41 }
 0x1d6   :  { %vm801_vm2 = vcmp.eq.f32.partialorder %v800_v59, 8.507059e+37  ;;  %v5490_v59 = vld [vmem:[#allocation9 + $0x128] sm:$0xff] }
 0x1d7   :  { %vm820_vm3 = vcmp.eq.f32.partialorder %v819_v60, 8.507059e+37  ;;  %7449 = vst [vmem:[#allocation50_spill] sm:$0xff] %v5490_v59  ;;  %v5492_v60 = vld [vmem:[#allocation9 + $0x130] sm:$0xff] }
 0x1d8   :  { %v4366_v63 = vpop.eup %4365 }
 0x1d9   :  { %v829_v0 = vadd.f32 1.0, %v4366_v63 }
 0x1da   :  { %v4368_v4 = vpop.eup %4367 }
 0x1db   :  { %v4370_v12 = vpop.eup %4369  ;;  %v792_v16 = vmul.f32 %v4368_v4, %v790_v30  ;;  %4371 = vrcp.f32 %v829_v0  ;;  %vm797_vm12 = vweird.f32 %v4368_v4  ;;  %vm835_vm5 = vweird.f32 %v829_v0 }
 0x1dc   :  { %v811_v31 = vmul.f32 %v4370_v12, %v809_v41  ;;  %4373 = vtanh.f32 %v785_v61  ;;  %vm816_vm13 = vweird.f32 %v4370_v12  ;;  %vm798_vm0 = vmor %vm796_vm14, %vm797_vm12  ;;  %v822_v61 = vor.u32 1.1754944e-38, %v821_v34  ;;  %v5485_v34 = vld [vmem:[#allocation9 + $0x158] sm:$0xff] }
 0x1dd   :  { %v793_v13 = vsub.f32 1.0, %v792_v16  ;;  %v803_v16 = vor.u32 1.1754944e-38, %v802_v38  ;;  %vm817_vm1 = vmor %vm815_vm15, %vm816_vm13  ;;  %7448 = vst [vmem:[#allocation49_spill] sm:$0xff] %v5485_v34 }
 0x1de   :  { %v812_v35 = vsub.f32 1.0, %v811_v31 }
 0x1df   :  { %v794_v22 = vmul.f32 %v4368_v4, %v793_v13 }
 0x1e0   :  { %v813_v63 = vmul.f32 %v4370_v12, %v812_v35 }
 0x1e1   :  { %v4372_v27 = vpop.eup %4371  ;;  %v795_v57 = vadd.f32 %v4368_v4, %v794_v22 }
 0x1e2   :  { %v814_v31 = vadd.f32 %v4370_v12, %v813_v63  ;;  %v831_v29 = vmul.f32 %v4372_v27, %v829_v0  ;;  %v4374_v52 = vpop.eup %4373  ;;  %vm836_vm4 = vweird.f32 %v4372_v27 }
 0x1e3   :  { %v799_v13 = vsel %vm798_vm0, %v4368_v4, %v795_v57  ;;  %v841_v4 = vand.u32 2147483648, %v829_v0  ;;  %vm837_vm6 = vmor %vm835_vm5, %vm836_vm4 }
 0x1e4   :  { %v804_v35 = vsel %vm801_vm2, %v803_v16, %v799_v13  ;;  %v818_v23 = vsel %vm817_vm1, %v4370_v12, %v814_v31  ;;  %v832_v15 = vsub.f32 1.0, %v831_v29  ;;  %v839_v29 = vand.u32 2147483647, %v829_v0  ;;  %v5483_v0 = vld [vmem:[#allocation9 + $0x150] sm:$0xff]  ;;  %v5499_v16 = vld [vmem:[#allocation9 + $0x108] sm:$0xff] }
 0x1e5   :  { %v823_v22 = vsel %vm820_vm3, %v822_v61, %v818_v23  ;;  %v846_v30 = vmul.f32 %v4374_v52, %v804_v35  ;;  %7447 = vst [vmem:[#allocation48_spill] sm:$0xff] %v5483_v0  ;;  %v5501_v31 = vld [vmem:[#allocation9 + $0x110] sm:$0xff]  ;;  %v5503_v61 = vld [vmem:[#allocation9 + $0x118] sm:$0xff]  ;;  %v5508_v13 = vld [vmem:[#allocation9 + $0xe8] sm:$0xff] }
 0x1e6   :  { %v845_v41 = vmul.f32 %v823_v22, %v5329_v5  ;;  %v833_v38 = vmul.f32 %v4372_v27, %v832_v15  ;;  %v842_v15 = vor.u32 1.1754944e-38, %v841_v4  ;;  %vm840_vm7 = vcmp.eq.f32.partialorder %v839_v29, 8.507059e+37  ;;  %v5510_v35 = vld [vmem:[#allocation9 + $0xf0] sm:$0xff]  ;;  %v5512_v22 = vld [vmem:[#allocation9 + $0xf8] sm:$0xff]  ;;  %v5521_v4 = vld [vmem:[#allocation9 + $0xc8] sm:$0xff] }
 0x1e7   :  { %v5523_v29 = vld [vmem:[#allocation9 + $0xd0] sm:$0xff] }
 0x1e8   :  { %v5405_v63 = vadd.f32 %v846_v30, %v845_v41  ;;  %v834_v57 = vadd.f32 %v4372_v27, %v833_v38  ;;  %v246_v30 = vadd.f32 %v5269_v62, %v5301_v45  ;;  %v287_v41 = vadd.f32 %v5287_v11, %v5319_v1  ;;  %v5530_v62 = vld [vmem:[#allocation9 + $0xa8] sm:$0xff]  ;;  %v5532_v11 = vld [vmem:[#allocation9 + $0xb0] sm:$0xff] }
 0x1ea   :  { %4375 = vtanh.f32 %v5405_v63  ;;  %v838_v52 = vsel %vm837_vm6, %v4372_v27, %v834_v57  ;;  %v5494_v27 = vld [vmem:[#allocation9 + $0x138] sm:$0xff] }
 0x1eb   :  { %v843_v5 = vsel %vm840_vm7, %v842_v15, %v838_v52  ;;  %7450 = vst [vmem:[#allocation51_spill] sm:$0xff] %v5494_v27  ;;  %v5525_v52 = vld [vmem:[#allocation9 + $0xd8] sm:$0xff] }
 0x1f0   :  { %v4376_v23 = vpop.eup %4375 }
 0x1f1   :  { %v5413_v12 = vmul.f32 %v4376_v23, %v843_v5  ;;  %v5534_v5 = vld [vmem:[#allocation9 + $0xb8] sm:$0xff] }
 0x1f3   :  { %7446 = vst [vmem:[#allocation47_spill] sm:$0xff] %v5413_v12  ;;  %937 = vmatmul.f32.vlgmr.msra.gmra.mxu0 %v5413_v12  ;;  %957 = vmatmul.f32.vlgmr.msra.gmra.mxu1 %v5413_v12 }
 0x1f4   :  { %977 = vmatmul.f32.vlgmr.msra.gmra.mxu2 %v5413_v12  ;;  %997 = vmatmul.f32.vlgmr.msrb.gmra.mxu3 %v5413_v12 }
 0x1f5   :  { %1357 = vmatpush.msra.mxu0 %v5338_v19  ;;  %v5436_v19 = vld [vmem:[#allocation9 + $0x1e8] sm:$0xff] }
 0x1f6   :  { %1159 = vmatpush.msrb.mxu1 %v5436_v19 }
 0x1f7   :  { %1358 = vmatpush.msra.mxu0 %v5341_v32  ;;  %v5438_v32 = vld [vmem:[#allocation9 + $0x1f0] sm:$0xff] }
 0x1f8   :  { %1179 = vmatpush.msrb.mxu2 %v5438_v32 }
 0x1f9   :  { %1359 = vmatpush.msra.mxu0 %v5344_v28  ;;  %v5440_v28 = vld [vmem:[#allocation9 + $0x1f8] sm:$0xff] }
 0x1fa   :  { %1199 = vmatpush.msra.mxu3 %v5440_v28 }
 0x1fb   :  { %1360 = vmatpush.msra.mxu0 %v5347_v50  ;;  %v5445_v50 = vld [vmem:[#allocation9 + $0x1c8] sm:$0xff] }
 0x1fc   :  { %1160 = vmatpush.msrb.mxu1 %v5445_v50 }
 0x1fd   :  { %1361 = vmatpush.msra.mxu0 %v5350_v17  ;;  %v5447_v17 = vld [vmem:[#allocation9 + $0x1d0] sm:$0xff] }
 0x1fe   :  { %1180 = vmatpush.msrb.mxu2 %v5447_v17 }
 0x1ff   :  { %1362 = vmatpush.msra.mxu0 %v5353_v20  ;;  %v5449_v20 = vld [vmem:[#allocation9 + $0x1d8] sm:$0xff] }
 0x200   :  { %1200 = vmatpush.msra.mxu3 %v5449_v20 }
 0x201   :  { %1363 = vmatpush.msra.mxu0 %v5356_v43  ;;  %v5454_v43 = vld [vmem:[#allocation9 + $0x1a8] sm:$0xff] }
 0x202   :  { %1161 = vmatpush.msrb.mxu1 %v5454_v43 }
 0x203   :  { %1364 = vmatpush.msra.mxu0 %v5359_v54  ;;  %v5456_v54 = vld [vmem:[#allocation9 + $0x1b0] sm:$0xff] }
 0x204   :  { %1181 = vmatpush.msrb.mxu2 %v5456_v54 }
 0x205   :  { %1365 = vmatpush.msra.mxu0 %v5362_v58  ;;  %v5458_v58 = vld [vmem:[#allocation9 + $0x1b8] sm:$0xff] }
 0x206   :  { %1201 = vmatpush.msra.mxu3 %v5458_v58 }
 0x207   :  { %1366 = vmatpush.msra.mxu0 %v5369_v3  ;;  %v5463_v3 = vld [vmem:[#allocation9 + $0x188] sm:$0xff] }
 0x208   :  { %1162 = vmatpush.msrb.mxu1 %v5463_v3 }
 0x209   :  { %1367 = vmatpush.msra.mxu0 %v5372_v9  ;;  %v5465_v9 = vld [vmem:[#allocation9 + $0x190] sm:$0xff] }
 0x20a   :  { %1182 = vmatpush.msrb.mxu2 %v5465_v9 }
 0x20b   :  { %1368 = vmatpush.msra.mxu0 %v5375_v51  ;;  %v5467_v51 = vld [vmem:[#allocation9 + $0x198] sm:$0xff] }
 0x20c   :  { %1202 = vmatpush.msra.mxu3 %v5467_v51 }
 0x20d   :  { %1369 = vmatpush.msra.mxu0 %v5380_v6  ;;  %v5472_v6 = vld [vmem:[#allocation9 + $0x168] sm:$0xff] }
 0x20e   :  { %1163 = vmatpush.msrb.mxu1 %v5472_v6 }
 0x20f   :  { %1370 = vmatpush.msra.mxu0 %v5383_v8  ;;  %v5474_v8 = vld [vmem:[#allocation9 + $0x170] sm:$0xff] }
 0x210   :  { %1183 = vmatpush.msrb.mxu2 %v5474_v8 }
 0x211   :  { %1371 = vmatpush.msra.mxu0 %v5386_v18  ;;  %v5476_v18 = vld [vmem:[#allocation9 + $0x178] sm:$0xff] }
 0x212   :  { %1203 = vmatpush.msra.mxu3 %v5476_v18  ;;  %1184 = vmatpush.msrb.mxu2 %v5483_v0 }
 0x213   :  { %1372 = vmatpush.msra.mxu0 %v5389_v25  ;;  %v5481_v25 = vld [vmem:[#allocation9 + $0x148] sm:$0xff] }
 0x214   :  { %1164 = vmatpush.msrb.mxu1 %v5481_v25  ;;  %1204 = vmatpush.msra.mxu3 %v5485_v34 }
 0x215   :  { %1185 = vmatpush.msrb.mxu2 %v5492_v60 }
 0x216   :  { %1165 = vmatpush.msrb.mxu1 %v5490_v59  ;;  %1205 = vmatpush.msra.mxu3 %v5494_v27 }
 0x217   :  { %1186 = vmatpush.msrb.mxu2 %v5501_v31 }
 0x218   :  { %1166 = vmatpush.msrb.mxu1 %v5499_v16  ;;  %1206 = vmatpush.msra.mxu3 %v5503_v61 }
 0x219   :  { %1187 = vmatpush.msrb.mxu2 %v5510_v35 }
 0x21a   :  { %1167 = vmatpush.msrb.mxu1 %v5508_v13  ;;  %1207 = vmatpush.msra.mxu3 %v5512_v22 }
 0x21b   :  { %1188 = vmatpush.msrb.mxu2 %v5523_v29 }
 0x21c   :  { %1168 = vmatpush.msrb.mxu1 %v5521_v4  ;;  %1208 = vmatpush.msra.mxu3 %v5525_v52 }
 0x21d   :  { %1189 = vmatpush.msrb.mxu2 %v5532_v11 }
 0x21e   :  { %1169 = vmatpush.msrb.mxu1 %v5530_v62  ;;  %1209 = vmatpush.msra.mxu3 %v5534_v5 }
 0x270   :  { %v938_v38 = vpop.f32.mrf.mxu0  ;;  %v958_v57 = vpop.f32.mrf.mxu1 }
 0x271   :  { %v1001_v15 = vadd.f32 %v938_v38, %v246_v30  ;;  %v1002_v23 = vadd.f32 %v958_v57, %v287_v41  ;;  %v5539_v30 = vld [vmem:[#allocation9 + $0x88] sm:$0xff]  ;;  %v5541_v41 = vld [vmem:[#allocation9 + $0x90] sm:$0xff]  ;;  %v5543_v38 = vld [vmem:[#allocation9 + $0x98] sm:$0xff]  ;;  %v369_v57 = vadd.f32 %v5275_v10, %v5314_v47 }
 0x272   :  { %1170 = vmatpush.msrb.mxu1 %v5539_v30  ;;  %1190 = vmatpush.msrb.mxu2 %v5541_v41  ;;  %v5561_v10 = vld [vmem:[#allocation9 + $0x50] sm:$0xff] }
 0x273   :  { %v4273_v12 = vmul.f32 -1.442695, %v1001_v15  ;;  %v4274_v48 = vmul.f32 -1.442695, %v1002_v23  ;;  %1210 = vmatpush.msra.mxu3 %v5543_v38  ;;  %v5550_v15 = vld [vmem:[#allocation9 + $0x68] sm:$0xff]  ;;  %v5552_v23 = vld [vmem:[#allocation9 + $0x70] sm:$0xff] }
 0x274   :  { %1171 = vmatpush.msrb.mxu1 %v5550_v15  ;;  %1191 = vmatpush.msrb.mxu2 %v5552_v23 }
 0x275   :  { %4377 = vpow2.f32 %v4273_v12  ;;  %1211 = vmatpush.msra.mxu3 %v5554_v26 }
 0x276   :  { %4379 = vpow2.f32 %v4274_v48  ;;  %v5563_v48 = vld [vmem:[#allocation9 + $0x58] sm:$0xff]  ;;  %1172 = vmatpush.msrb.mxu1 %v5559_v53  ;;  %1192 = vmatpush.msrb.mxu2 %v5561_v10 }
 0x277   :  { %v998_v42 = vpop.f32.mrf.mxu3  ;;  %1212 = vmatpush.msra.mxu3 %v5563_v48 }
 0x278   :  { %v1004_v12 = vadd.f32 %v998_v42, %v369_v57  ;;  %v5572_v42 = vld [vmem:[#allocation9 + $0x38] sm:$0xff]  ;;  %1173 = vmatpush.msrb.mxu1 %v5568_v56  ;;  %1193 = vmatpush.msrb.mxu2 %v5570_v36 }
 0x279   :  { %1213 = vmatpush.msra.mxu3 %v5572_v42 }
 0x27a   :  { %v4275_v2 = vmul.f32 -1.442695, %v1004_v12  ;;  %1174 = vmatpush.msrb.mxu1 %v5576_v49  ;;  %1194 = vmatpush.msrb.mxu2 %v5578_v55 }
 0x27b   :  { %v4378_v57 = vpop.eup %4377  ;;  %1214 = vmatpush.msra.mxu3 %v5580_v46 }
 0x27c   :  { %v4380_v12 = vpop.eup %4379  ;;  %v5582_v33 = vadd.f32 1.0, %v4378_v57  ;;  %4381 = vpow2.f32 %v4275_v2  ;;  %1377 = vmatpush.msra.mxu1 %v5436_v19  ;;  %1397 = vmatpush.msra.mxu2 %v5438_v32  ;;  %v978_v2 = vpop.f32.mrf.mxu2 }
 0x27d   :  { %v5585_v14 = vadd.f32 1.0, %v4380_v12  ;;  %1417 = vmatpush.msrb.mxu3 %v5440_v28  ;;  %v328_v12 = vadd.f32 %v5291_v37, %v5326_v21 }
 0x27e   :  { %4383 = vrcp.f32 %v5582_v33  ;;  %1378 = vmatpush.msra.mxu1 %v5445_v50  ;;  %1398 = vmatpush.msra.mxu2 %v5447_v17  ;;  %v1018_v7 = vand.u32 2147483647, %v5582_v33  ;;  %vm1014_vm10 = vweird.f32 %v5582_v33 }
 0x27f   :  { %4385 = vrcp.f32 %v5585_v14  ;;  %1418 = vmatpush.msrb.mxu3 %v5449_v20  ;;  %v1003_v24 = vadd.f32 %v978_v2, %v328_v12  ;;  %v1020_v12 = vand.u32 2147483648, %v5582_v33  ;;  %v1039_v21 = vand.u32 2147483648, %v5585_v14 }
 0x280   :  { %1379 = vmatpush.msra.mxu1 %v5454_v43  ;;  %1399 = vmatpush.msra.mxu2 %v5456_v54  ;;  %v1037_v45 = vand.u32 2147483647, %v5585_v14  ;;  %vm1033_vm11 = vweird.f32 %v5585_v14  ;;  %vm1019_vm14 = vcmp.eq.f32.partialorder %v1018_v7, 8.507059e+37 }
 0x281   :  { %1419 = vmatpush.msrb.mxu3 %v5458_v58 }
 0x282   :  { %v4382_v57 = vpop.eup %4381  ;;  %1380 = vmatpush.msra.mxu1 %v5463_v3  ;;  %1400 = vmatpush.msra.mxu2 %v5465_v9  ;;  %vm1038_vm15 = vcmp.eq.f32.partialorder %v1037_v45, 8.507059e+37 }
 0x283   :  { %v5601_v44 = vadd.f32 1.0, %v4382_v57  ;;  %1420 = vmatpush.msrb.mxu3 %v5467_v51 }
 0x284   :  { %v4384_v40 = vpop.eup %4383  ;;  %1381 = vmatpush.msra.mxu1 %v5472_v6  ;;  %1401 = vmatpush.msra.mxu2 %v5474_v8 }
 0x285   :  { %v4386_v47 = vpop.eup %4385  ;;  %v1010_v39 = vmul.f32 %v4384_v40, %v5582_v33  ;;  %4387 = vrcp.f32 %v5601_v44  ;;  %1421 = vmatpush.msrb.mxu3 %v5476_v18  ;;  %vm1015_vm8 = vweird.f32 %v4384_v40  ;;  %vm1053_vm1 = vweird.f32 %v5601_v44 }
 0x286   :  { %v1029_v37 = vmul.f32 %v4386_v47, %v5585_v14  ;;  %4389 = vtanh.f32 %v1003_v24  ;;  %1382 = vmatpush.msra.mxu1 %v5481_v25  ;;  %1402 = vmatpush.msra.mxu2 %v5483_v0  ;;  %vm1034_vm9 = vweird.f32 %v4386_v47  ;;  %vm1016_vm12 = vmor %vm1014_vm10, %vm1015_vm8 }
 0x287   :  { %v1011_v57 = vsub.f32 1.0, %v1010_v39  ;;  %1422 = vmatpush.msrb.mxu3 %v5485_v34  ;;  %vm1035_vm13 = vmor %vm1033_vm11, %vm1034_vm9  ;;  %v1040_v34 = vor.u32 1.1754944e-38, %v1039_v21  ;;  %v1059_v21 = vand.u32 2147483648, %v5601_v44 }
 0x288   :  { %v1030_v2 = vsub.f32 1.0, %v1029_v37  ;;  %1383 = vmatpush.msra.mxu1 %v5490_v59  ;;  %1403 = vmatpush.msra.mxu2 %v5492_v60 }
 0x289   :  { %v1012_v1 = vmul.f32 %v4384_v40, %v1011_v57  ;;  %1423 = vmatpush.msrb.mxu3 %v5494_v27  ;;  %v1021_v57 = vor.u32 1.1754944e-38, %v1020_v12 }
 0x28a   :  { %v1031_v39 = vmul.f32 %v4386_v47, %v1030_v2  ;;  %1384 = vmatpush.msra.mxu1 %v5499_v16  ;;  %1404 = vmatpush.msra.mxu2 %v5501_v31 }
 0x28b   :  { %v4388_v37 = vpop.eup %4387  ;;  %v1013_v24 = vadd.f32 %v4384_v40, %v1012_v1  ;;  %1424 = vmatpush.msrb.mxu3 %v5503_v61 }
 0x28c   :  { %v1032_v0 = vadd.f32 %v4386_v47, %v1031_v39  ;;  %v1049_v2 = vmul.f32 %v4388_v37, %v5601_v44  ;;  %v4390_v33 = vpop.eup %4389  ;;  %1385 = vmatpush.msra.mxu1 %v5508_v13  ;;  %1405 = vmatpush.msra.mxu2 %v5510_v35  ;;  %vm1054_vm0 = vweird.f32 %v4388_v37 }
 0x28d   :  { %v1017_v59 = vsel %vm1016_vm12, %v4384_v40, %v1013_v24  ;;  %1425 = vmatpush.msrb.mxu3 %v5512_v22  ;;  %vm1055_vm2 = vmor %vm1053_vm1, %vm1054_vm0 }
 0x28e   :  { %v1022_v1 = vsel %vm1019_vm14, %v1021_v57, %v1017_v59  ;;  %v1036_v27 = vsel %vm1035_vm13, %v4386_v47, %v1032_v0  ;;  %v1050_v14 = vsub.f32 1.0, %v1049_v2  ;;  %1386 = vmatpush.msra.mxu1 %v5521_v4  ;;  %1406 = vmatpush.msra.mxu2 %v5523_v29 }
 0x28f   :  { %v1041_v12 = vsel %vm1038_vm15, %v1040_v34, %v1036_v27  ;;  %v1064_v39 = vmul.f32 %v4390_v33, %v1022_v1  ;;  %1426 = vmatpush.msrb.mxu3 %v5525_v52  ;;  %v1060_v34 = vor.u32 1.1754944e-38, %v1059_v21 }
 0x290   :  { %v1063_v40 = vmul.f32 %v1041_v12, %v5405_v63  ;;  %v1051_v7 = vmul.f32 %v4388_v37, %v1050_v14  ;;  %1387 = vmatpush.msra.mxu1 %v5530_v62  ;;  %1407 = vmatpush.msra.mxu2 %v5532_v11  ;;  %v1057_v63 = vand.u32 2147483647, %v5601_v44 }
 0x291   :  { %1427 = vmatpush.msrb.mxu3 %v5534_v5 }
 0x292   :  { %v5637_v47 = vadd.f32 %v1064_v39, %v1063_v40  ;;  %v1052_v45 = vadd.f32 %v4388_v37, %v1051_v7  ;;  %1388 = vmatpush.msra.mxu1 %v5539_v30  ;;  %1408 = vmatpush.msra.mxu2 %v5541_v41  ;;  %vm1058_vm3 = vcmp.eq.f32.partialorder %v1057_v63, 8.507059e+37 }
 0x293   :  { %1428 = vmatpush.msrb.mxu3 %v5543_v38 }
 0x294   :  { %4391 = vtanh.f32 %v5637_v47  ;;  %1389 = vmatpush.msra.mxu1 %v5550_v15  ;;  %v1056_v0 = vsel %vm1055_vm2, %v4388_v37, %v1052_v45  ;;  %1409 = vmatpush.msra.mxu2 %v5552_v23 }
 0x295   :  { %1429 = vmatpush.msrb.mxu3 %v5554_v26  ;;  %v1061_v59 = vsel %vm1058_vm3, %v1060_v34, %v1056_v0 }
 0x296   :  { %1390 = vmatpush.msra.mxu1 %v5559_v53  ;;  %1410 = vmatpush.msra.mxu2 %v5561_v10 }
 0x297   :  { %1430 = vmatpush.msrb.mxu3 %v5563_v48 }
 0x298   :  { %1391 = vmatpush.msra.mxu1 %v5568_v56  ;;  %1411 = vmatpush.msra.mxu2 %v5570_v36 }
 0x299   :  { %1431 = vmatpush.msrb.mxu3 %v5572_v42 }
 0x29a   :  { %v4392_v44 = vpop.eup %4391  ;;  %1392 = vmatpush.msra.mxu1 %v5576_v49  ;;  %1412 = vmatpush.msra.mxu2 %v5578_v55 }
 0x29b   :  { %v5656_v27 = vmul.f32 %v4392_v44, %v1061_v59  ;;  %1432 = vmatpush.msrb.mxu3 %v5580_v46 }
 0x29d   :  { %1155 = vmatmul.f32.vlgmr.msrb.gmra.mxu0 %v5656_v27  ;;  %1175 = vmatmul.f32.vlgmr.msrb.gmra.mxu1 %v5656_v27 }
 0x29e   :  { %1195 = vmatmul.f32.vlgmr.msrb.gmra.mxu2 %v5656_v27  ;;  %1215 = vmatmul.f32.vlgmr.msra.gmra.mxu3 %v5656_v27 }
 0x29f   :  { %1595 = vmatpush.msrb.mxu1 %v5436_v19  ;;  %1615 = vmatpush.msrb.mxu2 %v5438_v32  ;;  %v7451_v19 = vld [vmem:[#allocation48_spill] sm:$0xff]  ;;  %v7452_v32 = vld [vmem:[#allocation49_spill] sm:$0xff] }
 0x2a0   :  { %1635 = vmatpush.msra.mxu3 %v5440_v28  ;;  %v7453_v28 = vld [vmem:[#allocation50_spill] sm:$0xff] }
 0x2a1   :  { %1596 = vmatpush.msrb.mxu1 %v5445_v50  ;;  %1616 = vmatpush.msrb.mxu2 %v5447_v17  ;;  %v7454_v50 = vld [vmem:[#allocation51_spill] sm:$0xff]  ;;  %v7455_v17 = vld [vmem:[#allocation34_spill] sm:$0xff] }
 0x2a2   :  { %1636 = vmatpush.msra.mxu3 %v5449_v20 }
 0x2a3   :  { %1597 = vmatpush.msrb.mxu1 %v5454_v43  ;;  %1617 = vmatpush.msrb.mxu2 %v5456_v54  ;;  %v7458_v43 = vld [vmem:[#allocation30_spill] sm:$0xff] }
 0x2a4   :  { %1637 = vmatpush.msra.mxu3 %v5458_v58 }
 0x2a5   :  { %1598 = vmatpush.msrb.mxu1 %v5463_v3  ;;  %1618 = vmatpush.msrb.mxu2 %v5465_v9 }
 0x2a6   :  { %1638 = vmatpush.msra.mxu3 %v5467_v51 }
 0x2a7   :  { %1599 = vmatpush.msrb.mxu1 %v5472_v6  ;;  %1619 = vmatpush.msrb.mxu2 %v5474_v8  ;;  %v7459_v6 = vld [vmem:[#allocation40_spill] sm:$0xff]  ;;  %v7460_v8 = vld [vmem:[#allocation27_spill] sm:$0xff] }
 0x2a8   :  { %1639 = vmatpush.msra.mxu3 %v5476_v18 }
 0x2a9   :  { %1600 = vmatpush.msrb.mxu1 %v5481_v25  ;;  %1620 = vmatpush.msrb.mxu2 %v7451_v19 }
 0x2aa   :  { %1640 = vmatpush.msra.mxu3 %v7452_v32 }
 0x2ab   :  { %1601 = vmatpush.msrb.mxu1 %v7453_v28  ;;  %1621 = vmatpush.msrb.mxu2 %v5492_v60 }
 0x2ac   :  { %1641 = vmatpush.msra.mxu3 %v7454_v50 }
 0x2ad   :  { %1602 = vmatpush.msrb.mxu1 %v5499_v16  ;;  %1622 = vmatpush.msrb.mxu2 %v5501_v31 }
 0x2ae   :  { %1642 = vmatpush.msra.mxu3 %v5503_v61 }
 0x2af   :  { %1603 = vmatpush.msrb.mxu1 %v5508_v13  ;;  %1623 = vmatpush.msrb.mxu2 %v5510_v35  ;;  %v7461_v35 = vld [vmem:[#allocation45_spill] sm:$0xff] }
 0x2b0   :  { %1643 = vmatpush.msra.mxu3 %v5512_v22  ;;  %v7462_v22 = vld [vmem:[#allocation31_spill] sm:$0xff] }
 0x2b1   :  { %1604 = vmatpush.msrb.mxu1 %v5521_v4  ;;  %1624 = vmatpush.msrb.mxu2 %v5523_v29  ;;  %v331_v4 = vadd.f32 %v7462_v22, %v7461_v35 }
 0x2b2   :  { %1644 = vmatpush.msra.mxu3 %v5525_v52 }
 0x2b3   :  { %1605 = vmatpush.msrb.mxu1 %v5530_v62  ;;  %1625 = vmatpush.msrb.mxu2 %v5532_v11 }
 0x2b4   :  { %1645 = vmatpush.msra.mxu3 %v5534_v5 }
 0x2b5   :  { %1606 = vmatpush.msrb.mxu1 %v5539_v30  ;;  %1626 = vmatpush.msrb.mxu2 %v5541_v41 }
 0x2b6   :  { %1646 = vmatpush.msra.mxu3 %v5543_v38 }
 0x2b7   :  { %1607 = vmatpush.msrb.mxu1 %v5550_v15  ;;  %1627 = vmatpush.msrb.mxu2 %v5552_v23 }
 0x2b8   :  { %1647 = vmatpush.msra.mxu3 %v5554_v26  ;;  %v7456_v26 = vld [vmem:[#allocation25_spill] sm:$0xff] }
 0x2b9   :  { %1608 = vmatpush.msrb.mxu1 %v5559_v53  ;;  %1628 = vmatpush.msrb.mxu2 %v5561_v10  ;;  %v249_v20 = vadd.f32 %v7456_v26, %v7455_v17  ;;  %v7457_v53 = vld [vmem:[#allocation42_spill] sm:$0xff] }
 0x2ba   :  { %1648 = vmatpush.msra.mxu3 %v5563_v48  ;;  %v290_v54 = vadd.f32 %v7458_v43, %v7457_v53 }
 0x2bb   :  { %1609 = vmatpush.msrb.mxu1 %v5568_v56  ;;  %1629 = vmatpush.msrb.mxu2 %v5570_v36 }
 0x2bc   :  { %1649 = vmatpush.msra.mxu3 %v5572_v42 }
 0x2bd   :  { %1610 = vmatpush.msrb.mxu1 %v5576_v49  ;;  %1630 = vmatpush.msrb.mxu2 %v5578_v55  ;;  %v372_v49 = vadd.f32 %v7460_v8, %v7459_v6  ;;  %v5757_v8 = vld [vmem:[#allocation9 + $0xe0] sm:$0xff] }
 0x2be   :  { %1650 = vmatpush.msra.mxu3 %v5580_v46 }
 0x31a   :  { %v1156_v58 = vpop.f32.mrf.mxu0  ;;  %v1176_v3 = vpop.f32.mrf.mxu1 }
 0x31b   :  { %v1219_v9 = vadd.f32 %v1156_v58, %v249_v20  ;;  %v1220_v56 = vadd.f32 %v1176_v3, %v290_v54  ;;  %v5736_v54 = vld [vmem:[#allocation9 + $0x1c0] sm:$0xff] }
 0x31c   :  { %v5739_v58 = vld [vmem:[#allocation9 + $0x1a0] sm:$0xff] }
 0x31d   :  { %v4276_v51 = vmul.f32 -1.442695, %v1219_v9  ;;  %v4277_v36 = vmul.f32 -1.442695, %v1220_v56  ;;  %v5742_v3 = vld [vmem:[#allocation9 + $0x180] sm:$0xff] }
 0x31e   :  { %v5745_v9 = vld [vmem:[#allocation9 + $0x160] sm:$0xff] }
 0x31f   :  { %4393 = vpow2.f32 %v4276_v51  ;;  %v5748_v56 = vld [vmem:[#allocation9 + $0x140] sm:$0xff] }
 0x320   :  { %4395 = vpow2.f32 %v4277_v36  ;;  %v5751_v51 = vld [vmem:[#allocation9 + $0x120] sm:$0xff] }
 0x321   :  { %v1216_v55 = vpop.f32.mrf.mxu3  ;;  %v1196_v61 = vpop.f32.mrf.mxu2  ;;  %v5754_v36 = vld [vmem:[#allocation9 + $0x100] sm:$0xff] }
 0x322   :  { %v1222_v18 = vadd.f32 %v1216_v55, %v372_v49  ;;  %v1221_v62 = vadd.f32 %v1196_v61, %v331_v4  ;;  %v7463_v49 = vld [vmem:[#allocation22_spill] sm:$0xff] }
 0x323   :  { %v252_v55 = vadd.f32 %v7463_v49, %v7455_v17 }
 0x324   :  { %v4278_v46 = vmul.f32 -1.442695, %v1222_v18  ;;  %v7464_v18 = vld [vmem:[#allocation32_spill] sm:$0xff] }
 0x325   :  { %v4394_v25 = vpop.eup %4393 }
 0x326   :  { %v4396_v60 = vpop.eup %4395  ;;  %v1226_v16 = vadd.f32 1.0, %v4394_v25  ;;  %4397 = vpow2.f32 %v4278_v46  ;;  %v293_v46 = vadd.f32 %v7464_v18, %v7457_v53 }
 0x327   :  { %v1245_v31 = vadd.f32 1.0, %v4396_v60 }
 0x328   :  { %4399 = vrcp.f32 %v1226_v16  ;;  %v1238_v15 = vand.u32 2147483648, %v1226_v16  ;;  %v1236_v48 = vand.u32 2147483647, %v1226_v16  ;;  %vm1232_vm6 = vweird.f32 %v1226_v16 }
 0x329   :  { %4401 = vrcp.f32 %v1245_v31  ;;  %v1257_v23 = vand.u32 2147483648, %v1245_v31  ;;  %v1255_v37 = vand.u32 2147483647, %v1245_v31  ;;  %vm1251_vm7 = vweird.f32 %v1245_v31 }
 0x32a   :  { %v1239_v2 = vor.u32 1.1754944e-38, %v1238_v15  ;;  %vm1237_vm10 = vcmp.eq.f32.partialorder %v1236_v48, 8.507059e+37  ;;  %v5781_v15 = vld [vmem:[#allocation9 + $0x20] sm:$0xff] }
 0x32b   :  { %v1258_v14 = vor.u32 1.1754944e-38, %v1257_v23  ;;  %vm1256_vm11 = vcmp.eq.f32.partialorder %v1255_v37, 8.507059e+37 }
 0x32c   :  { %v4398_v13 = vpop.eup %4397 }
 0x32d   :  { %v1265_v29 = vadd.f32 1.0, %v4398_v13  ;;  %v5767_v13 = vld [vmem:[#allocation9 + $0xa0] sm:$0xff] }
 0x32e   :  { %v4400_v52 = vpop.eup %4399 }
 0x32f   :  { %v4402_v11 = vpop.eup %4401  ;;  %v1228_v5 = vmul.f32 %v4400_v52, %v1226_v16  ;;  %4403 = vrcp.f32 %v1265_v29  ;;  %vm1233_vm4 = vweird.f32 %v4400_v52  ;;  %v1277_v19 = vand.u32 2147483648, %v1265_v29  ;;  %v5764_v16 = vld [vmem:[#allocation9 + $0xc0] sm:$0xff] }
 0x330   :  { %v1247_v30 = vmul.f32 %v4402_v11, %v1245_v31  ;;  %4405 = vtanh.f32 %v1221_v62  ;;  %vm1252_vm5 = vweird.f32 %v4402_v11  ;;  %vm1234_vm8 = vmor %vm1232_vm6, %vm1233_vm4  ;;  %vm1271_vm13 = vweird.f32 %v1265_v29 }
 0x331   :  { %v1229_v41 = vsub.f32 1.0, %v1228_v5  ;;  %vm1253_vm9 = vmor %vm1251_vm7, %vm1252_vm5  ;;  %v1275_v32 = vand.u32 2147483647, %v1265_v29  ;;  %v1278_v50 = vor.u32 1.1754944e-38, %v1277_v19 }
 0x332   :  { %v1248_v38 = vsub.f32 1.0, %v1247_v30 }
 0x333   :  { %v1230_v10 = vmul.f32 %v4400_v52, %v1229_v41  ;;  %vm1276_vm15 = vcmp.eq.f32.partialorder %v1275_v32, 8.507059e+37  ;;  %v5778_v41 = vld [vmem:[#allocation9 + $0x40] sm:$0xff] }
 0x334   :  { %v1249_v42 = vmul.f32 %v4402_v11, %v1248_v38 }
 0x335   :  { %v4404_v24 = vpop.eup %4403  ;;  %v1231_v57 = vadd.f32 %v4400_v52, %v1230_v10  ;;  %v5784_v10 = vld [vmem:[#allocation9] sm:$0xff] }
 0x336   :  { %v1250_v33 = vadd.f32 %v4402_v11, %v1249_v42  ;;  %v1267_v1 = vmul.f32 %v4404_v24, %v1265_v29  ;;  %v4406_v39 = vpop.eup %4405  ;;  %vm1272_vm12 = vweird.f32 %v4404_v24  ;;  %v5770_v29 = vld [vmem:[#allocation9 + $0x80] sm:$0xff] }
 0x337   :  { %v1235_v12 = vsel %vm1234_vm8, %v4400_v52, %v1231_v57  ;;  %vm1273_vm14 = vmor %vm1271_vm13, %vm1272_vm12  ;;  %v7465_v52 = vld [vmem:[#allocation28_spill] sm:$0xff] }
 0x338   :  { %v1240_v40 = vsel %vm1237_vm10, %v1239_v2, %v1235_v12  ;;  %v1254_v7 = vsel %vm1253_vm9, %v4402_v11, %v1250_v33  ;;  %v1268_v45 = vsub.f32 1.0, %v1267_v1  ;;  %v375_v62 = vadd.f32 %v7465_v52, %v7459_v6  ;;  %v5775_v11 = vld [vmem:[#allocation9 + $0x60] sm:$0xff] }
 0x339   :  { %v1259_v21 = vsel %vm1256_vm11, %v1258_v14, %v1254_v7  ;;  %v1282_v63 = vmul.f32 %v4406_v39, %v1240_v40  ;;  %v7466_v2 = vld [vmem:[#allocation35_spill] sm:$0xff] }
 0x33a   :  { %v1281_v0 = vmul.f32 %v1259_v21, %v5637_v47  ;;  %v1269_v34 = vmul.f32 %v4404_v24, %v1268_v45  ;;  %v5733_v47 = vld [vmem:[#allocation9 + $0x1e0] sm:$0xff]  ;;  %v334_v33 = vadd.f32 %v7466_v2, %v7461_v35  ;;  %v5885_v2 = vld [vmem:[#allocation9 + $0x128] sm:$0xff] }
 0x33b   :  { %1575 = vmatpush.msrb.mxu0 %v5733_v47 }
 0x33c   :  { %v5724_v44 = vadd.f32 %v1282_v63, %v1281_v0  ;;  %v1270_v59 = vadd.f32 %v4404_v24, %v1269_v34 }
 0x33d   :  { %1576 = vmatpush.msrb.mxu0 %v5736_v54 }
 0x33e   :  { %4407 = vtanh.f32 %v5724_v44  ;;  %v1274_v28 = vsel %vm1273_vm14, %v4404_v24, %v1270_v59 }
 0x33f   :  { %v1279_v20 = vsel %vm1276_vm15, %v1278_v50, %v1274_v28  ;;  %1577 = vmatpush.msrb.mxu0 %v5739_v58 }
 0x341   :  { %1578 = vmatpush.msrb.mxu0 %v5742_v3 }
 0x343   :  { %1579 = vmatpush.msrb.mxu0 %v5745_v9 }
 0x344   :  { %v4408_v26 = vpop.eup %4407 }
 0x345   :  { %v5727_v43 = vmul.f32 %v4408_v26, %v1279_v20  ;;  %1580 = vmatpush.msrb.mxu0 %v5748_v56 }
 0x347   :  { %1373 = vmatmul.f32.vlgmr.msra.gmra.mxu0 %v5727_v43  ;;  %1393 = vmatmul.f32.vlgmr.msra.gmra.mxu1 %v5727_v43 }
 0x348   :  { %1413 = vmatmul.f32.vlgmr.msra.gmra.mxu2 %v5727_v43  ;;  %1433 = vmatmul.f32.vlgmr.msrb.gmra.mxu3 %v5727_v43 }
 0x349   :  { %1581 = vmatpush.msrb.mxu0 %v5751_v51 }
 0x34b   :  { %1582 = vmatpush.msrb.mxu0 %v5754_v36 }
 0x34d   :  { %1583 = vmatpush.msrb.mxu0 %v5757_v8 }
 0x34f   :  { %1584 = vmatpush.msrb.mxu0 %v5764_v16 }
 0x351   :  { %1585 = vmatpush.msrb.mxu0 %v5767_v13 }
 0x353   :  { %1586 = vmatpush.msrb.mxu0 %v5770_v29 }
 0x355   :  { %1587 = vmatpush.msrb.mxu0 %v5775_v11 }
 0x357   :  { %1588 = vmatpush.msrb.mxu0 %v5778_v41 }
 0x359   :  { %1589 = vmatpush.msrb.mxu0 %v5781_v15 }
 0x35b   :  { %1590 = vmatpush.msrb.mxu0 %v5784_v10 }
 0x35d   :  { %1793 = vmatpush.msra.mxu0 %v5733_v47 }
 0x35f   :  { %1794 = vmatpush.msra.mxu0 %v5736_v54 }
 0x361   :  { %1795 = vmatpush.msra.mxu0 %v5739_v58 }
 0x363   :  { %1796 = vmatpush.msra.mxu0 %v5742_v3 }
 0x365   :  { %1797 = vmatpush.msra.mxu0 %v5745_v9 }
 0x367   :  { %1798 = vmatpush.msra.mxu0 %v5748_v56 }
 0x369   :  { %1799 = vmatpush.msra.mxu0 %v5751_v51 }
 0x36b   :  { %1800 = vmatpush.msra.mxu0 %v5754_v36 }
 0x36d   :  { %1801 = vmatpush.msra.mxu0 %v5757_v8 }
 0x36f   :  { %1802 = vmatpush.msra.mxu0 %v5764_v16 }
 0x371   :  { %1803 = vmatpush.msra.mxu0 %v5767_v13 }
 0x373   :  { %1804 = vmatpush.msra.mxu0 %v5770_v29 }
 0x375   :  { %1805 = vmatpush.msra.mxu0 %v5775_v11 }
 0x377   :  { %1806 = vmatpush.msra.mxu0 %v5778_v41 }
 0x379   :  { %1807 = vmatpush.msra.mxu0 %v5781_v15 }
 0x37b   :  { %1808 = vmatpush.msra.mxu0 %v5784_v10 }
 0x3c4   :  { %v1374_v25 = vpop.f32.mrf.mxu0  ;;  %v1394_v60 = vpop.f32.mrf.mxu1 }
 0x3c5   :  { %v1437_v31 = vadd.f32 %v1374_v25, %v252_v55  ;;  %v1438_v61 = vadd.f32 %v1394_v60, %v293_v46 }
 0x3c7   :  { %v4279_v22 = vmul.f32 -1.442695, %v1437_v31  ;;  %v4280_v4 = vmul.f32 -1.442695, %v1438_v61 }
 0x3c9   :  { %4409 = vpow2.f32 %v4279_v22 }
 0x3ca   :  { %4411 = vpow2.f32 %v4280_v4 }
 0x3cb   :  { %v1434_v5 = vpop.f32.mrf.mxu3  ;;  %v1414_v24 = vpop.f32.mrf.mxu2 }
 0x3cc   :  { %v1440_v30 = vadd.f32 %v1434_v5, %v375_v62  ;;  %v1439_v12 = vadd.f32 %v1414_v24, %v334_v33  ;;  %v5878_v24 = vld [vmem:[#allocation9 + $0x150] sm:$0xff] }
 0x3cd   :  { %v5887_v33 = vld [vmem:[#allocation9 + $0x130] sm:$0xff] }
 0x3ce   :  { %v4281_v38 = vmul.f32 -1.442695, %v1440_v30 }
 0x3cf   :  { %v4410_v23 = vpop.eup %4409 }
 0x3d0   :  { %v4412_v48 = vpop.eup %4411  ;;  %v1444_v42 = vadd.f32 1.0, %v4410_v23  ;;  %4413 = vpow2.f32 %v4281_v38 }
 0x3d1   :  { %v1463_v37 = vadd.f32 1.0, %v4412_v48 }
 0x3d2   :  { %4415 = vrcp.f32 %v1444_v42  ;;  %v1456_v63 = vand.u32 2147483648, %v1444_v42  ;;  %v1454_v59 = vand.u32 2147483647, %v1444_v42  ;;  %vm1450_vm2 = vweird.f32 %v1444_v42 }
 0x3d3   :  { %4417 = vrcp.f32 %v1463_v37  ;;  %v1475_v0 = vand.u32 2147483648, %v1463_v37  ;;  %v1473_v32 = vand.u32 2147483647, %v1463_v37  ;;  %vm1469_vm3 = vweird.f32 %v1463_v37 }
 0x3d4   :  { %v1457_v26 = vor.u32 1.1754944e-38, %v1456_v63  ;;  %vm1455_vm6 = vcmp.eq.f32.partialorder %v1454_v59, 8.507059e+37 }
 0x3d5   :  { %v1476_v55 = vor.u32 1.1754944e-38, %v1475_v0  ;;  %vm1474_vm7 = vcmp.eq.f32.partialorder %v1473_v32, 8.507059e+37  ;;  %v7468_v0 = vld [vmem:[#allocation36_spill] sm:$0xff] }
 0x3d6   :  { %v4414_v57 = vpop.eup %4413  ;;  %v5916_v32 = vld [vmem:[#allocation9 + $0xc8] sm:$0xff] }
 0x3d7   :  { %v1483_v1 = vadd.f32 1.0, %v4414_v57  ;;  %v5880_v57 = vld [vmem:[#allocation9 + $0x158] sm:$0xff] }
 0x3d8   :  { %v4416_v14 = vpop.eup %4415 }
 0x3d9   :  { %v4418_v39 = vpop.eup %4417  ;;  %v1446_v40 = vmul.f32 %v4416_v14, %v1444_v42  ;;  %4419 = vrcp.f32 %v1483_v1  ;;  %vm1451_vm0 = vweird.f32 %v4416_v14  ;;  %v1495_v30 = vand.u32 2147483648, %v1483_v1 }
 0x3da   :  { %v1465_v7 = vmul.f32 %v4418_v39, %v1463_v37  ;;  %4421 = vtanh.f32 %v1439_v12  ;;  %vm1470_vm1 = vweird.f32 %v4418_v39  ;;  %vm1452_vm4 = vmor %vm1450_vm2, %vm1451_vm0  ;;  %vm1489_vm9 = vweird.f32 %v1483_v1  ;;  %v5896_v12 = vld [vmem:[#allocation9 + $0x110] sm:$0xff] }
 0x3db   :  { %v1447_v45 = vsub.f32 1.0, %v1446_v40  ;;  %vm1471_vm5 = vmor %vm1469_vm3, %vm1470_vm1  ;;  %v1493_v38 = vand.u32 2147483647, %v1483_v1  ;;  %v1496_v23 = vor.u32 1.1754944e-38, %v1495_v30  ;;  %v5903_v40 = vld [vmem:[#allocation9 + $0xe8] sm:$0xff]  ;;  %v5949_v30 = vld [vmem:[#allocation9 + $0x78] sm:$0xff] }
 0x3dc   :  { %v1466_v21 = vsub.f32 1.0, %v1465_v7  ;;  %v5905_v7 = vld [vmem:[#allocation9 + $0xf0] sm:$0xff] }
 0x3dd   :  { %v1448_v34 = vmul.f32 %v4416_v14, %v1447_v45  ;;  %vm1494_vm11 = vcmp.eq.f32.partialorder %v1493_v38, 8.507059e+37  ;;  %v5907_v45 = vld [vmem:[#allocation9 + $0xf8] sm:$0xff] }
 0x3de   :  { %v1467_v19 = vmul.f32 %v4418_v39, %v1466_v21  ;;  %v7467_v21 = vld [vmem:[#allocation23_spill] sm:$0xff] }
 0x3df   :  { %v4420_v28 = vpop.eup %4419  ;;  %v1449_v50 = vadd.f32 %v4416_v14, %v1448_v34  ;;  %v255_v63 = vadd.f32 %v7467_v21, %v7455_v17  ;;  %v296_v34 = vadd.f32 %v7468_v0, %v7457_v53  ;;  %v5965_v0 = vld [vmem:[#allocation9 + $0x30] sm:$0xff] }
 0x3e0   :  { %v1468_v20 = vadd.f32 %v4418_v39, %v1467_v19  ;;  %v1485_v49 = vmul.f32 %v4420_v28, %v1483_v1  ;;  %v4422_v46 = vpop.eup %4421  ;;  %vm1490_vm8 = vweird.f32 %v4420_v28  ;;  %v5889_v1 = vld [vmem:[#allocation9 + $0x138] sm:$0xff] }
 0x3e1   :  { %v1453_v18 = vsel %vm1452_vm4, %v4416_v14, %v1449_v50  ;;  %vm1491_vm10 = vmor %vm1489_vm9, %vm1490_vm8  ;;  %v5894_v14 = vld [vmem:[#allocation9 + $0x108] sm:$0xff]  ;;  %v5920_v50 = vld [vmem:[#allocation9 + $0xd8] sm:$0xff] }
 0x3e2   :  { %v1458_v25 = vsel %vm1455_vm6, %v1457_v26, %v1453_v18  ;;  %v1472_v60 = vsel %vm1471_vm5, %v4418_v39, %v1468_v20  ;;  %v1486_v31 = vsub.f32 1.0, %v1485_v49  ;;  %v5898_v39 = vld [vmem:[#allocation9 + $0x118] sm:$0xff]  ;;  %v5925_v49 = vld [vmem:[#allocation9 + $0xa8] sm:$0xff] }
 0x3e3   :  { %v1477_v61 = vsel %vm1474_vm7, %v1476_v55, %v1472_v60  ;;  %v1500_v22 = vmul.f32 %v4422_v46, %v1458_v25  ;;  %v5927_v55 = vld [vmem:[#allocation9 + $0xb0] sm:$0xff]  ;;  %v5929_v18 = vld [vmem:[#allocation9 + $0xb8] sm:$0xff]  ;;  %v5934_v60 = vld [vmem:[#allocation9 + $0x88] sm:$0xff] }
 0x3e4   :  { %v1499_v4 = vmul.f32 %v1477_v61, %v5724_v44  ;;  %v1487_v52 = vmul.f32 %v4420_v28, %v1486_v31  ;;  %v5936_v31 = vld [vmem:[#allocation9 + $0x90] sm:$0xff]  ;;  %v5938_v61 = vld [vmem:[#allocation9 + $0x98] sm:$0xff] }
 0x3e6   :  { %v5800_v62 = vadd.f32 %v1500_v22, %v1499_v4  ;;  %v1488_v5 = vadd.f32 %v4420_v28, %v1487_v52  ;;  %v7469_v22 = vld [vmem:[#allocation29_spill] sm:$0xff]  ;;  %v5945_v52 = vld [vmem:[#allocation9 + $0x68] sm:$0xff] }
 0x3e7   :  { %v378_v4 = vadd.f32 %v7469_v22, %v7459_v6 }
 0x3e8   :  { %4423 = vtanh.f32 %v5800_v62  ;;  %v1492_v44 = vsel %vm1491_vm10, %v4420_v28, %v1488_v5  ;;  %v5918_v28 = vld [vmem:[#allocation9 + $0xd0] sm:$0xff] }
 0x3e9   :  { %v1497_v42 = vsel %vm1494_vm11, %v1496_v23, %v1492_v44  ;;  %v5947_v5 = vld [vmem:[#allocation9 + $0x70] sm:$0xff]  ;;  %v5954_v23 = vld [vmem:[#allocation9 + $0x48] sm:$0xff] }
 0x3ee   :  { %v4424_v48 = vpop.eup %4423 }
 0x3ef   :  { %v5808_v37 = vmul.f32 %v4424_v48, %v1497_v42  ;;  %v5956_v48 = vld [vmem:[#allocation9 + $0x50] sm:$0xff]  ;;  %v5958_v42 = vld [vmem:[#allocation9 + $0x58] sm:$0xff] }
 0x3f1   :  { %1591 = vmatmul.f32.vlgmr.msrb.gmra.mxu0 %v5808_v37  ;;  %1611 = vmatmul.f32.vlgmr.msrb.gmra.mxu1 %v5808_v37 }
 0x3f2   :  { %1631 = vmatmul.f32.vlgmr.msrb.gmra.mxu2 %v5808_v37  ;;  %1651 = vmatmul.f32.vlgmr.msra.gmra.mxu3 %v5808_v37 }
 0x3f3   :  { %2011 = vmatpush.msrb.mxu0 %v5733_v47  ;;  %v5831_v47 = vld [vmem:[#allocation9 + $0x1e8] sm:$0xff] }
 0x3f4   :  { %1813 = vmatpush.msra.mxu1 %v5831_v47 }
 0x3f5   :  { %2012 = vmatpush.msrb.mxu0 %v5736_v54  ;;  %v5833_v54 = vld [vmem:[#allocation9 + $0x1f0] sm:$0xff] }
 0x3f6   :  { %1833 = vmatpush.msra.mxu2 %v5833_v54 }
 0x3f7   :  { %2013 = vmatpush.msrb.mxu0 %v5739_v58  ;;  %v5835_v58 = vld [vmem:[#allocation9 + $0x1f8] sm:$0xff] }
 0x3f8   :  { %1853 = vmatpush.msrb.mxu3 %v5835_v58 }
 0x3f9   :  { %2014 = vmatpush.msrb.mxu0 %v5742_v3  ;;  %v5840_v3 = vld [vmem:[#allocation9 + $0x1c8] sm:$0xff] }
 0x3fa   :  { %1814 = vmatpush.msra.mxu1 %v5840_v3 }
 0x3fb   :  { %2015 = vmatpush.msrb.mxu0 %v5745_v9  ;;  %v5842_v9 = vld [vmem:[#allocation9 + $0x1d0] sm:$0xff] }
 0x3fc   :  { %1834 = vmatpush.msra.mxu2 %v5842_v9 }
 0x3fd   :  { %2016 = vmatpush.msrb.mxu0 %v5748_v56  ;;  %v5844_v56 = vld [vmem:[#allocation9 + $0x1d8] sm:$0xff] }
 0x3fe   :  { %1854 = vmatpush.msrb.mxu3 %v5844_v56 }
 0x3ff   :  { %2017 = vmatpush.msrb.mxu0 %v5751_v51  ;;  %v5849_v51 = vld [vmem:[#allocation9 + $0x1a8] sm:$0xff] }
 0x400   :  { %1815 = vmatpush.msra.mxu1 %v5849_v51 }
 0x401   :  { %2018 = vmatpush.msrb.mxu0 %v5754_v36  ;;  %v5851_v36 = vld [vmem:[#allocation9 + $0x1b0] sm:$0xff] }
 0x402   :  { %1835 = vmatpush.msra.mxu2 %v5851_v36 }
 0x403   :  { %2019 = vmatpush.msrb.mxu0 %v5757_v8  ;;  %v5853_v8 = vld [vmem:[#allocation9 + $0x1b8] sm:$0xff] }
 0x404   :  { %1855 = vmatpush.msrb.mxu3 %v5853_v8 }
 0x405   :  { %2020 = vmatpush.msrb.mxu0 %v5764_v16  ;;  %v5858_v16 = vld [vmem:[#allocation9 + $0x188] sm:$0xff] }
 0x406   :  { %1816 = vmatpush.msra.mxu1 %v5858_v16 }
 0x407   :  { %2021 = vmatpush.msrb.mxu0 %v5767_v13  ;;  %v5860_v13 = vld [vmem:[#allocation9 + $0x190] sm:$0xff] }
 0x408   :  { %1836 = vmatpush.msra.mxu2 %v5860_v13 }
 0x409   :  { %2022 = vmatpush.msrb.mxu0 %v5770_v29  ;;  %v5862_v29 = vld [vmem:[#allocation9 + $0x198] sm:$0xff] }
 0x40a   :  { %1856 = vmatpush.msrb.mxu3 %v5862_v29 }
 0x40b   :  { %2023 = vmatpush.msrb.mxu0 %v5775_v11  ;;  %v5867_v11 = vld [vmem:[#allocation9 + $0x168] sm:$0xff] }
 0x40c   :  { %1817 = vmatpush.msra.mxu1 %v5867_v11 }
 0x40d   :  { %2024 = vmatpush.msrb.mxu0 %v5778_v41  ;;  %v5869_v41 = vld [vmem:[#allocation9 + $0x170] sm:$0xff] }
 0x40e   :  { %1837 = vmatpush.msra.mxu2 %v5869_v41 }
 0x40f   :  { %2025 = vmatpush.msrb.mxu0 %v5781_v15  ;;  %v5871_v15 = vld [vmem:[#allocation9 + $0x178] sm:$0xff] }
 0x410   :  { %1857 = vmatpush.msrb.mxu3 %v5871_v15  ;;  %1838 = vmatpush.msra.mxu2 %v5878_v24 }
 0x411   :  { %2026 = vmatpush.msrb.mxu0 %v5784_v10  ;;  %v5876_v10 = vld [vmem:[#allocation9 + $0x148] sm:$0xff] }
 0x412   :  { %1818 = vmatpush.msra.mxu1 %v5876_v10  ;;  %1858 = vmatpush.msrb.mxu3 %v5880_v57 }
 0x413   :  { %1839 = vmatpush.msra.mxu2 %v5887_v33 }
 0x414   :  { %1819 = vmatpush.msra.mxu1 %v5885_v2  ;;  %1859 = vmatpush.msrb.mxu3 %v5889_v1 }
 0x415   :  { %1840 = vmatpush.msra.mxu2 %v5896_v12 }
 0x416   :  { %1820 = vmatpush.msra.mxu1 %v5894_v14  ;;  %1860 = vmatpush.msrb.mxu3 %v5898_v39 }
 0x417   :  { %1841 = vmatpush.msra.mxu2 %v5905_v7 }
 0x418   :  { %1821 = vmatpush.msra.mxu1 %v5903_v40  ;;  %1861 = vmatpush.msrb.mxu3 %v5907_v45 }
 0x419   :  { %1842 = vmatpush.msra.mxu2 %v5918_v28 }
 0x41a   :  { %1822 = vmatpush.msra.mxu1 %v5916_v32  ;;  %1862 = vmatpush.msrb.mxu3 %v5920_v50 }
 0x41b   :  { %1843 = vmatpush.msra.mxu2 %v5927_v55 }
 0x41c   :  { %1823 = vmatpush.msra.mxu1 %v5925_v49  ;;  %1863 = vmatpush.msrb.mxu3 %v5929_v18 }
 0x41d   :  { %1844 = vmatpush.msra.mxu2 %v5936_v31 }
 0x41e   :  { %1824 = vmatpush.msra.mxu1 %v5934_v60  ;;  %1864 = vmatpush.msrb.mxu3 %v5938_v61 }
 0x41f   :  { %1845 = vmatpush.msra.mxu2 %v5947_v5 }
 0x420   :  { %1825 = vmatpush.msra.mxu1 %v5945_v52  ;;  %1865 = vmatpush.msrb.mxu3 %v5949_v30 }
 0x421   :  { %1846 = vmatpush.msra.mxu2 %v5956_v48 }
 0x422   :  { %1826 = vmatpush.msra.mxu1 %v5954_v23  ;;  %1866 = vmatpush.msrb.mxu3 %v5958_v42 }
 0x423   :  { %1847 = vmatpush.msra.mxu2 %v5965_v0 }
 0x46e   :  { %v1592_v59 = vpop.f32.mrf.mxu0  ;;  %v1612_v19 = vpop.f32.mrf.mxu1 }
 0x46f   :  { %v1655_v26 = vadd.f32 %v1592_v59, %v255_v63  ;;  %v1656_v20 = vadd.f32 %v1612_v19, %v296_v34  ;;  %v5963_v63 = vld [vmem:[#allocation9 + $0x28] sm:$0xff]  ;;  %v5967_v34 = vld [vmem:[#allocation9 + $0x38] sm:$0xff] }
 0x470   :  { %1827 = vmatpush.msra.mxu1 %v5963_v63  ;;  %v5971_v19 = vld [vmem:[#allocation9 + $0x8] sm:$0xff]  ;;  %1867 = vmatpush.msrb.mxu3 %v5967_v34 }
 0x471   :  { %v4282_v46 = vmul.f32 -1.442695, %v1655_v26  ;;  %v4283_v25 = vmul.f32 -1.442695, %v1656_v20  ;;  %v5973_v26 = vld [vmem:[#allocation9 + $0x10] sm:$0xff]  ;;  %v5975_v20 = vld [vmem:[#allocation9 + $0x18] sm:$0xff] }
 0x472   :  { %1828 = vmatpush.msra.mxu1 %v5971_v19  ;;  %1848 = vmatpush.msra.mxu2 %v5973_v26 }
 0x473   :  { %4425 = vpow2.f32 %v4282_v46  ;;  %1868 = vmatpush.msrb.mxu3 %v5975_v20 }
 0x474   :  { %4427 = vpow2.f32 %v4283_v25  ;;  %2031 = vmatpush.msrb.mxu1 %v5831_v47  ;;  %2051 = vmatpush.msrb.mxu2 %v5833_v54 }
 0x475   :  { %v1652_v38 = vpop.f32.mrf.mxu3  ;;  %2071 = vmatpush.msra.mxu3 %v5835_v58 }
 0x476   :  { %v1658_v44 = vadd.f32 %v1652_v38, %v378_v4  ;;  %2032 = vmatpush.msrb.mxu1 %v5840_v3  ;;  %v1632_v4 = vpop.f32.mrf.mxu2  ;;  %2052 = vmatpush.msrb.mxu2 %v5842_v9 }
 0x477   :  { %2072 = vmatpush.msra.mxu3 %v5844_v56 }
 0x478   :  { %v4284_v21 = vmul.f32 -1.442695, %v1658_v44  ;;  %v7470_v44 = vld [vmem:[#allocation39_spill] sm:$0xff]  ;;  %2033 = vmatpush.msrb.mxu1 %v5849_v51  ;;  %2053 = vmatpush.msrb.mxu2 %v5851_v36 }
 0x479   :  { %v4426_v59 = vpop.eup %4425  ;;  %2073 = vmatpush.msra.mxu3 %v5853_v8 }
 0x47a   :  { %v4428_v46 = vpop.eup %4427  ;;  %v5977_v25 = vadd.f32 1.0, %v4426_v59  ;;  %4429 = vpow2.f32 %v4284_v21  ;;  %v337_v21 = vadd.f32 %v7470_v44, %v7461_v35  ;;  %2034 = vmatpush.msrb.mxu1 %v5858_v16  ;;  %2054 = vmatpush.msrb.mxu2 %v5860_v13 }
 0x47b   :  { %v5980_v22 = vadd.f32 1.0, %v4428_v46  ;;  %2074 = vmatpush.msra.mxu3 %v5862_v29 }
 0x47c   :  { %4431 = vrcp.f32 %v5977_v25  ;;  %v1657_v58 = vadd.f32 %v1632_v4, %v337_v21  ;;  %2035 = vmatpush.msrb.mxu1 %v5867_v11  ;;  %2055 = vmatpush.msrb.mxu2 %v5869_v41  ;;  %v1674_v8 = vand.u32 2147483648, %v5977_v25  ;;  %v1672_v29 = vand.u32 2147483647, %v5977_v25  ;;  %v2214_v21 = vld [vmem:[#allocation12 + $0x170] sm:$0xff] }
 0x47d   :  { %4433 = vrcp.f32 %v5980_v22  ;;  %2075 = vmatpush.msra.mxu3 %v5871_v15  ;;  %v1693_v16 = vand.u32 2147483648, %v5980_v22  ;;  %v1691_v41 = vand.u32 2147483647, %v5980_v22  ;;  %vm1668_vm14 = vweird.f32 %v5977_v25 }
 0x47e   :  { %2036 = vmatpush.msrb.mxu1 %v5876_v10  ;;  %2056 = vmatpush.msrb.mxu2 %v5878_v24  ;;  %vm1687_vm15 = vweird.f32 %v5980_v22  ;;  %v1675_v10 = vor.u32 1.1754944e-38, %v1674_v8  ;;  %vm1673_vm2 = vcmp.eq.f32.partialorder %v1672_v29, 8.507059e+37  ;;  %v2209_v8 = vld [vmem:[#allocation12 + $0x148] sm:$0xff] }
 0x47f   :  { %2076 = vmatpush.msra.mxu3 %v5880_v57  ;;  %v1694_v46 = vor.u32 1.1754944e-38, %v1693_v16  ;;  %vm1692_vm3 = vcmp.eq.f32.partialorder %v1691_v41, 8.507059e+37  ;;  %v2210_v16 = vld [vmem:[#allocation12 + $0x150] sm:$0xff]  ;;  %v2204_v41 = vld [vmem:[#allocation12 + $0x120] sm:$0xff] }
 0x480   :  { %v4430_v38 = vpop.eup %4429  ;;  %2037 = vmatpush.msrb.mxu1 %v5885_v2  ;;  %2057 = vmatpush.msrb.mxu2 %v5887_v33 }
 0x481   :  { %v5996_v47 = vadd.f32 1.0, %v4430_v38  ;;  %2077 = vmatpush.msra.mxu3 %v5889_v1 }
 0x482   :  { %v4432_v54 = vpop.eup %4431  ;;  %2038 = vmatpush.msrb.mxu1 %v5894_v14  ;;  %2058 = vmatpush.msrb.mxu2 %v5896_v12 }
 0x483   :  { %v4434_v3 = vpop.eup %4433  ;;  %v1664_v9 = vmul.f32 %v4432_v54, %v5977_v25  ;;  %4435 = vrcp.f32 %v5996_v47  ;;  %vm1669_vm12 = vweird.f32 %v4432_v54  ;;  %2078 = vmatpush.msra.mxu3 %v5898_v39  ;;  %vm1707_vm5 = vweird.f32 %v5996_v47 }
 0x484   :  { %v1683_v56 = vmul.f32 %v4434_v3, %v5980_v22  ;;  %4437 = vtanh.f32 %v1657_v58  ;;  %vm1688_vm13 = vweird.f32 %v4434_v3  ;;  %vm1670_vm0 = vmor %vm1668_vm14, %vm1669_vm12  ;;  %2039 = vmatpush.msrb.mxu1 %v5903_v40  ;;  %2059 = vmatpush.msrb.mxu2 %v5905_v7  ;;  %v1711_v40 = vand.u32 2147483647, %v5996_v47  ;;  %v7472_v58 = vld [vmem:[#allocation38_spill] sm:$0xff] }
 0x485   :  { %v1665_v51 = vsub.f32 1.0, %v1664_v9  ;;  %vm1689_vm1 = vmor %vm1687_vm15, %vm1688_vm13  ;;  %2079 = vmatpush.msra.mxu3 %v5907_v45  ;;  %v2215_v9 = vld [vmem:[#allocation12 + $0x178] sm:$0xff] }
 0x486   :  { %v1684_v36 = vsub.f32 1.0, %v1683_v56  ;;  %2040 = vmatpush.msrb.mxu1 %v5916_v32  ;;  %2060 = vmatpush.msrb.mxu2 %v5918_v28  ;;  %vm1712_vm7 = vcmp.eq.f32.partialorder %v1711_v40, 8.507059e+37  ;;  %v2192_v40 = vld [vmem:[#allocation12 + $0xc0] sm:$0xff] }
 0x487   :  { %v1666_v13 = vmul.f32 %v4432_v54, %v1665_v51  ;;  %2080 = vmatpush.msra.mxu3 %v5920_v50 }
 0x488   :  { %v1685_v11 = vmul.f32 %v4434_v3, %v1684_v36  ;;  %2041 = vmatpush.msrb.mxu1 %v5925_v49  ;;  %2061 = vmatpush.msrb.mxu2 %v5927_v55  ;;  %v2228_v49 = vld [vmem:[#allocation12 + $0x1e0] sm:$0xff]  ;;  %v2229_v55 = vld [vmem:[#allocation12 + $0x1e8] sm:$0xff] }
 0x489   :  { %v4436_v15 = vpop.eup %4435  ;;  %v1667_v59 = vadd.f32 %v4432_v54, %v1666_v13  ;;  %2081 = vmatpush.msra.mxu3 %v5929_v18  ;;  %v2230_v18 = vld [vmem:[#allocation12 + $0x1f0] sm:$0xff]  ;;  %v2208_v36 = vld [vmem:[#allocation12 + $0x140] sm:$0xff] }
 0x48a   :  { %v1686_v24 = vadd.f32 %v4434_v3, %v1685_v11  ;;  %v1703_v57 = vmul.f32 %v4436_v15, %v5996_v47  ;;  %v4438_v33 = vpop.eup %4437  ;;  %vm1708_vm4 = vweird.f32 %v4436_v15  ;;  %2042 = vmatpush.msrb.mxu1 %v5934_v60  ;;  %2062 = vmatpush.msrb.mxu2 %v5936_v31  ;;  %v2231_v60 = vld [vmem:[#allocation12 + $0x1f8] sm:$0xff]  ;;  %v2224_v31 = vld [vmem:[#allocation12 + $0x1c0] sm:$0xff] }
 0x48b   :  { %v1671_v2 = vsel %vm1670_vm0, %v4432_v54, %v1667_v59  ;;  %2082 = vmatpush.msra.mxu3 %v5938_v61  ;;  %vm1709_vm6 = vmor %vm1707_vm5, %vm1708_vm4  ;;  %v2225_v61 = vld [vmem:[#allocation12 + $0x1c8] sm:$0xff]  ;;  %v2211_v11 = vld [vmem:[#allocation12 + $0x158] sm:$0xff] }
 0x48c   :  { %v1676_v25 = vsel %vm1673_vm2, %v1675_v10, %v1671_v2  ;;  %v1690_v1 = vsel %vm1689_vm1, %v4434_v3, %v1686_v24  ;;  %v1704_v22 = vsub.f32 1.0, %v1703_v57  ;;  %2043 = vmatpush.msrb.mxu1 %v5945_v52  ;;  %2063 = vmatpush.msrb.mxu2 %v5947_v5  ;;  %v2226_v52 = vld [vmem:[#allocation12 + $0x1d0] sm:$0xff]  ;;  %v2227_v5 = vld [vmem:[#allocation12 + $0x1d8] sm:$0xff]  ;;  %v299_v3 = vadd.f32 %v7472_v58, %v7457_v53  ;;  %v2201_v2 = vld [vmem:[#allocation12 + $0x108] sm:$0xff] }
 0x48d   :  { %v1695_v4 = vsel %vm1692_vm3, %v1694_v46, %v1690_v1  ;;  %v1718_v38 = vmul.f32 %v4438_v33, %v1676_v25  ;;  %2083 = vmatpush.msra.mxu3 %v5949_v30  ;;  %v2220_v30 = vld [vmem:[#allocation12 + $0x1a0] sm:$0xff]  ;;  %v2206_v59 = vld [vmem:[#allocation12 + $0x130] sm:$0xff]  ;;  %v2207_v57 = vld [vmem:[#allocation12 + $0x138] sm:$0xff] }
 0x48e   :  { %v1717_v14 = vmul.f32 %v1695_v4, %v5800_v62  ;;  %v1705_v44 = vmul.f32 %v4436_v15, %v1704_v22  ;;  %v1713_v62 = vand.u32 2147483648, %v5996_v47  ;;  %2044 = vmatpush.msrb.mxu1 %v5954_v23  ;;  %2064 = vmatpush.msrb.mxu2 %v5956_v48  ;;  %v2221_v23 = vld [vmem:[#allocation12 + $0x1a8] sm:$0xff]  ;;  %v2222_v48 = vld [vmem:[#allocation12 + $0x1b0] sm:$0xff]  ;;  %v2200_v46 = vld [vmem:[#allocation12 + $0x100] sm:$0xff] }
 0x48f   :  { %2084 = vmatpush.msra.mxu3 %v5958_v42  ;;  %v2223_v42 = vld [vmem:[#allocation12 + $0x1b8] sm:$0xff]  ;;  %v7471_v47 = vld [vmem:[#allocation24_spill] sm:$0xff]  ;;  %v2202_v33 = vld [vmem:[#allocation12 + $0x110] sm:$0xff] }
 0x490   :  { %v6032_v12 = vadd.f32 %v1718_v38, %v1717_v14  ;;  %v1706_v39 = vadd.f32 %v4436_v15, %v1705_v44  ;;  %v1714_v45 = vor.u32 1.1754944e-38, %v1713_v62  ;;  %2045 = vmatpush.msrb.mxu1 %v5963_v63  ;;  %2065 = vmatpush.msrb.mxu2 %v5965_v0  ;;  %v2216_v63 = vld [vmem:[#allocation12 + $0x180] sm:$0xff]  ;;  %v2217_v0 = vld [vmem:[#allocation12 + $0x188] sm:$0xff]  ;;  %v258_v54 = vadd.f32 %v7471_v47, %v7455_v17  ;;  %v2203_v25 = vld [vmem:[#allocation12 + $0x118] sm:$0xff] }
 0x491   :  { %2085 = vmatpush.msra.mxu3 %v5967_v34  ;;  %v2218_v34 = vld [vmem:[#allocation12 + $0x190] sm:$0xff]  ;;  %v2196_v4 = vld [vmem:[#allocation12 + $0xe0] sm:$0xff]  ;;  %v2197_v38 = vld [vmem:[#allocation12 + $0xe8] sm:$0xff] }
 0x492   :  { %4439 = vtanh.f32 %v6032_v12  ;;  %v1710_v7 = vsel %vm1709_vm6, %v4436_v15, %v1706_v39  ;;  %2046 = vmatpush.msrb.mxu1 %v5971_v19  ;;  %2066 = vmatpush.msrb.mxu2 %v5973_v26  ;;  %v2219_v19 = vld [vmem:[#allocation12 + $0x198] sm:$0xff]  ;;  %v2212_v26 = vld [vmem:[#allocation12 + $0x160] sm:$0xff]  ;;  %v2205_v15 = vld [vmem:[#allocation12 + $0x128] sm:$0xff] }
 0x493   :  { %v1715_v28 = vsel %vm1712_vm7, %v1714_v45, %v1710_v7  ;;  %2086 = vmatpush.msra.mxu3 %v5975_v20  ;;  %v2213_v20 = vld [vmem:[#allocation12 + $0x168] sm:$0xff]  ;;  %v7473_v1 = vld [vmem:[#allocation33_spill] sm:$0xff]  ;;  %v2199_v39 = vld [vmem:[#allocation12 + $0xf8] sm:$0xff] }
 0x494   :  { %v381_v22 = vadd.f32 %v7473_v1, %v7459_v6  ;;  %v2198_v14 = vld [vmem:[#allocation12 + $0xf0] sm:$0xff]  ;;  %v2193_v7 = vld [vmem:[#allocation12 + $0xc8] sm:$0xff]  ;;  %v2179_v47 = vld [vmem:[#allocation12 + $0x58] sm:$0xff] }
 0x495   :  { %v2194_v45 = vld [vmem:[#allocation12 + $0xd0] sm:$0xff] }
 0x498   :  { %v4440_v32 = vpop.eup %4439 }
 0x499   :  { %v6051_v50 = vmul.f32 %v4440_v32, %v1715_v28  ;;  %v2195_v32 = vld [vmem:[#allocation12 + $0xd8] sm:$0xff] }
 0x49b   :  { %1809 = vmatmul.f32.vlgmr.msra.gmra.mxu0 %v6051_v50  ;;  %1829 = vmatmul.f32.vlgmr.msra.gmra.mxu1 %v6051_v50 }
 0x49c   :  { %1849 = vmatmul.f32.vlgmr.msra.gmra.mxu2 %v6051_v50  ;;  %1869 = vmatmul.f32.vlgmr.msrb.gmra.mxu3 %v6051_v50 }
 0x49d   :  { %2242 = vmatpush.msra.mxu0 %v2228_v49  ;;  %2283 = vmatpush.msra.mxu1 %v2229_v55  ;;  %v2188_v49 = vld [vmem:[#allocation12 + $0xa0] sm:$0xff]  ;;  %v2189_v55 = vld [vmem:[#allocation12 + $0xa8] sm:$0xff] }
 0x49e   :  { %2324 = vmatpush.msra.mxu2 %v2230_v18  ;;  %2365 = vmatpush.msrb.mxu3 %v2231_v60  ;;  %v2190_v18 = vld [vmem:[#allocation12 + $0xb0] sm:$0xff] }
 0x49f   :  { %2243 = vmatpush.msra.mxu0 %v2224_v31  ;;  %2284 = vmatpush.msra.mxu1 %v2225_v61  ;;  %v2191_v31 = vld [vmem:[#allocation12 + $0xb8] sm:$0xff]  ;;  %v2184_v61 = vld [vmem:[#allocation12 + $0x80] sm:$0xff] }
 0x4a0   :  { %2325 = vmatpush.msra.mxu2 %v2226_v52  ;;  %2366 = vmatpush.msrb.mxu3 %v2227_v5  ;;  %v2185_v52 = vld [vmem:[#allocation12 + $0x88] sm:$0xff] }
 0x4a1   :  { %2244 = vmatpush.msra.mxu0 %v2220_v30  ;;  %2285 = vmatpush.msra.mxu1 %v2221_v23  ;;  %v2186_v23 = vld [vmem:[#allocation12 + $0x90] sm:$0xff] }
 0x4a2   :  { %2326 = vmatpush.msra.mxu2 %v2222_v48  ;;  %2367 = vmatpush.msrb.mxu3 %v2223_v42  ;;  %v2187_v48 = vld [vmem:[#allocation12 + $0x98] sm:$0xff] }
 0x4a3   :  { %2245 = vmatpush.msra.mxu0 %v2216_v63  ;;  %2286 = vmatpush.msra.mxu1 %v2217_v0  ;;  %v2180_v63 = vld [vmem:[#allocation12 + $0x60] sm:$0xff]  ;;  %v2181_v0 = vld [vmem:[#allocation12 + $0x68] sm:$0xff] }
 0x4a4   :  { %2327 = vmatpush.msra.mxu2 %v2218_v34  ;;  %2368 = vmatpush.msrb.mxu3 %v2219_v19  ;;  %v2182_v34 = vld [vmem:[#allocation12 + $0x70] sm:$0xff]  ;;  %v2183_v19 = vld [vmem:[#allocation12 + $0x78] sm:$0xff] }
 0x4a5   :  { %2246 = vmatpush.msra.mxu0 %v2212_v26  ;;  %2287 = vmatpush.msra.mxu1 %v2213_v20  ;;  %v2176_v26 = vld [vmem:[#allocation12 + $0x40] sm:$0xff]  ;;  %v2177_v20 = vld [vmem:[#allocation12 + $0x48] sm:$0xff] }
 0x4a6   :  { %2328 = vmatpush.msra.mxu2 %v2214_v21  ;;  %2369 = vmatpush.msrb.mxu3 %v2215_v9  ;;  %v2178_v21 = vld [vmem:[#allocation12 + $0x50] sm:$0xff] }
 0x4a7   :  { %2247 = vmatpush.msra.mxu0 %v2208_v36  ;;  %2288 = vmatpush.msra.mxu1 %v2209_v8  ;;  %v2174_v9 = vld [vmem:[#allocation12 + $0x30] sm:$0xff]  ;;  %v7474_v36 = vld [vmem:[#allocation43_spill] sm:$0xff] }
 0x4a8   :  { %2329 = vmatpush.msra.mxu2 %v2210_v16  ;;  %2370 = vmatpush.msrb.mxu3 %v2211_v11  ;;  %v340_v8 = vadd.f32 %v7474_v36, %v7461_v35  ;;  %v2168_v16 = vld [vmem:[#allocation12] sm:$0xff]  ;;  %v2170_v11 = vld [vmem:[#allocation12 + $0x10] sm:$0xff]  ;;  %v6148_v36 = vld [vmem:[#allocation13 + $0x188] sm:$0xff] }
 0x4a9   :  { %2248 = vmatpush.msra.mxu0 %v2204_v41  ;;  %2289 = vmatpush.msra.mxu1 %v2205_v15  ;;  %v2171_v41 = vld [vmem:[#allocation12 + $0x18] sm:$0xff] }
 0x4aa   :  { %2330 = vmatpush.msra.mxu2 %v2206_v59  ;;  %2371 = vmatpush.msrb.mxu3 %v2207_v57 }
 0x4ab   :  { %2249 = vmatpush.msra.mxu0 %v2200_v46  ;;  %2290 = vmatpush.msra.mxu1 %v2201_v2 }
 0x4ac   :  { %2331 = vmatpush.msra.mxu2 %v2202_v33  ;;  %2372 = vmatpush.msrb.mxu3 %v2203_v25 }
 0x4ad   :  { %2250 = vmatpush.msra.mxu0 %v2196_v4  ;;  %2291 = vmatpush.msra.mxu1 %v2197_v38 }
 0x4ae   :  { %2332 = vmatpush.msra.mxu2 %v2198_v14  ;;  %2373 = vmatpush.msrb.mxu3 %v2199_v39 }
 0x4af   :  { %2251 = vmatpush.msra.mxu0 %v2192_v40  ;;  %2292 = vmatpush.msra.mxu1 %v2193_v7 }
 0x4b0   :  { %2333 = vmatpush.msra.mxu2 %v2194_v45  ;;  %2374 = vmatpush.msrb.mxu3 %v2195_v32 }
 0x4b1   :  { %2252 = vmatpush.msra.mxu0 %v2188_v49  ;;  %2293 = vmatpush.msra.mxu1 %v2189_v55 }
 0x4b2   :  { %2334 = vmatpush.msra.mxu2 %v2190_v18  ;;  %2375 = vmatpush.msrb.mxu3 %v2191_v31 }
 0x4b3   :  { %2253 = vmatpush.msra.mxu0 %v2184_v61  ;;  %2294 = vmatpush.msra.mxu1 %v2185_v52 }
 0x4b4   :  { %2335 = vmatpush.msra.mxu2 %v2186_v23  ;;  %2376 = vmatpush.msrb.mxu3 %v2187_v48 }
 0x4b5   :  { %2254 = vmatpush.msra.mxu0 %v2180_v63  ;;  %2295 = vmatpush.msra.mxu1 %v2181_v0 }
 0x4b6   :  { %2336 = vmatpush.msra.mxu2 %v2182_v34  ;;  %2377 = vmatpush.msrb.mxu3 %v2183_v19  ;;  %v7476_v19 = vld [vmem:[#allocation47_spill] sm:$0xff] }
 0x4b7   :  { %2255 = vmatpush.msra.mxu0 %v2176_v26  ;;  %2296 = vmatpush.msra.mxu1 %v2177_v20  ;;  %v6100_v26 = vld [vmem:[#allocation13 + $0x1e0] sm:$0xff]  ;;  %v6102_v20 = vld [vmem:[#allocation13 + $0x1e8] sm:$0xff] }
 0x4b8   :  { %2337 = vmatpush.msra.mxu2 %v2178_v21  ;;  %2378 = vmatpush.msrb.mxu3 %v2179_v47  ;;  %v6104_v21 = vld [vmem:[#allocation13 + $0x1c0] sm:$0xff]  ;;  %v6108_v47 = vld [vmem:[#allocation13 + $0x1c8] sm:$0xff] }
 0x4ba   :  { %2338 = vmatpush.msra.mxu2 %v2174_v9  ;;  %v6139_v9 = vld [vmem:[#allocation13 + $0x1d0] sm:$0xff] }
 0x4bc   :  { %2339 = vmatpush.msra.mxu2 %v2170_v11  ;;  %v6168_v11 = vld [vmem:[#allocation13 + $0x170] sm:$0xff] }
 0x518   :  { %v1810_v56 = vpop.f32.mrf.mxu0  ;;  %v1830_v51 = vpop.f32.mrf.mxu1 }
 0x519   :  { %v1873_v13 = vadd.f32 %v1810_v56, %v258_v54  ;;  %v1874_v29 = vadd.f32 %v1830_v51, %v299_v3  ;;  %v2172_v54 = vld [vmem:[#allocation12 + $0x20] sm:$0xff]  ;;  %v2173_v3 = vld [vmem:[#allocation12 + $0x28] sm:$0xff]  ;;  %v2175_v56 = vld [vmem:[#allocation12 + $0x38] sm:$0xff] }
 0x51a   :  { %2256 = vmatpush.msra.mxu0 %v2172_v54  ;;  %2297 = vmatpush.msra.mxu1 %v2173_v3  ;;  %v6110_v54 = vld [vmem:[#allocation13 + $0x1f8] sm:$0xff]  ;;  %v6115_v3 = vld [vmem:[#allocation13 + $0x1a8] sm:$0xff] }
 0x51b   :  { %v4285_v10 = vmul.f32 -1.442695, %v1873_v13  ;;  %v4286_v24 = vmul.f32 -1.442695, %v1874_v29  ;;  %v2169_v13 = vld [vmem:[#allocation12 + $0x8] sm:$0xff]  ;;  %2379 = vmatpush.msrb.mxu3 %v2175_v56  ;;  %v6144_v56 = vld [vmem:[#allocation13 + $0x1b0] sm:$0xff] }
 0x51c   :  { %2257 = vmatpush.msra.mxu0 %v2168_v16  ;;  %2298 = vmatpush.msra.mxu1 %v2169_v13  ;;  %v6158_v16 = vld [vmem:[#allocation13 + $0x198] sm:$0xff]  ;;  %v6160_v13 = vld [vmem:[#allocation13 + $0x190] sm:$0xff] }
 0x51d   :  { %4441 = vpow2.f32 %v4285_v10  ;;  %2380 = vmatpush.msrb.mxu3 %v2171_v41  ;;  %v7477_v41 = vld [vmem:[#allocation26_spill] sm:$0xff] }
 0x51e   :  { %4443 = vpow2.f32 %v4286_v24 }
 0x51f   :  { %v1870_v44 = vpop.f32.mrf.mxu3  ;;  %v1850_v58 = vpop.f32.mrf.mxu2 }
 0x520   :  { %v1876_v62 = vadd.f32 %v1870_v44, %v381_v22  ;;  %v1875_v59 = vadd.f32 %v1850_v58, %v340_v8  ;;  %v6113_v58 = vld [vmem:[#allocation13 + $0x1a0] sm:$0xff]  ;;  %v6156_v8 = vld [vmem:[#allocation13 + $0x168] sm:$0xff] }
 0x522   :  { %v4287_v28 = vmul.f32 -1.442695, %v1876_v62 }
 0x523   :  { %v4442_v60 = vpop.eup %4441 }
 0x524   :  { %v4444_v5 = vpop.eup %4443  ;;  %v6068_v30 = vadd.f32 1.0, %v4442_v60  ;;  %4445 = vpow2.f32 %v4287_v28 }
 0x525   :  { %v6070_v42 = vadd.f32 1.0, %v4444_v5 }
 0x526   :  { %4447 = vrcp.f32 %v6068_v30  ;;  %v1892_v33 = vand.u32 2147483648, %v6068_v30  ;;  %v1890_v22 = vand.u32 2147483647, %v6068_v30  ;;  %vm1886_vm10 = vweird.f32 %v6068_v30 }
 0x527   :  { %4449 = vrcp.f32 %v6070_v42  ;;  %v1911_v25 = vand.u32 2147483648, %v6070_v42  ;;  %v1909_v38 = vand.u32 2147483647, %v6070_v42  ;;  %vm1905_vm11 = vweird.f32 %v6070_v42 }
 0x528   :  { %v1893_v39 = vor.u32 1.1754944e-38, %v1892_v33  ;;  %vm1891_vm14 = vcmp.eq.f32.partialorder %v1890_v22, 8.507059e+37 }
 0x529   :  { %v1912_v7 = vor.u32 1.1754944e-38, %v1911_v25  ;;  %vm1910_vm15 = vcmp.eq.f32.partialorder %v1909_v38, 8.507059e+37  ;;  %v6184_v25 = vld [vmem:[#allocation13 + $0x150] sm:$0xff] }
 0x52a   :  { %v4446_v51 = vpop.eup %4445  ;;  %v6196_v38 = vld [vmem:[#allocation13 + $0x130] sm:$0xff] }
 0x52b   :  { %v1919_v29 = vadd.f32 1.0, %v4446_v51  ;;  %v6146_v51 = vld [vmem:[#allocation13 + $0x180] sm:$0xff] }
 0x52c   :  { %v4448_v15 = vpop.eup %4447 }
 0x52d   :  { %v4450_v10 = vpop.eup %4449  ;;  %v1882_v24 = vmul.f32 %v4448_v15, %v6068_v30  ;;  %4451 = vrcp.f32 %v1919_v29  ;;  %vm1887_vm8 = vweird.f32 %v4448_v15  ;;  %v1931_v30 = vand.u32 2147483648, %v1919_v29 }
 0x52e   :  { %v1901_v57 = vmul.f32 %v4450_v10, %v6070_v42  ;;  %4453 = vtanh.f32 %v1875_v59  ;;  %vm1906_vm9 = vweird.f32 %v4450_v10  ;;  %vm1888_vm12 = vmor %vm1886_vm10, %vm1887_vm8  ;;  %vm1925_vm1 = vweird.f32 %v1919_v29  ;;  %v7478_v59 = vld [vmem:[#allocation41_spill] sm:$0xff] }
 0x52f   :  { %v1883_v46 = vsub.f32 1.0, %v1882_v24  ;;  %vm1907_vm13 = vmor %vm1905_vm11, %vm1906_vm9  ;;  %v1929_v23 = vand.u32 2147483647, %v1919_v29  ;;  %v1932_v42 = vor.u32 1.1754944e-38, %v1931_v30  ;;  %v6176_v24 = vld [vmem:[#allocation13 + $0x140] sm:$0xff]  ;;  %v6230_v30 = vld [vmem:[#allocation13 + $0x110] sm:$0xff] }
 0x530   :  { %v1902_v2 = vsub.f32 1.0, %v1901_v57  ;;  %v6178_v57 = vld [vmem:[#allocation13 + $0x148] sm:$0xff] }
 0x531   :  { %v1884_v1 = vmul.f32 %v4448_v15, %v1883_v46  ;;  %vm1930_vm3 = vcmp.eq.f32.partialorder %v1929_v23, 8.507059e+37  ;;  %v6180_v46 = vld [vmem:[#allocation13 + $0x158] sm:$0xff] }
 0x532   :  { %v1903_v4 = vmul.f32 %v4450_v10, %v1902_v2 }
 0x533   :  { %v4452_v14 = vpop.eup %4451  ;;  %v1885_v44 = vadd.f32 %v4448_v15, %v1884_v1 }
 0x534   :  { %v1904_v62 = vadd.f32 %v4450_v10, %v1903_v4  ;;  %v1921_v40 = vmul.f32 %v4452_v14, %v1919_v29  ;;  %v4454_v32 = vpop.eup %4453  ;;  %vm1926_vm0 = vweird.f32 %v4452_v14  ;;  %v6166_v29 = vld [vmem:[#allocation13 + $0x178] sm:$0xff]  ;;  %v6188_v4 = vld [vmem:[#allocation13 + $0x128] sm:$0xff] }
 0x535   :  { %v1889_v45 = vsel %vm1888_vm12, %v4448_v15, %v1885_v44  ;;  %vm1927_vm2 = vmor %vm1925_vm1, %vm1926_vm0  ;;  %v261_v15 = vadd.f32 %v7477_v41, %v7455_v17  ;;  %v6186_v17 = vld [vmem:[#allocation13 + $0x120] sm:$0xff] }
 0x536   :  { %v1894_v28 = vsel %vm1891_vm14, %v1893_v39, %v1889_v45  ;;  %v1908_v49 = vsel %vm1907_vm13, %v4450_v10, %v1904_v62  ;;  %v1922_v55 = vsub.f32 1.0, %v1921_v40  ;;  %v302_v10 = vadd.f32 %v7478_v59, %v7457_v53  ;;  %v6191_v53 = vld [vmem:[#allocation13 + $0x138] sm:$0xff]  ;;  %v6198_v39 = vld [vmem:[#allocation13 + $0x100] sm:$0xff]  ;;  %v6200_v62 = vld [vmem:[#allocation13 + $0x108] sm:$0xff] }
 0x537   :  { %v1913_v18 = vsel %vm1910_vm15, %v1912_v7, %v1908_v49  ;;  %v1936_v60 = vmul.f32 %v4454_v32, %v1894_v28  ;;  %v6206_v40 = vld [vmem:[#allocation13 + $0xe0] sm:$0xff]  ;;  %v6208_v7 = vld [vmem:[#allocation13 + $0xe8] sm:$0xff]  ;;  %v6210_v45 = vld [vmem:[#allocation13 + $0x118] sm:$0xff] }
 0x538   :  { %v1935_v31 = vmul.f32 %v1913_v18, %v6032_v12  ;;  %v1923_v61 = vmul.f32 %v4452_v14, %v1922_v55  ;;  %v7475_v12 = vld [vmem:[#allocation46_spill] sm:$0xff]  ;;  %v6213_v32 = vld [vmem:[#allocation13 + $0xc0] sm:$0xff]  ;;  %v6215_v28 = vld [vmem:[#allocation13 + $0xc8] sm:$0xff] }
 0x539   :  { %v6217_v49 = vld [vmem:[#allocation13 + $0xf8] sm:$0xff]  ;;  %v7479_v55 = vld [vmem:[#allocation37_spill] sm:$0xff]  ;;  %v6252_v41 = vld [vmem:[#allocation13 + $0x60] sm:$0xff] }
 0x53a   :  { %v6085_v52 = vadd.f32 %v1936_v60, %v1935_v31  ;;  %v1924_v5 = vadd.f32 %v4452_v14, %v1923_v61  ;;  %v384_v18 = vadd.f32 %v7479_v55, %v7459_v6  ;;  %v6223_v60 = vld [vmem:[#allocation13 + $0xd8] sm:$0xff]  ;;  %v6226_v61 = vld [vmem:[#allocation13 + $0xa0] sm:$0xff]  ;;  %7482 = vst [vmem:[#allocation50_spill] sm:$0xff] %v6252_v41 }
 0x53b   :  { %v6234_v6 = vld [vmem:[#allocation13 + $0xb8] sm:$0xff]  ;;  %v6280_v55 = vld [vmem:[#allocation13 + $0x20] sm:$0xff] }
 0x53c   :  { %4455 = vtanh.f32 %v6085_v52  ;;  %v1928_v48 = vsel %vm1927_vm2, %v4452_v14, %v1924_v5  ;;  %v6228_v5 = vld [vmem:[#allocation13 + $0xa8] sm:$0xff]  ;;  %7488 = vst [vmem:[#allocation40_spill] sm:$0xff] %v6280_v55 }
 0x53d   :  { %v1933_v0 = vsel %vm1930_vm3, %v1932_v42, %v1928_v48  ;;  %v6236_v48 = vld [vmem:[#allocation13 + $0xf0] sm:$0xff]  ;;  %v6240_v42 = vld [vmem:[#allocation13 + $0x80] sm:$0xff] }
 0x542   :  { %v4456_v63 = vpop.eup %4455 }
 0x543   :  { %v1939_v34 = vmul.f32 %v4456_v63, %v1933_v0  ;;  %v6242_v63 = vld [vmem:[#allocation13 + $0x88] sm:$0xff] }
 0x544   :  { %7480 = vst [vmem:[#allocation48_spill] sm:$0xff] %v6242_v63 }
 0x545   :  { %2027 = vmatmul.f32.vlgmr.msrb.gmra.mxu0 %v1939_v34  ;;  %2047 = vmatmul.f32.vlgmr.msrb.gmra.mxu1 %v1939_v34 }
 0x546   :  { %2067 = vmatmul.f32.vlgmr.msrb.gmra.mxu2 %v1939_v34  ;;  %2087 = vmatmul.f32.vlgmr.msra.gmra.mxu3 %v1939_v34 }
 0x547   :  { %2506 = vmatpush.msrb.mxu0 %v6100_v26  ;;  %2526 = vmatpush.msrb.mxu1 %v6102_v20 }
 0x548   :  { %2566 = vmatpush.msra.mxu3 %v6110_v54 }
 0x549   :  { %2507 = vmatpush.msrb.mxu0 %v6104_v21  ;;  %2527 = vmatpush.msrb.mxu1 %v6108_v47 }
 0x54b   :  { %2508 = vmatpush.msrb.mxu0 %v6113_v58  ;;  %2528 = vmatpush.msrb.mxu1 %v6115_v3 }
 0x54d   :  { %2258 = vmatmul.f32.vlgmr.msra.gmra.mxu0 %v7475_v12  ;;  %2299 = vmatmul.f32.vlgmr.msra.gmra.mxu1 %v7475_v12 }
 0x54e   :  { %2340 = vmatmul.f32.vlgmr.msra.gmra.mxu2 %v7475_v12  ;;  %2381 = vmatmul.f32.vlgmr.msrb.gmra.mxu3 %v7475_v12  ;;  %v6248_v12 = vld [vmem:[#allocation13 + $0xd0] sm:$0xff] }
 0x54f   :  { %2509 = vmatpush.msrb.mxu0 %v6146_v51  ;;  %2529 = vmatpush.msrb.mxu1 %v6148_v36 }
 0x551   :  { %2530 = vmatpush.msrb.mxu1 %v6156_v8 }
 0x553   :  { %2531 = vmatpush.msrb.mxu1 %v6178_v57 }
 0x555   :  { %2261 = vmatmul.f32.gmra.mxu0 %v7476_v19  ;;  %2302 = vmatmul.f32.gmra.mxu1 %v7476_v19 }
 0x556   :  { %2343 = vmatmul.f32.gmra.mxu2 %v7476_v19  ;;  %2384 = vmatmul.f32.gmra.mxu3 %v7476_v19 }
 0x557   :  { %2532 = vmatpush.msrb.mxu1 %v6188_v4 }
 0x559   :  { %2533 = vmatpush.msrb.mxu1 %v6200_v62 }
 0x55b   :  { %2534 = vmatpush.msrb.mxu1 %v6208_v7 }
 0x55d   :  { %2264 = vmatmul.f32.gmra.mxu0 %v5656_v27  ;;  %2305 = vmatmul.f32.gmra.mxu1 %v5656_v27 }
 0x55e   :  { %2346 = vmatmul.f32.gmra.mxu2 %v5656_v27  ;;  %2387 = vmatmul.f32.gmra.mxu3 %v5656_v27  ;;  %v6117_v27 = vld [vmem:[#allocation13 + $0x1d8] sm:$0xff] }
 0x55f   :  { %2567 = vmatpush.msra.mxu3 %v6117_v27  ;;  %2535 = vmatpush.msrb.mxu1 %v6215_v28 }
 0x561   :  { %2536 = vmatpush.msrb.mxu1 %v6228_v5 }
 0x563   :  { %2537 = vmatpush.msrb.mxu1 %v6242_v63 }
 0x565   :  { %2267 = vmatmul.f32.gmra.mxu0 %v5727_v43  ;;  %2308 = vmatmul.f32.gmra.mxu1 %v5727_v43 }
 0x566   :  { %2349 = vmatmul.f32.gmra.mxu2 %v5727_v43  ;;  %2390 = vmatmul.f32.gmra.mxu3 %v5727_v43  ;;  %v6136_v43 = vld [vmem:[#allocation13 + $0x1f0] sm:$0xff] }
 0x567   :  { %2546 = vmatpush.msrb.mxu2 %v6136_v43 }
 0x569   :  { %2547 = vmatpush.msrb.mxu2 %v6139_v9 }
 0x56b   :  { %2548 = vmatpush.msrb.mxu2 %v6144_v56 }
 0x56d   :  { %2270 = vmatmul.f32.gmra.mxu0 %v5808_v37  ;;  %2311 = vmatmul.f32.gmra.mxu1 %v5808_v37 }
 0x56e   :  { %2352 = vmatmul.f32.gmra.mxu2 %v5808_v37  ;;  %2393 = vmatmul.f32.gmra.mxu3 %v5808_v37  ;;  %v6142_v37 = vld [vmem:[#allocation13 + $0x1b8] sm:$0xff] }
 0x56f   :  { %2568 = vmatpush.msra.mxu3 %v6142_v37  ;;  %2549 = vmatpush.msrb.mxu2 %v6160_v13 }
 0x571   :  { %2569 = vmatpush.msra.mxu3 %v6158_v16  ;;  %2550 = vmatpush.msrb.mxu2 %v6168_v11 }
 0x573   :  { %2570 = vmatpush.msra.mxu3 %v6166_v29  ;;  %2551 = vmatpush.msrb.mxu2 %v6184_v25 }
 0x575   :  { %2273 = vmatmul.f32.gmra.mxu0 %v6051_v50  ;;  %2314 = vmatmul.f32.gmra.mxu1 %v6051_v50 }
 0x576   :  { %2355 = vmatmul.f32.gmra.mxu2 %v6051_v50  ;;  %2396 = vmatmul.f32.gmra.mxu3 %v6051_v50  ;;  %v6151_v50 = vld [vmem:[#allocation13 + $0x160] sm:$0xff] }
 0x577   :  { %2510 = vmatpush.msrb.mxu0 %v6151_v50  ;;  %2571 = vmatpush.msra.mxu3 %v6180_v46 }
 0x578   :  { %2552 = vmatpush.msrb.mxu2 %v6196_v38 }
 0x579   :  { %2511 = vmatpush.msrb.mxu0 %v6176_v24  ;;  %2572 = vmatpush.msra.mxu3 %v6191_v53 }
 0x57a   :  { %2553 = vmatpush.msrb.mxu2 %v6230_v30 }
 0x57b   :  { %2512 = vmatpush.msrb.mxu0 %v6186_v17  ;;  %2573 = vmatpush.msra.mxu3 %v6210_v45 }
 0x57c   :  { %2554 = vmatpush.msrb.mxu2 %v6236_v48 }
 0x57d   :  { %2276 = vmatmul.f32.gmra.mxu0 %v1939_v34  ;;  %2317 = vmatmul.f32.gmra.mxu1 %v1939_v34 }
 0x57e   :  { %2358 = vmatmul.f32.gmra.mxu2 %v1939_v34  ;;  %2399 = vmatmul.f32.gmra.mxu3 %v1939_v34  ;;  %v6246_v34 = vld [vmem:[#allocation13 + $0x98] sm:$0xff] }
 0x57f   :  { %2513 = vmatpush.msrb.mxu0 %v6198_v39  ;;  %2574 = vmatpush.msra.mxu3 %v6217_v49  ;;  %7481 = vst [vmem:[#allocation49_spill] sm:$0xff] %v6246_v34 }
 0x580   :  { %2555 = vmatpush.msrb.mxu2 %v6248_v12 }
 0x581   :  { %2514 = vmatpush.msrb.mxu0 %v6206_v40  ;;  %2575 = vmatpush.msra.mxu3 %v6223_v60 }
 0x583   :  { %2515 = vmatpush.msrb.mxu0 %v6213_v32  ;;  %2576 = vmatpush.msra.mxu3 %v6234_v6 }
 0x585   :  { %2516 = vmatpush.msrb.mxu0 %v6226_v61  ;;  %2577 = vmatpush.msra.mxu3 %v6246_v34  ;;  %v6304_v34 = vld [vmem:[#allocation13 + $0x18] sm:$0xff] }
 0x586   :  { %7495 = vst [vmem:[#allocation28_spill] sm:$0xff] %v6304_v34 }
 0x587   :  { %2517 = vmatpush.msrb.mxu0 %v6240_v42 }
 0x589   :  { %2518 = vmatpush.msrb.mxu0 %v6252_v41 }
 0x5c2   :  { %v2028_v2 = vpop.f32.mrf.mxu0  ;;  %v2048_v33 = vpop.f32.mrf.mxu1 }
 0x5c3   :  { %v2091_v1 = vadd.f32 %v2028_v2, %v261_v15  ;;  %v2092_v22 = vadd.f32 %v2048_v33, %v302_v10  ;;  %v6254_v15 = vld [vmem:[#allocation13 + $0x68] sm:$0xff]  ;;  %v6260_v2 = vld [vmem:[#allocation13 + $0xb0] sm:$0xff]  ;;  %v6262_v33 = vld [vmem:[#allocation13 + $0x78] sm:$0xff] }
 0x5c4   :  { %7483 = vst [vmem:[#allocation51_spill] sm:$0xff] %v6254_v15  ;;  %2538 = vmatpush.msrb.mxu1 %v6254_v15  ;;  %2556 = vmatpush.msrb.mxu2 %v6260_v2  ;;  %v7493_v15 = vld [vmem:[#allocation44_spill] sm:$0xff] }
 0x5c5   :  { %v4288_v14 = vmul.f32 -1.442695, %v2091_v1  ;;  %v4289_v44 = vmul.f32 -1.442695, %v2092_v22  ;;  %7484 = vst [vmem:[#allocation34_spill] sm:$0xff] %v6262_v33  ;;  %v6268_v22 = vld [vmem:[#allocation13 + $0x40] sm:$0xff]  ;;  %2578 = vmatpush.msra.mxu3 %v6262_v33  ;;  %v343_v41 = vadd.f32 %v7493_v15, %v7461_v35 }
 0x5c6   :  { %7485 = vst [vmem:[#allocation25_spill] sm:$0xff] %v6268_v22  ;;  %2519 = vmatpush.msrb.mxu0 %v6268_v22  ;;  %v6302_v22 = vld [vmem:[#allocation13 + $0x38] sm:$0xff]  ;;  %v6312_v35 = vld [vmem:[#allocation13 + $0x30] sm:$0xff] }
 0x5c7   :  { %4457 = vpow2.f32 %v4288_v14  ;;  %v6270_v14 = vld [vmem:[#allocation13 + $0x48] sm:$0xff]  ;;  %7494 = vst [vmem:[#allocation32_spill] sm:$0xff] %v6302_v22 }
 0x5c8   :  { %4459 = vpow2.f32 %v4289_v44  ;;  %7486 = vst [vmem:[#allocation42_spill] sm:$0xff] %v6270_v14  ;;  %v6275_v44 = vld [vmem:[#allocation13 + $0x90] sm:$0xff]  ;;  %2539 = vmatpush.msrb.mxu1 %v6270_v14  ;;  %2520 = vmatpush.msrb.mxu0 %v6280_v55 }
 0x5c9   :  { %v2088_v31 = vpop.f32.mrf.mxu3  ;;  %7487 = vst [vmem:[#allocation30_spill] sm:$0xff] %v6275_v44  ;;  %2557 = vmatpush.msrb.mxu2 %v6275_v44  ;;  %v6300_v14 = vld [vmem:[#allocation13 + $0x50] sm:$0xff] }
 0x5ca   :  { %v2094_v23 = vadd.f32 %v2088_v31, %v384_v18  ;;  %v6282_v18 = vld [vmem:[#allocation13 + $0x28] sm:$0xff]  ;;  %v6284_v31 = vld [vmem:[#allocation13 + $0x58] sm:$0xff] }
 0x5cb   :  { %7489 = vst [vmem:[#allocation27_spill] sm:$0xff] %v6282_v18  ;;  %2579 = vmatpush.msra.mxu3 %v6284_v31  ;;  %2540 = vmatpush.msrb.mxu1 %v6282_v18 }
 0x5cc   :  { %v4290_v0 = vmul.f32 -1.442695, %v2094_v23  ;;  %7490 = vst [vmem:[#allocation45_spill] sm:$0xff] %v6284_v31  ;;  %v6288_v23 = vld [vmem:[#allocation13 + $0x70] sm:$0xff] }
 0x5cd   :  { %v4458_v19 = vpop.eup %4457  ;;  %2558 = vmatpush.msrb.mxu2 %v6288_v23  ;;  %2580 = vmatpush.msra.mxu3 %v6302_v22  ;;  %v6319_v22 = vld [vmem:[#allocation13 + $0x10] sm:$0xff] }
 0x5ce   :  { %v4460_v59 = vpop.eup %4459  ;;  %v6256_v10 = vadd.f32 1.0, %v4458_v19  ;;  %4461 = vpow2.f32 %v4290_v0  ;;  %v2068_v0 = vpop.f32.mrf.mxu2  ;;  %v6292_v19 = vld [vmem:[#allocation13] sm:$0xff] }
 0x5cf   :  { %v6264_v1 = vadd.f32 1.0, %v4460_v59  ;;  %7491 = vst [vmem:[#allocation31_spill] sm:$0xff] %v6292_v19  ;;  %v6294_v59 = vld [vmem:[#allocation13 + $0x8] sm:$0xff]  ;;  %v2093_v63 = vadd.f32 %v2068_v0, %v343_v41  ;;  %2521 = vmatpush.msrb.mxu0 %v6292_v19  ;;  %2559 = vmatpush.msrb.mxu2 %v6300_v14 }
 0x5d0   :  { %4463 = vrcp.f32 %v6256_v10  ;;  %7492 = vst [vmem:[#allocation22_spill] sm:$0xff] %v6294_v59  ;;  %2541 = vmatpush.msrb.mxu1 %v6294_v59  ;;  %2581 = vmatpush.msra.mxu3 %v6304_v34  ;;  %v2110_v59 = vand.u32 2147483648, %v6256_v10  ;;  %vm2104_vm6 = vweird.f32 %v6256_v10 }
 0x5d1   :  { %4465 = vrcp.f32 %v6264_v1  ;;  %2722 = vmatpush.msra.mxu0 %v6100_v26  ;;  %2560 = vmatpush.msrb.mxu2 %v6312_v35  ;;  %v2129_v34 = vand.u32 2147483648, %v6264_v1  ;;  %v2108_v26 = vand.u32 2147483647, %v6256_v10  ;;  %vm2123_vm7 = vweird.f32 %v6264_v1 }
 0x5d2   :  { %2742 = vmatpush.msra.mxu1 %v6102_v20  ;;  %2782 = vmatpush.msrb.mxu3 %v6110_v54  ;;  %v2127_v54 = vand.u32 2147483647, %v6264_v1 }
 0x5d3   :  { %2723 = vmatpush.msra.mxu0 %v6104_v21  ;;  %2561 = vmatpush.msrb.mxu2 %v6319_v22  ;;  %vm2109_vm10 = vcmp.eq.f32.partialorder %v2108_v26, 8.507059e+37 }
 0x5d4   :  { %v4462_v33 = vpop.eup %4461  ;;  %2743 = vmatpush.msra.mxu1 %v6108_v47  ;;  %2783 = vmatpush.msrb.mxu3 %v6117_v27  ;;  %v2111_v27 = vor.u32 1.1754944e-38, %v2110_v59  ;;  %vm2128_vm11 = vcmp.eq.f32.partialorder %v2127_v54, 8.507059e+37 }
 0x5d5   :  { %v6306_v44 = vadd.f32 1.0, %v4462_v33  ;;  %2762 = vmatpush.msra.mxu2 %v6136_v43  ;;  %2724 = vmatpush.msra.mxu0 %v6113_v58  ;;  %v2130_v58 = vor.u32 1.1754944e-38, %v2129_v34 }
 0x5d6   :  { %v4464_v31 = vpop.eup %4463  ;;  %2744 = vmatpush.msra.mxu1 %v6115_v3  ;;  %2784 = vmatpush.msrb.mxu3 %v6142_v37 }
 0x5d7   :  { %v4466_v15 = vpop.eup %4465  ;;  %v2100_v18 = vmul.f32 %v4464_v31, %v6256_v10  ;;  %4467 = vrcp.f32 %v6306_v44  ;;  %vm2105_vm4 = vweird.f32 %v4464_v31  ;;  %2763 = vmatpush.msra.mxu2 %v6139_v9  ;;  %2725 = vmatpush.msra.mxu0 %v6146_v51  ;;  %vm2143_vm13 = vweird.f32 %v6306_v44 }
 0x5d8   :  { %v2119_v33 = vmul.f32 %v4466_v15, %v6264_v1  ;;  %4469 = vtanh.f32 %v2093_v63  ;;  %vm2124_vm5 = vweird.f32 %v4466_v15  ;;  %vm2106_vm8 = vmor %vm2104_vm6, %vm2105_vm4  ;;  %2745 = vmatpush.msra.mxu1 %v6148_v36  ;;  %2785 = vmatpush.msrb.mxu3 %v6158_v16  ;;  %v2147_v26 = vand.u32 2147483647, %v6306_v44 }
 0x5d9   :  { %v2101_v41 = vsub.f32 1.0, %v2100_v18  ;;  %vm2125_vm9 = vmor %vm2123_vm7, %vm2124_vm5  ;;  %2764 = vmatpush.msra.mxu2 %v6144_v56  ;;  %2726 = vmatpush.msra.mxu0 %v6151_v50 }
 0x5da   :  { %v2120_v0 = vsub.f32 1.0, %v2119_v33  ;;  %2746 = vmatpush.msra.mxu1 %v6156_v8  ;;  %2786 = vmatpush.msrb.mxu3 %v6166_v29  ;;  %vm2148_vm15 = vcmp.eq.f32.partialorder %v2147_v26, 8.507059e+37 }
 0x5db   :  { %v2102_v19 = vmul.f32 %v4464_v31, %v2101_v41  ;;  %2765 = vmatpush.msra.mxu2 %v6160_v13  ;;  %2727 = vmatpush.msra.mxu0 %v6176_v24 }
 0x5dc   :  { %v2121_v20 = vmul.f32 %v4466_v15, %v2120_v0  ;;  %2747 = vmatpush.msra.mxu1 %v6178_v57  ;;  %2787 = vmatpush.msrb.mxu3 %v6180_v46 }
 0x5dd   :  { %v6335_v21 = vpop.eup %4467  ;;  %v2103_v47 = vadd.f32 %v4464_v31, %v2102_v19  ;;  %2766 = vmatpush.msra.mxu2 %v6168_v11  ;;  %2728 = vmatpush.msra.mxu0 %v6186_v17 }
 0x5de   :  { %v2122_v63 = vadd.f32 %v4466_v15, %v2121_v20  ;;  %v2139_v18 = vmul.f32 %v6335_v21, %v6306_v44  ;;  %v4470_v3 = vpop.eup %4469  ;;  %vm2144_vm12 = vweird.f32 %v6335_v21  ;;  %2748 = vmatpush.msra.mxu1 %v6188_v4  ;;  %2788 = vmatpush.msrb.mxu3 %v6191_v53 }
 0x5df   :  { %v2107_v10 = vsel %vm2106_vm8, %v4464_v31, %v2103_v47  ;;  %2767 = vmatpush.msra.mxu2 %v6184_v25  ;;  %2729 = vmatpush.msra.mxu0 %v6198_v39  ;;  %vm2145_vm14 = vmor %vm2143_vm13, %vm2144_vm12 }
 0x5e0   :  { %v2112_v1 = vsel %vm2109_vm10, %v2111_v27, %v2107_v10  ;;  %v2126_v19 = vsel %vm2125_vm9, %v4466_v15, %v2122_v63  ;;  %v2140_v59 = vsub.f32 1.0, %v2139_v18  ;;  %2749 = vmatpush.msra.mxu1 %v6200_v62  ;;  %2789 = vmatpush.msrb.mxu3 %v6210_v45  ;;  %v7496_v27 = vld [vmem:[#allocation48_spill] sm:$0xff]  ;;  %v7497_v63 = vld [vmem:[#allocation49_spill] sm:$0xff]  ;;  %v7498_v18 = vld [vmem:[#allocation30_spill] sm:$0xff] }
 0x5e1   :  { %v2131_v33 = vsel %vm2128_vm11, %v2130_v58, %v2126_v19  ;;  %v2154_v41 = vmul.f32 %v4470_v3, %v2112_v1  ;;  %2768 = vmatpush.msra.mxu2 %v6196_v38  ;;  %2730 = vmatpush.msra.mxu0 %v6206_v40  ;;  %v7499_v58 = vld [vmem:[#allocation50_spill] sm:$0xff]  ;;  %v7500_v10 = vld [vmem:[#allocation51_spill] sm:$0xff]  ;;  %v7502_v1 = vld [vmem:[#allocation25_spill] sm:$0xff] }
 0x5e2   :  { %v2153_v34 = vmul.f32 %v2131_v33, %v6085_v52  ;;  %v2141_v31 = vmul.f32 %v6335_v21, %v2140_v59  ;;  %v2149_v52 = vand.u32 2147483648, %v6306_v44  ;;  %2750 = vmatpush.msra.mxu1 %v6208_v7  ;;  %2790 = vmatpush.msrb.mxu3 %v6217_v49  ;;  %v7501_v3 = vld [vmem:[#allocation34_spill] sm:$0xff]  ;;  %v7504_v59 = vld [vmem:[#allocation45_spill] sm:$0xff]  ;;  %v7505_v33 = vmov 0.0  }
 0x5e3   :  { %2769 = vmatpush.msra.mxu2 %v6230_v30  ;;  %2731 = vmatpush.msra.mxu0 %v6213_v32  ;;  %v7503_v19 = vld [vmem:[#allocation42_spill] sm:$0xff] }
 0x5e4   :  { %v2155_v15 = vadd.f32 %v2154_v41, %v2153_v34  ;;  %v2142_v0 = vadd.f32 %v6335_v21, %v2141_v31  ;;  %v2150_v54 = vor.u32 1.1754944e-38, %v2149_v52  ;;  %2751 = vmatpush.msra.mxu1 %v6215_v28  ;;  %2791 = vmatpush.msrb.mxu3 %v6223_v60  ;;  %v7506_v41 = vld [vmem:[#allocation27_spill] sm:$0xff]  ;;  %v7507_v34 = vld [vmem:[#allocation32_spill] sm:$0xff] }
 0x5e5   :  { %2770 = vmatpush.msra.mxu2 %v6236_v48  ;;  %2732 = vmatpush.msra.mxu0 %v6226_v61  ;;  %v7508_v31 = vld [vmem:[#allocation31_spill] sm:$0xff] }
 0x5e6   :  { %4471 = vtanh.f32 %v2155_v15  ;;  %v2146_v20 = vsel %vm2145_vm14, %v6335_v21, %v2142_v0  ;;  %2752 = vmatpush.msra.mxu1 %v6228_v5  ;;  %2792 = vmatpush.msrb.mxu3 %v6234_v6  ;;  %v7509_v15 = vld [vmem:[#allocation22_spill] sm:$0xff]  ;;  %v7510_v0 = vld [vmem:[#allocation28_spill] sm:$0xff] }
 0x5e7   :  { %v2151_v47 = vsel %vm2148_vm15, %v2150_v54, %v2146_v20  ;;  %2771 = vmatpush.msra.mxu2 %v6248_v12  ;;  %2733 = vmatpush.msra.mxu0 %v6240_v42 }
 0x5e8   :  { %2753 = vmatpush.msra.mxu1 %v7496_v27  ;;  %2793 = vmatpush.msrb.mxu3 %v7497_v63 }
 0x5e9   :  { %2772 = vmatpush.msra.mxu2 %v6260_v2  ;;  %2734 = vmatpush.msra.mxu0 %v7499_v58 }
 0x5ea   :  { %2754 = vmatpush.msra.mxu1 %v7500_v10  ;;  %2794 = vmatpush.msrb.mxu3 %v7501_v3 }
 0x5eb   :  { %2773 = vmatpush.msra.mxu2 %v7498_v18  ;;  %2735 = vmatpush.msra.mxu0 %v7502_v1 }
 0x5ec   :  { %v4472_v44 = vpop.eup %4471  ;;  %2755 = vmatpush.msra.mxu1 %v7503_v19  ;;  %2795 = vmatpush.msrb.mxu3 %v7504_v59 }
 0x5ed   :  { %v2157_v21 = vmul.f32 %v4472_v44, %v2151_v47  ;;  %2774 = vmatpush.msra.mxu2 %v6288_v23  ;;  %2736 = vmatpush.msra.mxu0 %v6280_v55 }
 0x5ee   :  { %2756 = vmatpush.msra.mxu1 %v7506_v41  ;;  %2796 = vmatpush.msrb.mxu3 %v7507_v34 }
 0x5ef   :  { %2279 = vmatmul.f32.gmra.mxu0 %v2157_v21  ;;  %2320 = vmatmul.f32.gmra.mxu1 %v2157_v21 }
 0x5f0   :  { %2361 = vmatmul.f32.gmra.mxu2 %v2157_v21  ;;  %2402 = vmatmul.f32.gmra.mxu3 %v2157_v21 }
 0x5f1   :  { %2775 = vmatpush.msra.mxu2 %v6300_v14  ;;  %2737 = vmatpush.msra.mxu0 %v7508_v31 }
 0x5f2   :  { %2757 = vmatpush.msra.mxu1 %v7509_v15  ;;  %2797 = vmatpush.msrb.mxu3 %v7510_v0 }
 0x5f3   :  { %2776 = vmatpush.msra.mxu2 %v6312_v35 }
 0x5f5   :  { %2777 = vmatpush.msra.mxu2 %v6319_v22 }
 0x5f7   :  { %2522 = vmatmul.f32.vlgmr.msrb.gmra.mxu0 %v7505_v33  ;;  %2542 = vmatmul.f32.vlgmr.msrb.gmra.mxu1 %v7505_v33 }
 0x5f8   :  { %2562 = vmatmul.f32.vlgmr.msrb.gmra.mxu2 %v7505_v33  ;;  %2582 = vmatmul.f32.vlgmr.msra.gmra.mxu3 %v7505_v33 }
 0x5f9   :  { %2978 = vmatpush.msrb.mxu2 %v6136_v43  ;;  %v2259_v43 = vpop.f32.mrf.mxu0 }
 0x5fb   :  { %2979 = vmatpush.msrb.mxu2 %v6139_v9  ;;  %v2300_v9 = vpop.f32.mrf.mxu1 }
 0x5fd   :  { %2980 = vmatpush.msrb.mxu2 %v6144_v56  ;;  %v2382_v56 = vpop.f32.mrf.mxu3 }
 0x5ff   :  { %2981 = vmatpush.msrb.mxu2 %v6160_v13 }
 0x601   :  { %2982 = vmatpush.msrb.mxu2 %v6168_v11  ;;  %v6427_v13 = vpop.f32.mrf.mxu0 }
 0x603   :  { %2983 = vmatpush.msrb.mxu2 %v6184_v25  ;;  %v6429_v11 = vpop.f32.mrf.mxu1  ;;  %v2341_v25 = vpop.f32.mrf.mxu2 }
 0x605   :  { %2984 = vmatpush.msrb.mxu2 %v6196_v38  ;;  %v6431_v38 = vpop.f32.mrf.mxu3 }
 0x607   :  { %2985 = vmatpush.msrb.mxu2 %v6230_v30 }
 0x609   :  { %2986 = vmatpush.msrb.mxu2 %v6236_v48  ;;  %v6433_v30 = vpop.f32.mrf.mxu0 }
 0x60a   :  { %7511 = vst [vmem:[#allocation35_spill] sm:$0xff] %v6433_v30 }
 0x60b   :  { %2987 = vmatpush.msrb.mxu2 %v6248_v12  ;;  %v6435_v48 = vpop.f32.mrf.mxu1  ;;  %v6437_v12 = vpop.f32.mrf.mxu2 }
 0x60c   :  { %7512 = vst [vmem:[#allocation23_spill] sm:$0xff] %v6435_v48 }
 0x60d   :  { %2988 = vmatpush.msrb.mxu2 %v6260_v2  ;;  %7513 = vst [vmem:[#allocation36_spill] sm:$0xff] %v6437_v12  ;;  %v6439_v2 = vpop.f32.mrf.mxu3 }
 0x60e   :  { %7514 = vst [vmem:[#allocation29_spill] sm:$0xff] %v6439_v2 }
 0x60f   :  { %2989 = vmatpush.msrb.mxu2 %v7498_v18 }
 0x611   :  { %2990 = vmatpush.msrb.mxu2 %v6288_v23 }
 0x613   :  { %2991 = vmatpush.msrb.mxu2 %v6300_v14  ;;  %v6441_v14 = vpop.f32.mrf.mxu0  ;;  %v6445_v23 = vpop.f32.mrf.mxu2 }
 0x614   :  { %7515 = vst [vmem:[#allocation39_spill] sm:$0xff] %v6441_v14 }
 0x615   :  { %2992 = vmatpush.msrb.mxu2 %v6312_v35  ;;  %7517 = vst [vmem:[#allocation38_spill] sm:$0xff] %v6445_v23  ;;  %v6447_v35 = vpop.f32.mrf.mxu3 }
 0x616   :  { %7518 = vst [vmem:[#allocation33_spill] sm:$0xff] %v6447_v35 }
 0x617   :  { %2993 = vmatpush.msrb.mxu2 %v6319_v22  ;;  %v6443_v22 = vpop.f32.mrf.mxu1 }
 0x618   :  { %7516 = vst [vmem:[#allocation24_spill] sm:$0xff] %v6443_v22 }
 0x61b   :  { %v6449_v52 = vpop.f32.mrf.mxu0  ;;  %v6453_v20 = vpop.f32.mrf.mxu2 }
 0x61c   :  { %7519 = vst [vmem:[#allocation43_spill] sm:$0xff] %v6449_v52 }
 0x61d   :  { %7521 = vst [vmem:[#allocation47_spill] sm:$0xff] %v6453_v20  ;;  %v6455_v54 = vpop.f32.mrf.mxu3 }
 0x61e   :  { %7522 = vst [vmem:[#allocation26_spill] sm:$0xff] %v6455_v54  ;;  %v2232_v54 = vld [vmem:[%s7325_s6] sm:$0xf] }
 0x61f   :  { %v6451_v26 = vpop.f32.mrf.mxu1  ;;  %v6490_v2 = vperm.slane %v2232_v54, 3 }
 0x620   :  { %7520 = vst [vmem:[#allocation46_spill] sm:$0xff] %v6451_v26 }
 0x621   :  { %7537 = vst [vmem:[#allocation56_spill] sm:$0xff] %v6490_v2  ;;  %v2383_v48 = vadd.f32 %v2382_v56, %v6490_v2 }
 0x623   :  { %v6457_v44 = vpop.f32.mrf.mxu0  ;;  %v6461_v21 = vpop.f32.mrf.mxu2 }
 0x624   :  { %7523 = vst [vmem:[#allocation41_spill] sm:$0xff] %v6457_v44 }
 0x625   :  { %7525 = vst [vmem:[#allocation44_spill] sm:$0xff] %v6461_v21  ;;  %v6463_v18 = vpop.f32.mrf.mxu3  ;;  %v6482_v21 = vperm.slane %v2232_v54, 1 }
 0x626   :  { %7526 = vst [vmem:[#allocation48_spill] sm:$0xff] %v6463_v18 }
 0x627   :  { %v6459_v47 = vpop.f32.mrf.mxu1  ;;  %7534 = vst [vmem:[#allocation53_spill] sm:$0xff] %v6482_v21 }
 0x628   :  { %7524 = vst [vmem:[#allocation37_spill] sm:$0xff] %v6459_v47  ;;  %v6480_v47 = vperm.slane %v2232_v54, 0 }
 0x62a   :  { %7533 = vst [vmem:[#allocation52_spill] sm:$0xff] %v6480_v47 }
 0x62b   :  { %v6465_v33 = vpop.f32.mrf.mxu0  ;;  %v6469_v35 = vpop.f32.mrf.mxu2 }
 0x62c   :  { %7527 = vst [vmem:[#allocation49_spill] sm:$0xff] %v6465_v33  ;;  %v2260_v33 = vadd.f32 %v2259_v43, %v6480_v47 }
 0x62d   :  { %7529 = vst [vmem:[#allocation50_spill] sm:$0xff] %v6469_v35  ;;  %v6471_v52 = vpop.f32.mrf.mxu3 }
 0x62e   :  { %7530 = vst [vmem:[#allocation51_spill] sm:$0xff] %v6471_v52 }
 0x62f   :  { %v6467_v22 = vpop.f32.mrf.mxu1 }
 0x630   :  { %7528 = vst [vmem:[#allocation30_spill] sm:$0xff] %v6467_v22  ;;  %v2301_v22 = vadd.f32 %v2300_v9, %v6482_v21 }
 0x633   :  { %v6486_v18 = vpop.f32.mrf.mxu2 }
 0x634   :  { %7535 = vst [vmem:[#allocation54_spill] sm:$0xff] %v6486_v18 }
 0x66c   :  { %v6476_v26 = vpop.f32.mrf.mxu0  ;;  %v6478_v44 = vpop.f32.mrf.mxu1 }
 0x66d   :  { %7531 = vst [vmem:[#allocation34_spill] sm:$0xff] %v6476_v26 }
 0x66e   :  { %7532 = vst [vmem:[#allocation25_spill] sm:$0xff] %v6478_v44 }
 0x673   :  { %v6488_v35 = vpop.f32.mrf.mxu3  ;;  %v6493_v30 = vpop.f32.mrf.mxu2 }
 0x674   :  { %7536 = vst [vmem:[#allocation55_spill] sm:$0xff] %v6488_v35  ;;  %v2523_v52 = vpop.f32.mrf.mxu0  ;;  %v2543_v20 = vpop.f32.mrf.mxu1 }
 0x675   :  { %v2586_v14 = vadd.f32 %v2523_v52, %v2260_v33  ;;  %v2587_v23 = vadd.f32 %v2543_v20, %v2301_v22  ;;  %7538 = vst [vmem:[#allocation57_spill] sm:$0xff] %v6493_v30  ;;  %v6495_v52 = vperm.slane %v2232_v54, 2 }
 0x677   :  { %v4291_v26 = vmul.f32 -1.442695, %v2586_v14  ;;  %v4292_v44 = vmul.f32 -1.442695, %v2587_v23  ;;  %7539 = vst [vmem:[#allocation58_spill] sm:$0xff] %v6495_v52  ;;  %v2342_v23 = vadd.f32 %v2341_v25, %v6495_v52 }
 0x679   :  { %4473 = vpow2.f32 %v4291_v26 }
 0x67a   :  { %4475 = vpow2.f32 %v4292_v44 }
 0x67b   :  { %v2583_v43 = vpop.f32.mrf.mxu3  ;;  %v2563_v14 = vpop.f32.mrf.mxu2 }
 0x67c   :  { %v2589_v9 = vadd.f32 %v2583_v43, %v2383_v48  ;;  %v2588_v20 = vadd.f32 %v2563_v14, %v2342_v23 }
 0x67e   :  { %v4293_v12 = vmul.f32 -1.442695, %v2589_v9 }
 0x67f   :  { %v4474_v18 = vpop.eup %4473 }
 0x680   :  { %v4476_v0 = vpop.eup %4475  ;;  %v2593_v35 = vadd.f32 1.0, %v4474_v18  ;;  %4477 = vpow2.f32 %v4293_v12 }
 0x681   :  { %v2612_v15 = vadd.f32 1.0, %v4476_v0 }
 0x682   :  { %4479 = vrcp.f32 %v2593_v35  ;;  %v2605_v18 = vand.u32 2147483648, %v2593_v35  ;;  %v2603_v54 = vand.u32 2147483647, %v2593_v35  ;;  %vm2599_vm2 = vweird.f32 %v2593_v35 }
 0x683   :  { %4481 = vrcp.f32 %v2612_v15  ;;  %v2624_v0 = vand.u32 2147483648, %v2612_v15  ;;  %v2622_v31 = vand.u32 2147483647, %v2612_v15  ;;  %vm2618_vm3 = vweird.f32 %v2612_v15 }
 0x684   :  { %v2606_v14 = vor.u32 1.1754944e-38, %v2605_v18  ;;  %vm2604_vm5 = vcmp.eq.f32.partialorder %v2603_v54, 8.507059e+37  ;;  %v6521_v54 = vld [vmem:[#allocation13 + $0x1a8] sm:$0xff] }
 0x685   :  { %v2625_v52 = vor.u32 1.1754944e-38, %v2624_v0  ;;  %vm2623_vm7 = vcmp.eq.f32.partialorder %v2622_v31, 8.507059e+37 }
 0x686   :  { %v4478_v22 = vpop.eup %4477 }
 0x687   :  { %v2632_v56 = vadd.f32 1.0, %v4478_v22 }
 0x688   :  { %v4480_v26 = vpop.eup %4479 }
 0x689   :  { %v4482_v44 = vpop.eup %4481  ;;  %v2595_v33 = vmul.f32 %v4480_v26, %v2593_v35  ;;  %4483 = vrcp.f32 %v2632_v56  ;;  %vm2600_vm0 = vweird.f32 %v4480_v26  ;;  %vm2638_vm9 = vweird.f32 %v2632_v56 }
 0x68a   :  { %v2614_v48 = vmul.f32 %v4482_v44, %v2612_v15  ;;  %4485 = vtanh.f32 %v2588_v20  ;;  %vm2619_vm1 = vweird.f32 %v4482_v44  ;;  %vm2601_vm4 = vmor %vm2599_vm2, %vm2600_vm0  ;;  %v2642_v35 = vand.u32 2147483647, %v2632_v56 }
 0x68b   :  { %v2596_v43 = vsub.f32 1.0, %v2595_v33  ;;  %vm2620_vm6 = vmor %vm2618_vm3, %vm2619_vm1 }
 0x68c   :  { %v2615_v9 = vsub.f32 1.0, %v2614_v48  ;;  %vm2643_vm11 = vcmp.eq.f32.partialorder %v2642_v35, 8.507059e+37 }
 0x68d   :  { %v2597_v12 = vmul.f32 %v4480_v26, %v2596_v43 }
 0x68e   :  { %v2616_v30 = vmul.f32 %v4482_v44, %v2615_v9 }
 0x68f   :  { %v4484_v34 = vpop.eup %4483  ;;  %v2598_v25 = vadd.f32 %v4480_v26, %v2597_v12 }
 0x690   :  { %v2617_v22 = vadd.f32 %v4482_v44, %v2616_v30  ;;  %v2634_v23 = vmul.f32 %v4484_v34, %v2632_v56  ;;  %v4486_v20 = vpop.eup %4485  ;;  %vm2639_vm8 = vweird.f32 %v4484_v34  ;;  %v2644_v30 = vand.u32 2147483648, %v2632_v56  ;;  %v6519_v56 = vld [vmem:[#allocation13 + $0x1a0] sm:$0xff] }
 0x691   :  { %v2602_v33 = vsel %vm2601_vm4, %v4480_v26, %v2598_v25  ;;  %vm2640_vm10 = vmor %vm2638_vm9, %vm2639_vm8 }
 0x692   :  { %v2607_v48 = vsel %vm2604_vm5, %v2606_v14, %v2602_v33  ;;  %v2621_v43 = vsel %vm2620_vm6, %v4482_v44, %v2617_v22  ;;  %v2635_v41 = vsub.f32 1.0, %v2634_v23  ;;  %v2645_v18 = vor.u32 1.1754944e-38, %v2644_v30 }
 0x693   :  { %v2626_v9 = vsel %vm2623_vm7, %v2625_v52, %v2621_v43  ;;  %v2649_v55 = vmul.f32 %v4486_v20, %v2607_v48  ;;  %v6514_v52 = vld [vmem:[#allocation13 + $0x1d8] sm:$0xff] }
 0x694   :  { %v2648_v59 = vmul.f32 0.0, %v2626_v9  ;;  %v2636_v19 = vmul.f32 %v4484_v34, %v2635_v41  ;;  %v6510_v41 = vld [vmem:[#allocation13 + $0x1c0] sm:$0xff] }
 0x696   :  { %v6498_v12 = vadd.f32 %v2649_v55, %v2648_v59  ;;  %v2637_v15 = vadd.f32 %v4484_v34, %v2636_v19  ;;  %v6501_v55 = vld [vmem:[#allocation13 + $0x1e0] sm:$0xff]  ;;  %v6503_v19 = vld [vmem:[#allocation13 + $0x1e8] sm:$0xff]  ;;  %v6505_v59 = vld [vmem:[#allocation13 + $0x1f8] sm:$0xff] }
 0x697   :  { %2938 = vmatpush.msrb.mxu0 %v6501_v55  ;;  %2958 = vmatpush.msrb.mxu1 %v6503_v19 }
 0x698   :  { %4487 = vtanh.f32 %v6498_v12  ;;  %v2641_v26 = vsel %vm2640_vm10, %v4484_v34, %v2637_v15  ;;  %2998 = vmatpush.msra.mxu3 %v6505_v59  ;;  %v6512_v34 = vld [vmem:[#allocation13 + $0x1c8] sm:$0xff] }
 0x699   :  { %v2646_v31 = vsel %vm2643_vm11, %v2645_v18, %v2641_v26  ;;  %2939 = vmatpush.msrb.mxu0 %v6510_v41  ;;  %2959 = vmatpush.msrb.mxu1 %v6512_v34 }
 0x69a   :  { %2999 = vmatpush.msra.mxu3 %v6514_v52 }
 0x69b   :  { %2940 = vmatpush.msrb.mxu0 %v6519_v56  ;;  %2960 = vmatpush.msrb.mxu1 %v6521_v54 }
 0x69c   :  { %3000 = vmatpush.msra.mxu3 %v6142_v37  ;;  %v2263_v37 = vadd.f32 %v6427_v13, %v6480_v47 }
 0x69d   :  { %2941 = vmatpush.msrb.mxu0 %v6146_v51  ;;  %2961 = vmatpush.msrb.mxu1 %v6148_v36  ;;  %v2304_v51 = vadd.f32 %v6429_v11, %v6482_v21 }
 0x69e   :  { %v4488_v44 = vpop.eup %4487  ;;  %3001 = vmatpush.msra.mxu3 %v6158_v16 }
 0x69f   :  { %v2652_v0 = vmul.f32 %v4488_v44, %v2646_v31  ;;  %2942 = vmatpush.msrb.mxu0 %v6151_v50  ;;  %2962 = vmatpush.msrb.mxu1 %v6156_v8 }
 0x6a0   :  { %3002 = vmatpush.msra.mxu3 %v6166_v29 }
 0x6a1   :  { %2738 = vmatmul.f32.vlgmr.msra.gmra.mxu0 %v2652_v0  ;;  %2758 = vmatmul.f32.vlgmr.msra.gmra.mxu1 %v2652_v0 }
 0x6a2   :  { %2778 = vmatmul.f32.vlgmr.msra.gmra.mxu2 %v2652_v0  ;;  %2798 = vmatmul.f32.vlgmr.msrb.gmra.mxu3 %v2652_v0 }
 0x6a3   :  { %2943 = vmatpush.msrb.mxu0 %v6176_v24  ;;  %2963 = vmatpush.msrb.mxu1 %v6178_v57  ;;  %v2386_v57 = vadd.f32 %v6431_v38, %v6490_v2 }
 0x6a4   :  { %3003 = vmatpush.msra.mxu3 %v6180_v46 }
 0x6a5   :  { %2944 = vmatpush.msrb.mxu0 %v6186_v17  ;;  %2964 = vmatpush.msrb.mxu1 %v6188_v4  ;;  %v7540_v4 = vld [vmem:[#allocation42_spill] sm:$0xff] }
 0x6a6   :  { %3004 = vmatpush.msra.mxu3 %v6191_v53 }
 0x6a7   :  { %2945 = vmatpush.msrb.mxu0 %v6198_v39  ;;  %2965 = vmatpush.msrb.mxu1 %v6200_v62  ;;  %v7541_v39 = vld [vmem:[#allocation45_spill] sm:$0xff] }
 0x6a8   :  { %3005 = vmatpush.msra.mxu3 %v6210_v45 }
 0x6a9   :  { %2946 = vmatpush.msrb.mxu0 %v6206_v40  ;;  %2966 = vmatpush.msrb.mxu1 %v6208_v7  ;;  %v7542_v40 = vld [vmem:[#allocation40_spill] sm:$0xff]  ;;  %v7543_v7 = vld [vmem:[#allocation27_spill] sm:$0xff] }
 0x6aa   :  { %3006 = vmatpush.msra.mxu3 %v6217_v49 }
 0x6ab   :  { %2947 = vmatpush.msrb.mxu0 %v6213_v32  ;;  %2967 = vmatpush.msrb.mxu1 %v6215_v28  ;;  %v7544_v28 = vld [vmem:[#allocation32_spill] sm:$0xff] }
 0x6ac   :  { %3007 = vmatpush.msra.mxu3 %v6223_v60  ;;  %v7545_v60 = vld [vmem:[#allocation31_spill] sm:$0xff] }
 0x6ad   :  { %2948 = vmatpush.msrb.mxu0 %v6226_v61  ;;  %2968 = vmatpush.msrb.mxu1 %v6228_v5  ;;  %v7546_v61 = vld [vmem:[#allocation22_spill] sm:$0xff]  ;;  %v7547_v5 = vld [vmem:[#allocation28_spill] sm:$0xff] }
 0x6ae   :  { %3008 = vmatpush.msra.mxu3 %v6234_v6 }
 0x6af   :  { %2949 = vmatpush.msrb.mxu0 %v6240_v42  ;;  %2969 = vmatpush.msrb.mxu1 %v7496_v27  ;;  %v7548_v27 = vld [vmem:[#allocation58_spill] sm:$0xff] }
 0x6b0   :  { %3009 = vmatpush.msra.mxu3 %v7497_v63  ;;  %v7549_v63 = vld [vmem:[#allocation36_spill] sm:$0xff] }
 0x6b1   :  { %2950 = vmatpush.msrb.mxu0 %v7499_v58  ;;  %2970 = vmatpush.msrb.mxu1 %v7500_v10  ;;  %v2345_v58 = vadd.f32 %v7549_v63, %v7548_v27  ;;  %v6627_v63 = vld [vmem:[#allocation13 + $0x140] sm:$0xff] }
 0x6b2   :  { %3010 = vmatpush.msra.mxu3 %v7501_v3 }
 0x6b3   :  { %2951 = vmatpush.msrb.mxu0 %v7502_v1  ;;  %2971 = vmatpush.msrb.mxu1 %v7540_v4 }
 0x6b4   :  { %3011 = vmatpush.msra.mxu3 %v7541_v39 }
 0x6b5   :  { %2952 = vmatpush.msrb.mxu0 %v7542_v40  ;;  %2972 = vmatpush.msrb.mxu1 %v7543_v7  ;;  %v6594_v40 = vld [vmem:[#allocation13 + $0x1d0] sm:$0xff] }
 0x6b6   :  { %3012 = vmatpush.msra.mxu3 %v7544_v28  ;;  %v6597_v7 = vld [vmem:[#allocation13 + $0x1b0] sm:$0xff]  ;;  %v6605_v28 = vld [vmem:[#allocation13 + $0x188] sm:$0xff] }
 0x6b7   :  { %2953 = vmatpush.msrb.mxu0 %v7545_v60  ;;  %2973 = vmatpush.msrb.mxu1 %v7546_v61  ;;  %v6611_v60 = vld [vmem:[#allocation13 + $0x198] sm:$0xff]  ;;  %v6615_v61 = vld [vmem:[#allocation13 + $0x160] sm:$0xff] }
 0x6b8   :  { %3013 = vmatpush.msra.mxu3 %v7547_v5  ;;  %v6617_v5 = vld [vmem:[#allocation13 + $0x168] sm:$0xff] }
 0x6b9   :  { %3154 = vmatpush.msra.mxu0 %v6501_v55  ;;  %3174 = vmatpush.msra.mxu1 %v6503_v19 }
 0x6ba   :  { %3214 = vmatpush.msrb.mxu3 %v6505_v59 }
 0x6bb   :  { %3155 = vmatpush.msra.mxu0 %v6510_v41  ;;  %3175 = vmatpush.msra.mxu1 %v6512_v34 }
 0x6bc   :  { %3215 = vmatpush.msrb.mxu3 %v6514_v52 }
 0x6bd   :  { %3156 = vmatpush.msra.mxu0 %v6519_v56  ;;  %3176 = vmatpush.msra.mxu1 %v6521_v54 }
 0x6bf   :  { %3177 = vmatpush.msra.mxu1 %v6605_v28 }
 0x6c1   :  { %3178 = vmatpush.msra.mxu1 %v6617_v5 }
 0x71e   :  { %v2739_v36 = vpop.f32.mrf.mxu0  ;;  %v2759_v50 = vpop.f32.mrf.mxu1 }
 0x71f   :  { %v2802_v8 = vadd.f32 %v2739_v36, %v2263_v37  ;;  %v2803_v16 = vadd.f32 %v2759_v50, %v2304_v51 }
 0x721   :  { %v4294_v29 = vmul.f32 -1.442695, %v2802_v8  ;;  %v4295_v24 = vmul.f32 -1.442695, %v2803_v16 }
 0x723   :  { %4489 = vpow2.f32 %v4294_v29 }
 0x724   :  { %4491 = vpow2.f32 %v4295_v24 }
 0x725   :  { %v2799_v46 = vpop.f32.mrf.mxu3  ;;  %v2779_v6 = vpop.f32.mrf.mxu2 }
 0x726   :  { %v2805_v17 = vadd.f32 %v2799_v46, %v2386_v57  ;;  %v2804_v1 = vadd.f32 %v2779_v6, %v2345_v58  ;;  %v6619_v6 = vld [vmem:[#allocation13 + $0x170] sm:$0xff]  ;;  %v6629_v58 = vld [vmem:[#allocation13 + $0x148] sm:$0xff] }
 0x727   :  { %7552 = vst [vmem:[#allocation40_spill] sm:$0xff] %v6629_v58  ;;  %3179 = vmatpush.msra.mxu1 %v6629_v58 }
 0x728   :  { %v4296_v53 = vmul.f32 -1.442695, %v2805_v17 }
 0x729   :  { %v4490_v62 = vpop.eup %4489 }
 0x72a   :  { %v4492_v45 = vpop.eup %4491  ;;  %v2809_v32 = vadd.f32 1.0, %v4490_v62  ;;  %4493 = vpow2.f32 %v4296_v53 }
 0x72b   :  { %v2828_v49 = vadd.f32 1.0, %v4492_v45  ;;  %v6599_v45 = vld [vmem:[#allocation13 + $0x1b8] sm:$0xff] }
 0x72c   :  { %4495 = vrcp.f32 %v2809_v32  ;;  %v2821_v22 = vand.u32 2147483648, %v2809_v32  ;;  %v2819_v20 = vand.u32 2147483647, %v2809_v32  ;;  %vm2815_vm14 = vweird.f32 %v2809_v32  ;;  %3216 = vmatpush.msrb.mxu3 %v6599_v45 }
 0x72d   :  { %4497 = vrcp.f32 %v2828_v49  ;;  %v2840_v23 = vand.u32 2147483648, %v2828_v49  ;;  %v2838_v43 = vand.u32 2147483647, %v2828_v49  ;;  %vm2834_vm15 = vweird.f32 %v2828_v49 }
 0x72e   :  { %v2822_v30 = vor.u32 1.1754944e-38, %v2821_v22  ;;  %vm2820_vm2 = vcmp.eq.f32.partialorder %v2819_v20, 8.507059e+37  ;;  %3217 = vmatpush.msrb.mxu3 %v6611_v60  ;;  %v6655_v22 = vld [vmem:[#allocation13 + $0x110] sm:$0xff]  ;;  %v6665_v20 = vld [vmem:[#allocation13 + $0xe8] sm:$0xff] }
 0x72f   :  { %v2841_v18 = vor.u32 1.1754944e-38, %v2840_v23  ;;  %vm2839_vm3 = vcmp.eq.f32.partialorder %v2838_v43, 8.507059e+37  ;;  %v6659_v23 = vld [vmem:[#allocation13 + $0x118] sm:$0xff]  ;;  %v7556_v43 = vld [vmem:[#allocation35_spill] sm:$0xff] }
 0x730   :  { %v4494_v42 = vpop.eup %4493 }
 0x731   :  { %v2848_v10 = vadd.f32 1.0, %v4494_v42  ;;  %v6623_v42 = vld [vmem:[#allocation13 + $0x178] sm:$0xff] }
 0x732   :  { %v4496_v3 = vpop.eup %4495  ;;  %7551 = vst [vmem:[#allocation45_spill] sm:$0xff] %v6623_v42  ;;  %3218 = vmatpush.msrb.mxu3 %v6623_v42 }
 0x733   :  { %v4498_v13 = vpop.eup %4497  ;;  %v2811_v11 = vmul.f32 %v4496_v3, %v2809_v32  ;;  %4499 = vrcp.f32 %v2848_v10  ;;  %vm2816_vm12 = vweird.f32 %v4496_v3  ;;  %v2860_v57 = vand.u32 2147483648, %v2848_v10  ;;  %v6603_v32 = vld [vmem:[#allocation13 + $0x180] sm:$0xff] }
 0x734   :  { %v2830_v38 = vmul.f32 %v4498_v13, %v2828_v49  ;;  %4501 = vtanh.f32 %v2804_v1  ;;  %vm2835_vm13 = vweird.f32 %v4498_v13  ;;  %vm2817_vm0 = vmor %vm2815_vm14, %vm2816_vm12  ;;  %vm2854_vm5 = vweird.f32 %v2848_v10  ;;  %v6607_v49 = vld [vmem:[#allocation13 + $0x190] sm:$0xff]  ;;  %3157 = vmatpush.msra.mxu0 %v6603_v32  ;;  %v6639_v1 = vld [vmem:[#allocation13 + $0x120] sm:$0xff] }
 0x735   :  { %v2812_v25 = vsub.f32 1.0, %v2811_v11  ;;  %vm2836_vm1 = vmor %vm2834_vm15, %vm2835_vm13  ;;  %v2858_v46 = vand.u32 2147483647, %v2848_v10  ;;  %v2861_v4 = vor.u32 1.1754944e-38, %v2860_v57  ;;  %7553 = vst [vmem:[#allocation27_spill] sm:$0xff] %v6639_v1  ;;  %v6643_v11 = vld [vmem:[#allocation13 + $0x130] sm:$0xff] }
 0x736   :  { %v2831_v14 = vsub.f32 1.0, %v2830_v38  ;;  %3158 = vmatpush.msra.mxu0 %v6615_v61  ;;  %v6647_v38 = vld [vmem:[#allocation13 + $0x138] sm:$0xff] }
 0x737   :  { %v2813_v33 = vmul.f32 %v4496_v3, %v2812_v25  ;;  %vm2859_vm7 = vcmp.eq.f32.partialorder %v2858_v46, 8.507059e+37  ;;  %7555 = vst [vmem:[#allocation31_spill] sm:$0xff] %v6647_v38  ;;  %v6651_v25 = vld [vmem:[#allocation13 + $0x100] sm:$0xff]  ;;  %v6699_v46 = vld [vmem:[#allocation13 + $0xb8] sm:$0xff] }
 0x738   :  { %v2832_v48 = vmul.f32 %v4498_v13, %v2831_v14  ;;  %3159 = vmatpush.msra.mxu0 %v6627_v63  ;;  %v6653_v14 = vld [vmem:[#allocation13 + $0x108] sm:$0xff] }
 0x739   :  { %v4500_v9 = vpop.eup %4499  ;;  %v2814_v15 = vadd.f32 %v4496_v3, %v2813_v33  ;;  %v6663_v33 = vld [vmem:[#allocation13 + $0xe0] sm:$0xff] }
 0x73a   :  { %v2833_v35 = vadd.f32 %v4498_v13, %v2832_v48  ;;  %v2850_v26 = vmul.f32 %v4500_v9, %v2848_v10  ;;  %v4502_v31 = vpop.eup %4501  ;;  %vm2855_vm4 = vweird.f32 %v4500_v9  ;;  %v6631_v10 = vld [vmem:[#allocation13 + $0x150] sm:$0xff]  ;;  %3160 = vmatpush.msra.mxu0 %v6639_v1 }
 0x73b   :  { %v2818_v44 = vsel %vm2817_vm0, %v4496_v3, %v2814_v15  ;;  %vm2856_vm6 = vmor %vm2854_vm5, %vm2855_vm4  ;;  %v6635_v3 = vld [vmem:[#allocation13 + $0x158] sm:$0xff]  ;;  %v6667_v48 = vld [vmem:[#allocation13 + $0xf0] sm:$0xff] }
 0x73c   :  { %v2823_v0 = vsel %vm2820_vm2, %v2822_v30, %v2818_v44  ;;  %v2837_v37 = vsel %vm2836_vm1, %v4498_v13, %v2833_v35  ;;  %v2851_v51 = vsub.f32 1.0, %v2850_v26  ;;  %3219 = vmatpush.msrb.mxu3 %v6635_v3  ;;  %v6641_v13 = vld [vmem:[#allocation13 + $0x128] sm:$0xff]  ;;  %3161 = vmatpush.msra.mxu0 %v6651_v25  ;;  %v7557_v15 = vld [vmem:[#allocation23_spill] sm:$0xff]  ;;  %v6675_v35 = vld [vmem:[#allocation13 + $0xf8] sm:$0xff] }
 0x73d   :  { %v2842_v36 = vsel %vm2839_vm3, %v2841_v18, %v2837_v37  ;;  %v2865_v50 = vmul.f32 %v4502_v31, %v2823_v0  ;;  %7554 = vst [vmem:[#allocation32_spill] sm:$0xff] %v6641_v13  ;;  %3180 = vmatpush.msra.mxu1 %v6641_v13  ;;  %v2307_v30 = vadd.f32 %v7557_v15, %v6482_v21  ;;  %v6679_v44 = vld [vmem:[#allocation13 + $0xc0] sm:$0xff]  ;;  %v6681_v31 = vld [vmem:[#allocation13 + $0xc8] sm:$0xff]  ;;  %v6683_v0 = vld [vmem:[#allocation13 + $0xd0] sm:$0xff] }
 0x73e   :  { %v2864_v8 = vmul.f32 %v2842_v36, %v6498_v12  ;;  %v2852_v16 = vmul.f32 %v4500_v9, %v2851_v51  ;;  %v6591_v12 = vld [vmem:[#allocation13 + $0x1f0] sm:$0xff]  ;;  %3220 = vmatpush.msrb.mxu3 %v6647_v38  ;;  %3162 = vmatpush.msra.mxu0 %v6663_v33  ;;  %v6687_v36 = vld [vmem:[#allocation13 + $0xd8] sm:$0xff]  ;;  %v6739_v21 = vld [vmem:[#allocation13 + $0x28] sm:$0xff] }
 0x73f   :  { %3194 = vmatpush.msra.mxu2 %v6591_v12  ;;  %3181 = vmatpush.msra.mxu1 %v6653_v14  ;;  %v7561_v15 = vld [vmem:[#allocation29_spill] sm:$0xff] }
 0x740   :  { %v6582_v29 = vadd.f32 %v2865_v50, %v2864_v8  ;;  %v2853_v24 = vadd.f32 %v4500_v9, %v2852_v16  ;;  %3221 = vmatpush.msrb.mxu3 %v6659_v23  ;;  %3163 = vmatpush.msra.mxu0 %v6679_v44  ;;  %v6691_v50 = vld [vmem:[#allocation13 + $0xa0] sm:$0xff]  ;;  %v6693_v8 = vld [vmem:[#allocation13 + $0xa8] sm:$0xff]  ;;  %v6695_v16 = vld [vmem:[#allocation13 + $0xb0] sm:$0xff] }
 0x741   :  { %3195 = vmatpush.msra.mxu2 %v6594_v40  ;;  %3182 = vmatpush.msra.mxu1 %v6665_v20 }
 0x742   :  { %4503 = vtanh.f32 %v6582_v29  ;;  %v2857_v17 = vsel %vm2856_vm6, %v4500_v9, %v2853_v24  ;;  %v2266_v9 = vadd.f32 %v7556_v43, %v6480_v47  ;;  %3222 = vmatpush.msrb.mxu3 %v6675_v35  ;;  %3164 = vmatpush.msra.mxu0 %v6691_v50  ;;  %v6713_v43 = vld [vmem:[#allocation13 + $0x60] sm:$0xff]  ;;  %v6743_v47 = vld [vmem:[#allocation13 + $0x30] sm:$0xff] }
 0x743   :  { %v2862_v39 = vsel %vm2859_vm7, %v2861_v4, %v2857_v17  ;;  %3196 = vmatpush.msra.mxu2 %v6597_v7  ;;  %3183 = vmatpush.msra.mxu1 %v6681_v31  ;;  %v6703_v17 = vld [vmem:[#allocation13 + $0x80] sm:$0xff]  ;;  %v6705_v4 = vld [vmem:[#allocation13 + $0x88] sm:$0xff]  ;;  %7559 = vst [vmem:[#allocation28_spill] sm:$0xff] %v6713_v43 }
 0x744   :  { %3223 = vmatpush.msrb.mxu3 %v6687_v36  ;;  %3165 = vmatpush.msra.mxu0 %v6703_v17 }
 0x745   :  { %3197 = vmatpush.msra.mxu2 %v6607_v49  ;;  %3184 = vmatpush.msra.mxu1 %v6693_v8 }
 0x746   :  { %3224 = vmatpush.msrb.mxu3 %v6699_v46  ;;  %3166 = vmatpush.msra.mxu0 %v6713_v43 }
 0x747   :  { %3198 = vmatpush.msra.mxu2 %v6619_v6  ;;  %3185 = vmatpush.msra.mxu1 %v6705_v4 }
 0x748   :  { %v4504_v53 = vpop.eup %4503 }
 0x749   :  { %v6585_v62 = vmul.f32 %v4504_v53, %v2862_v39  ;;  %3199 = vmatpush.msra.mxu2 %v6631_v10  ;;  %v6707_v53 = vld [vmem:[#allocation13 + $0x90] sm:$0xff]  ;;  %v6711_v39 = vld [vmem:[#allocation13 + $0x98] sm:$0xff] }
 0x74a   :  { %7558 = vst [vmem:[#allocation22_spill] sm:$0xff] %v6711_v39  ;;  %3225 = vmatpush.msrb.mxu3 %v6711_v39 }
 0x74b   :  { %7550 = vst [vmem:[#allocation42_spill] sm:$0xff] %v6585_v62  ;;  %2954 = vmatmul.f32.vlgmr.msrb.gmra.mxu0 %v6585_v62  ;;  %2974 = vmatmul.f32.vlgmr.msrb.gmra.mxu1 %v6585_v62 }
 0x74c   :  { %2994 = vmatmul.f32.vlgmr.msrb.gmra.mxu2 %v6585_v62  ;;  %3014 = vmatmul.f32.vlgmr.msra.gmra.mxu3 %v6585_v62  ;;  %v6731_v62 = vld [vmem:[#allocation13 + $0x50] sm:$0xff] }
 0x74d   :  { %3200 = vmatpush.msra.mxu2 %v6643_v11 }
 0x74f   :  { %3201 = vmatpush.msra.mxu2 %v6655_v22 }
 0x751   :  { %3202 = vmatpush.msra.mxu2 %v6667_v48 }
 0x753   :  { %3203 = vmatpush.msra.mxu2 %v6683_v0 }
 0x755   :  { %3204 = vmatpush.msra.mxu2 %v6695_v16 }
 0x757   :  { %3205 = vmatpush.msra.mxu2 %v6707_v53 }
 0x7c8   :  { %v2955_v26 = vpop.f32.mrf.mxu0  ;;  %v2975_v18 = vpop.f32.mrf.mxu1 }
 0x7c9   :  { %v3018_v37 = vadd.f32 %v2955_v26, %v2266_v9  ;;  %v3019_v51 = vadd.f32 %v2975_v18, %v2307_v30  ;;  %v6715_v9 = vld [vmem:[#allocation13 + $0x68] sm:$0xff]  ;;  %v2389_v30 = vadd.f32 %v7561_v15, %v6490_v2  ;;  %v6721_v26 = vld [vmem:[#allocation13 + $0x70] sm:$0xff]  ;;  %v6723_v18 = vld [vmem:[#allocation13 + $0x78] sm:$0xff] }
 0x7ca   :  { %7560 = vst [vmem:[#allocation36_spill] sm:$0xff] %v6715_v9  ;;  %3186 = vmatpush.msra.mxu1 %v6715_v9  ;;  %3206 = vmatpush.msra.mxu2 %v6721_v26  ;;  %v6737_v2 = vld [vmem:[#allocation13 + $0x20] sm:$0xff]  ;;  %v6745_v9 = vld [vmem:[#allocation13 + $0x38] sm:$0xff] }
 0x7cb   :  { %v4297_v24 = vmul.f32 -1.442695, %v3018_v37  ;;  %v4298_v57 = vmul.f32 -1.442695, %v3019_v51  ;;  %7562 = vst [vmem:[#allocation35_spill] sm:$0xff] %v6721_v26  ;;  %v6725_v37 = vld [vmem:[#allocation13 + $0x40] sm:$0xff]  ;;  %3226 = vmatpush.msrb.mxu3 %v6723_v18 }
 0x7cc   :  { %7563 = vst [vmem:[#allocation23_spill] sm:$0xff] %v6723_v18  ;;  %3167 = vmatpush.msra.mxu0 %v6725_v37  ;;  %3207 = vmatpush.msra.mxu2 %v6731_v62 }
 0x7cd   :  { %4505 = vpow2.f32 %v4297_v24  ;;  %7564 = vst [vmem:[#allocation29_spill] sm:$0xff] %v6725_v37  ;;  %v6729_v24 = vld [vmem:[#allocation13 + $0x48] sm:$0xff]  ;;  %v6755_v37 = vld [vmem:[#allocation13 + $0x10] sm:$0xff] }
 0x7ce   :  { %4507 = vpow2.f32 %v4298_v57  ;;  %7565 = vst [vmem:[#allocation59_spill] sm:$0xff] %v6729_v24  ;;  %v6733_v57 = vld [vmem:[#allocation13 + $0x58] sm:$0xff]  ;;  %3187 = vmatpush.msra.mxu1 %v6729_v24  ;;  %3168 = vmatpush.msra.mxu0 %v6737_v2 }
 0x7cf   :  { %v3015_v51 = vpop.f32.mrf.mxu3  ;;  %3227 = vmatpush.msrb.mxu3 %v6733_v57  ;;  %7566 = vst [vmem:[#allocation60_spill] sm:$0xff] %v6755_v37  ;;  %v6757_v24 = vld [vmem:[#allocation13 + $0x18] sm:$0xff]  ;;  %3208 = vmatpush.msra.mxu2 %v6743_v47 }
 0x7d0   :  { %v3021_v15 = vadd.f32 %v3015_v51, %v2389_v30  ;;  %v6749_v30 = vld [vmem:[#allocation13] sm:$0xff]  ;;  %v6751_v51 = vld [vmem:[#allocation13 + $0x8] sm:$0xff]  ;;  %3188 = vmatpush.msra.mxu1 %v6739_v21 }
 0x7d1   :  { %3228 = vmatpush.msrb.mxu3 %v6745_v9  ;;  %3169 = vmatpush.msra.mxu0 %v6749_v30 }
 0x7d2   :  { %v4299_v43 = vmul.f32 -1.442695, %v3021_v15  ;;  %3189 = vmatpush.msra.mxu1 %v6751_v51  ;;  %3209 = vmatpush.msra.mxu2 %v6755_v37 }
 0x7d3   :  { %v4506_v18 = vpop.eup %4505  ;;  %3229 = vmatpush.msrb.mxu3 %v6757_v24  ;;  %3370 = vmatpush.msrb.mxu0 %v6501_v55 }
 0x7d4   :  { %v4508_v26 = vpop.eup %4507  ;;  %v6759_v39 = vadd.f32 1.0, %v4506_v18  ;;  %4509 = vpow2.f32 %v4299_v43  ;;  %3390 = vmatpush.msrb.mxu1 %v6503_v19  ;;  %3410 = vmatpush.msrb.mxu2 %v6591_v12  ;;  %v2995_v43 = vpop.f32.mrf.mxu2  ;;  %v7567_v18 = vld [vmem:[#allocation38_spill] sm:$0xff] }
 0x7d5   :  { %v6763_v15 = vadd.f32 1.0, %v4508_v26  ;;  %3430 = vmatpush.msra.mxu3 %v6505_v59  ;;  %3371 = vmatpush.msrb.mxu0 %v6510_v41  ;;  %v2348_v37 = vadd.f32 %v7567_v18, %v7548_v27 }
 0x7d6   :  { %4511 = vrcp.f32 %v6759_v39  ;;  %3391 = vmatpush.msrb.mxu1 %v6512_v34  ;;  %3411 = vmatpush.msrb.mxu2 %v6594_v40  ;;  %v3035_v18 = vand.u32 2147483647, %v6759_v39  ;;  %vm3031_vm10 = vweird.f32 %v6759_v39 }
 0x7d7   :  { %4513 = vrcp.f32 %v6763_v15  ;;  %3431 = vmatpush.msra.mxu3 %v6514_v52  ;;  %3372 = vmatpush.msrb.mxu0 %v6519_v56  ;;  %v3020_v59 = vadd.f32 %v2995_v43, %v2348_v37  ;;  %v3037_v37 = vand.u32 2147483648, %v6759_v39  ;;  %v3056_v43 = vand.u32 2147483648, %v6763_v15 }
 0x7d8   :  { %3392 = vmatpush.msrb.mxu1 %v6521_v54  ;;  %3412 = vmatpush.msrb.mxu2 %v6597_v7  ;;  %vm3050_vm11 = vweird.f32 %v6763_v15  ;;  %vm3036_vm14 = vcmp.eq.f32.partialorder %v3035_v18, 8.507059e+37  ;;  %v7570_v18 = vld [vmem:[#allocation36_spill] sm:$0xff] }
 0x7d9   :  { %3432 = vmatpush.msra.mxu3 %v6599_v45  ;;  %3373 = vmatpush.msrb.mxu0 %v6603_v32 }
 0x7da   :  { %v4510_v26 = vpop.eup %4509  ;;  %3393 = vmatpush.msrb.mxu1 %v6605_v28  ;;  %3413 = vmatpush.msrb.mxu2 %v6607_v49 }
 0x7db   :  { %v6781_v55 = vadd.f32 1.0, %v4510_v26  ;;  %3433 = vmatpush.msra.mxu3 %v6611_v60  ;;  %3374 = vmatpush.msrb.mxu0 %v6615_v61 }
 0x7dc   :  { %v4512_v19 = vpop.eup %4511  ;;  %3394 = vmatpush.msrb.mxu1 %v6617_v5  ;;  %3414 = vmatpush.msrb.mxu2 %v6619_v6 }
 0x7dd   :  { %v4514_v41 = vpop.eup %4513  ;;  %v3027_v34 = vmul.f32 %v4512_v19, %v6759_v39  ;;  %4515 = vrcp.f32 %v6781_v55  ;;  %3434 = vmatpush.msra.mxu3 %v6623_v42  ;;  %vm3032_vm8 = vweird.f32 %v4512_v19  ;;  %3375 = vmatpush.msrb.mxu0 %v6627_v63  ;;  %v3057_v39 = vor.u32 1.1754944e-38, %v3056_v43  ;;  %v7569_v43 = vld [vmem:[#allocation28_spill] sm:$0xff] }
 0x7de   :  { %v3046_v52 = vmul.f32 %v4514_v41, %v6763_v15  ;;  %4517 = vtanh.f32 %v3020_v59  ;;  %3395 = vmatpush.msrb.mxu1 %v6629_v58  ;;  %vm3051_vm9 = vweird.f32 %v4514_v41  ;;  %3415 = vmatpush.msrb.mxu2 %v6631_v10  ;;  %vm3033_vm12 = vmor %vm3031_vm10, %vm3032_vm8  ;;  %vm3070_vm1 = vweird.f32 %v6781_v55 }
 0x7df   :  { %v3028_v56 = vsub.f32 1.0, %v3027_v34  ;;  %3435 = vmatpush.msra.mxu3 %v6635_v3  ;;  %3376 = vmatpush.msrb.mxu0 %v6639_v1  ;;  %vm3052_vm13 = vmor %vm3050_vm11, %vm3051_vm9 }
 0x7e0   :  { %v3047_v54 = vsub.f32 1.0, %v3046_v52  ;;  %v3054_v52 = vand.u32 2147483647, %v6763_v15  ;;  %3396 = vmatpush.msrb.mxu1 %v6641_v13  ;;  %3416 = vmatpush.msrb.mxu2 %v6643_v11 }
 0x7e1   :  { %v3029_v26 = vmul.f32 %v4512_v19, %v3028_v56  ;;  %v3038_v56 = vor.u32 1.1754944e-38, %v3037_v37  ;;  %3436 = vmatpush.msra.mxu3 %v6647_v38  ;;  %3377 = vmatpush.msrb.mxu0 %v6651_v25 }
 0x7e2   :  { %v3048_v34 = vmul.f32 %v4514_v41, %v3047_v54  ;;  %3397 = vmatpush.msrb.mxu1 %v6653_v14  ;;  %vm3055_vm15 = vcmp.eq.f32.partialorder %v3054_v52, 8.507059e+37  ;;  %3417 = vmatpush.msrb.mxu2 %v6655_v22 }
 0x7e3   :  { %v6806_v59 = vpop.eup %4515  ;;  %v3030_v42 = vadd.f32 %v4512_v19, %v3029_v26  ;;  %3437 = vmatpush.msra.mxu3 %v6659_v23  ;;  %3378 = vmatpush.msrb.mxu0 %v6663_v33 }
 0x7e4   :  { %v3049_v54 = vadd.f32 %v4514_v41, %v3048_v34  ;;  %v3066_v58 = vmul.f32 %v6806_v59, %v6781_v55  ;;  %v4518_v15 = vpop.eup %4517  ;;  %3398 = vmatpush.msrb.mxu1 %v6665_v20  ;;  %3418 = vmatpush.msrb.mxu2 %v6667_v48  ;;  %vm3071_vm0 = vweird.f32 %v6806_v59 }
 0x7e5   :  { %v3034_v26 = vsel %vm3033_vm12, %v4512_v19, %v3030_v42  ;;  %3438 = vmatpush.msra.mxu3 %v6675_v35  ;;  %3379 = vmatpush.msrb.mxu0 %v6679_v44  ;;  %vm3072_vm2 = vmor %vm3070_vm1, %vm3071_vm0 }
 0x7e6   :  { %v3039_v13 = vsel %vm3036_vm14, %v3038_v56, %v3034_v26  ;;  %v3053_v37 = vsel %vm3052_vm13, %v4514_v41, %v3049_v54  ;;  %v3067_v34 = vsub.f32 1.0, %v3066_v58  ;;  %3399 = vmatpush.msrb.mxu1 %v6681_v31  ;;  %3419 = vmatpush.msrb.mxu2 %v6683_v0  ;;  %v7571_v56 = vld [vmem:[#allocation35_spill] sm:$0xff] }
 0x7e7   :  { %v3058_v1 = vsel %vm3055_vm15, %v3057_v39, %v3053_v37  ;;  %v3081_v38 = vmul.f32 %v4518_v15, %v3039_v13  ;;  %3439 = vmatpush.msra.mxu3 %v6687_v36  ;;  %3380 = vmatpush.msrb.mxu0 %v6691_v50  ;;  %v3074_v13 = vand.u32 2147483647, %v6781_v55  ;;  %v7572_v54 = vld [vmem:[#allocation23_spill] sm:$0xff]  ;;  %v7576_v37 = vld [vmem:[#allocation60_spill] sm:$0xff] }
 0x7e8   :  { %v3080_v42 = vmul.f32 %v3058_v1, %v6582_v29  ;;  %v3068_v19 = vmul.f32 %v6806_v59, %v3067_v34  ;;  %3400 = vmatpush.msrb.mxu1 %v6693_v8  ;;  %v3076_v1 = vand.u32 2147483648, %v6781_v55  ;;  %3420 = vmatpush.msrb.mxu2 %v6695_v16  ;;  %v7573_v55 = vld [vmem:[#allocation29_spill] sm:$0xff]  ;;  %v7574_v39 = vld [vmem:[#allocation59_spill] sm:$0xff]  ;;  %v7581_v34 = vld [vmem:[#allocation56_spill] sm:$0xff] }
 0x7e9   :  { %3440 = vmatpush.msra.mxu3 %v6699_v46  ;;  %3381 = vmatpush.msrb.mxu0 %v6703_v17  ;;  %vm3075_vm3 = vcmp.eq.f32.partialorder %v3074_v13, 8.507059e+37 }
 0x7ea   :  { %v6830_v58 = vadd.f32 %v3081_v38, %v3080_v42  ;;  %v3069_v29 = vadd.f32 %v6806_v59, %v3068_v19  ;;  %3401 = vmatpush.msrb.mxu1 %v6705_v4  ;;  %3421 = vmatpush.msrb.mxu2 %v6707_v53  ;;  %v7568_v38 = vld [vmem:[#allocation22_spill] sm:$0xff]  ;;  %v3077_v52 = vor.u32 1.1754944e-38, %v3076_v1  ;;  %v7582_v42 = vld [vmem:[#allocation33_spill] sm:$0xff] }
 0x7eb   :  { %3441 = vmatpush.msra.mxu3 %v7568_v38  ;;  %3382 = vmatpush.msrb.mxu0 %v7569_v43 }
 0x7ec   :  { %4519 = vtanh.f32 %v6830_v58  ;;  %v3073_v41 = vsel %vm3072_vm2, %v6806_v59, %v3069_v29  ;;  %3402 = vmatpush.msrb.mxu1 %v7570_v18  ;;  %3422 = vmatpush.msrb.mxu2 %v7571_v56 }
 0x7ed   :  { %3442 = vmatpush.msra.mxu3 %v7572_v54  ;;  %3383 = vmatpush.msrb.mxu0 %v7573_v55  ;;  %v3078_v15 = vsel %vm3075_vm3, %v3077_v52, %v3073_v41 }
 0x7ee   :  { %3403 = vmatpush.msrb.mxu1 %v7574_v39  ;;  %3423 = vmatpush.msrb.mxu2 %v6731_v62 }
 0x7ef   :  { %3443 = vmatpush.msra.mxu3 %v6733_v57  ;;  %3384 = vmatpush.msrb.mxu0 %v6737_v2 }
 0x7f0   :  { %3404 = vmatpush.msrb.mxu1 %v6739_v21  ;;  %3424 = vmatpush.msrb.mxu2 %v6743_v47 }
 0x7f1   :  { %3444 = vmatpush.msra.mxu3 %v6745_v9  ;;  %3385 = vmatpush.msrb.mxu0 %v6749_v30 }
 0x7f2   :  { %v4520_v26 = vpop.eup %4519  ;;  %3405 = vmatpush.msrb.mxu1 %v6751_v51  ;;  %3425 = vmatpush.msrb.mxu2 %v7576_v37 }
 0x7f3   :  { %v6857_v59 = vmul.f32 %v4520_v26, %v3078_v15  ;;  %3445 = vmatpush.msra.mxu3 %v6757_v24  ;;  %v7583_v15 = vld [vmem:[#allocation47_spill] sm:$0xff] }
 0x7f5   :  { %7575 = vst [vmem:[#allocation38_spill] sm:$0xff] %v6857_v59  ;;  %3170 = vmatmul.f32.vlgmr.msra.gmra.mxu0 %v6857_v59  ;;  %3190 = vmatmul.f32.vlgmr.msra.gmra.mxu1 %v6857_v59 }
 0x7f6   :  { %3210 = vmatmul.f32.vlgmr.msra.gmra.mxu2 %v6857_v59  ;;  %3230 = vmatmul.f32.vlgmr.msrb.gmra.mxu3 %v6857_v59 }
 0x7f7   :  { %3626 = vmatpush.msra.mxu2 %v6591_v12  ;;  %v7577_v12 = vld [vmem:[#allocation52_spill] sm:$0xff] }
 0x7f9   :  { %3627 = vmatpush.msra.mxu2 %v6594_v40  ;;  %v7578_v40 = vld [vmem:[#allocation39_spill] sm:$0xff] }
 0x7fb   :  { %3628 = vmatpush.msra.mxu2 %v6597_v7  ;;  %v2269_v7 = vadd.f32 %v7578_v40, %v7577_v12 }
 0x7fd   :  { %3629 = vmatpush.msra.mxu2 %v6607_v49  ;;  %v7579_v49 = vld [vmem:[#allocation53_spill] sm:$0xff] }
 0x7ff   :  { %3630 = vmatpush.msra.mxu2 %v6619_v6  ;;  %v7580_v6 = vld [vmem:[#allocation24_spill] sm:$0xff] }
 0x801   :  { %3631 = vmatpush.msra.mxu2 %v6631_v10  ;;  %v2310_v10 = vadd.f32 %v7580_v6, %v7579_v49 }
 0x803   :  { %3632 = vmatpush.msra.mxu2 %v6643_v11 }
 0x805   :  { %3633 = vmatpush.msra.mxu2 %v6655_v22 }
 0x807   :  { %3634 = vmatpush.msra.mxu2 %v6667_v48 }
 0x809   :  { %3635 = vmatpush.msra.mxu2 %v6683_v0 }
 0x80b   :  { %3636 = vmatpush.msra.mxu2 %v6695_v16 }
 0x80d   :  { %3637 = vmatpush.msra.mxu2 %v6707_v53 }
 0x80f   :  { %3638 = vmatpush.msra.mxu2 %v7571_v56 }
 0x811   :  { %3639 = vmatpush.msra.mxu2 %v6731_v62  ;;  %v2392_v62 = vadd.f32 %v7582_v42, %v7581_v34 }
 0x813   :  { %3640 = vmatpush.msra.mxu2 %v6743_v47 }
 0x815   :  { %3641 = vmatpush.msra.mxu2 %v7576_v37  ;;  %v2351_v37 = vadd.f32 %v7583_v15, %v7548_v27 }
 0x872   :  { %v3171_v11 = vpop.f32.mrf.mxu0  ;;  %v3191_v22 = vpop.f32.mrf.mxu1 }
 0x873   :  { %v3234_v48 = vadd.f32 %v3171_v11, %v2269_v7  ;;  %v3235_v0 = vadd.f32 %v3191_v22, %v2310_v10 }
 0x875   :  { %v4300_v16 = vmul.f32 -1.442695, %v3234_v48  ;;  %v4301_v53 = vmul.f32 -1.442695, %v3235_v0 }
 0x877   :  { %4521 = vpow2.f32 %v4300_v16 }
 0x878   :  { %4523 = vpow2.f32 %v4301_v53 }
 0x879   :  { %v3231_v47 = vpop.f32.mrf.mxu3  ;;  %v3211_v56 = vpop.f32.mrf.mxu2 }
 0x87a   :  { %v3237_v19 = vadd.f32 %v3231_v47, %v2392_v62  ;;  %v3236_v6 = vadd.f32 %v3211_v56, %v2351_v37 }
 0x87c   :  { %v4302_v29 = vmul.f32 -1.442695, %v3237_v19 }
 0x87d   :  { %v4522_v1 = vpop.eup %4521 }
 0x87e   :  { %v4524_v13 = vpop.eup %4523  ;;  %v3241_v41 = vadd.f32 1.0, %v4522_v1  ;;  %4525 = vpow2.f32 %v4302_v29 }
 0x87f   :  { %v3260_v52 = vadd.f32 1.0, %v4524_v13 }
 0x880   :  { %4527 = vrcp.f32 %v3241_v41  ;;  %v3253_v16 = vand.u32 2147483648, %v3241_v41  ;;  %v3251_v62 = vand.u32 2147483647, %v3241_v41  ;;  %vm3247_vm6 = vweird.f32 %v3241_v41 }
 0x881   :  { %4529 = vrcp.f32 %v3260_v52  ;;  %v3272_v53 = vand.u32 2147483648, %v3260_v52  ;;  %v3270_v19 = vand.u32 2147483647, %v3260_v52  ;;  %vm3266_vm7 = vweird.f32 %v3260_v52 }
 0x882   :  { %v3254_v13 = vor.u32 1.1754944e-38, %v3253_v16  ;;  %vm3252_vm10 = vcmp.eq.f32.partialorder %v3251_v62, 8.507059e+37 }
 0x883   :  { %v3273_v15 = vor.u32 1.1754944e-38, %v3272_v53  ;;  %vm3271_vm11 = vcmp.eq.f32.partialorder %v3270_v19, 8.507059e+37 }
 0x884   :  { %v4526_v26 = vpop.eup %4525 }
 0x885   :  { %v3280_v40 = vadd.f32 1.0, %v4526_v26 }
 0x886   :  { %v4528_v7 = vpop.eup %4527 }
 0x887   :  { %v4530_v10 = vpop.eup %4529  ;;  %v3243_v11 = vmul.f32 %v4528_v7, %v3241_v41  ;;  %4531 = vrcp.f32 %v3280_v40  ;;  %vm3248_vm4 = vweird.f32 %v4528_v7  ;;  %v3292_v16 = vand.u32 2147483648, %v3280_v40 }
 0x888   :  { %v3262_v22 = vmul.f32 %v4530_v10, %v3260_v52  ;;  %4533 = vtanh.f32 %v3236_v6  ;;  %vm3267_vm5 = vweird.f32 %v4530_v10  ;;  %vm3249_vm8 = vmor %vm3247_vm6, %vm3248_vm4  ;;  %vm3286_vm13 = vweird.f32 %v3280_v40 }
 0x889   :  { %v3244_v48 = vsub.f32 1.0, %v3243_v11  ;;  %vm3268_vm9 = vmor %vm3266_vm7, %vm3267_vm5  ;;  %v3293_v62 = vor.u32 1.1754944e-38, %v3292_v16 }
 0x88a   :  { %v3263_v0 = vsub.f32 1.0, %v3262_v22 }
 0x88b   :  { %v3245_v42 = vmul.f32 %v4528_v7, %v3244_v48 }
 0x88c   :  { %v3264_v47 = vmul.f32 %v4530_v10, %v3263_v0 }
 0x88d   :  { %v4532_v29 = vpop.eup %4531  ;;  %v3246_v1 = vadd.f32 %v4528_v7, %v3245_v42 }
 0x88e   :  { %v3265_v56 = vadd.f32 %v4530_v10, %v3264_v47  ;;  %v3282_v26 = vmul.f32 %v4532_v29, %v3280_v40  ;;  %v4534_v6 = vpop.eup %4533  ;;  %vm3287_vm12 = vweird.f32 %v4532_v29 }
 0x88f   :  { %v3250_v37 = vsel %vm3249_vm8, %v4528_v7, %v3246_v1  ;;  %v3290_v7 = vand.u32 2147483647, %v3280_v40  ;;  %vm3288_vm14 = vmor %vm3286_vm13, %vm3287_vm12  ;;  %v6914_v40 = vld [vmem:[#allocation13 + $0x1c0] sm:$0xff]  ;;  %v6918_v1 = vld [vmem:[#allocation13 + $0x1d8] sm:$0xff] }
 0x890   :  { %v3255_v11 = vsel %vm3252_vm10, %v3254_v13, %v3250_v37  ;;  %v3269_v22 = vsel %vm3268_vm9, %v4530_v10, %v3265_v56  ;;  %v3283_v48 = vsub.f32 1.0, %v3282_v26  ;;  %v6923_v13 = vld [vmem:[#allocation13 + $0x1a0] sm:$0xff]  ;;  %v6925_v56 = vld [vmem:[#allocation13 + $0x1a8] sm:$0xff]  ;;  %v7585_v26 = vld [vmem:[#allocation45_spill] sm:$0xff] }
 0x891   :  { %v3274_v0 = vsel %vm3271_vm11, %v3273_v15, %v3269_v22  ;;  %v3297_v59 = vmul.f32 %v4534_v6, %v3255_v11  ;;  %vm3291_vm15 = vcmp.eq.f32.partialorder %v3290_v7, 8.507059e+37  ;;  %v7586_v15 = vld [vmem:[#allocation40_spill] sm:$0xff]  ;;  %v7587_v37 = vld [vmem:[#allocation27_spill] sm:$0xff] }
 0x892   :  { %v3296_v27 = vmul.f32 %v3274_v0, %v6830_v58  ;;  %v3284_v42 = vmul.f32 %v4532_v29, %v3283_v48  ;;  %v6907_v58 = vld [vmem:[#allocation13 + $0x1e8] sm:$0xff] }
 0x893   :  { %3606 = vmatpush.msra.mxu1 %v6907_v58 }
 0x894   :  { %v6896_v41 = vadd.f32 %v3297_v59, %v3296_v27  ;;  %v3285_v52 = vadd.f32 %v4532_v29, %v3284_v42  ;;  %v6905_v27 = vld [vmem:[#allocation13 + $0x1e0] sm:$0xff]  ;;  %v6909_v59 = vld [vmem:[#allocation13 + $0x1f8] sm:$0xff] }
 0x895   :  { %3586 = vmatpush.msra.mxu0 %v6905_v27  ;;  %3646 = vmatpush.msrb.mxu3 %v6909_v59 }
 0x896   :  { %4535 = vtanh.f32 %v6896_v41  ;;  %v3289_v53 = vsel %vm3288_vm14, %v4532_v29, %v3285_v52  ;;  %v6916_v29 = vld [vmem:[#allocation13 + $0x1c8] sm:$0xff] }
 0x897   :  { %v3294_v47 = vsel %vm3291_vm15, %v3293_v62, %v3289_v53  ;;  %3587 = vmatpush.msra.mxu0 %v6914_v40  ;;  %3607 = vmatpush.msra.mxu1 %v6916_v29 }
 0x898   :  { %3647 = vmatpush.msrb.mxu3 %v6918_v1 }
 0x899   :  { %3588 = vmatpush.msra.mxu0 %v6923_v13  ;;  %3608 = vmatpush.msra.mxu1 %v6925_v56 }
 0x89a   :  { %3648 = vmatpush.msrb.mxu3 %v6599_v45  ;;  %v7588_v45 = vld [vmem:[#allocation32_spill] sm:$0xff] }
 0x89b   :  { %3589 = vmatpush.msra.mxu0 %v6603_v32  ;;  %3609 = vmatpush.msra.mxu1 %v6605_v28  ;;  %v7589_v32 = vld [vmem:[#allocation31_spill] sm:$0xff] }
 0x89c   :  { %v4536_v10 = vpop.eup %4535  ;;  %3649 = vmatpush.msrb.mxu3 %v6611_v60  ;;  %v7590_v28 = vld [vmem:[#allocation43_spill] sm:$0xff] }
 0x89d   :  { %v6899_v19 = vmul.f32 %v4536_v10, %v3294_v47  ;;  %3590 = vmatpush.msra.mxu0 %v6615_v61  ;;  %3610 = vmatpush.msra.mxu1 %v6617_v5  ;;  %v2272_v60 = vadd.f32 %v7590_v28, %v7577_v12  ;;  %v7591_v61 = vld [vmem:[#allocation46_spill] sm:$0xff] }
 0x89e   :  { %3650 = vmatpush.msrb.mxu3 %v7585_v26  ;;  %v2313_v5 = vadd.f32 %v7591_v61, %v7579_v49 }
 0x89f   :  { %7584 = vst [vmem:[#allocation22_spill] sm:$0xff] %v6899_v19  ;;  %3386 = vmatmul.f32.vlgmr.msrb.gmra.mxu0 %v6899_v19  ;;  %3406 = vmatmul.f32.vlgmr.msrb.gmra.mxu1 %v6899_v19 }
 0x8a0   :  { %3426 = vmatmul.f32.vlgmr.msrb.gmra.mxu2 %v6899_v19  ;;  %3446 = vmatmul.f32.vlgmr.msra.gmra.mxu3 %v6899_v19  ;;  %v7135_v19 = vld [vmem:[#allocation13 + $0x50] sm:$0xff] }
 0x8a1   :  { %3591 = vmatpush.msra.mxu0 %v6627_v63  ;;  %3611 = vmatpush.msra.mxu1 %v7586_v15 }
 0x8a2   :  { %3651 = vmatpush.msrb.mxu3 %v6635_v3 }
 0x8a3   :  { %3592 = vmatpush.msra.mxu0 %v7587_v37  ;;  %3612 = vmatpush.msra.mxu1 %v7588_v45 }
 0x8a4   :  { %3652 = vmatpush.msrb.mxu3 %v7589_v32 }
 0x8a5   :  { %3593 = vmatpush.msra.mxu0 %v6651_v25  ;;  %3613 = vmatpush.msra.mxu1 %v6653_v14 }
 0x8a6   :  { %3653 = vmatpush.msrb.mxu3 %v6659_v23 }
 0x8a7   :  { %3594 = vmatpush.msra.mxu0 %v6663_v33  ;;  %3614 = vmatpush.msra.mxu1 %v6665_v20  ;;  %v7592_v33 = vld [vmem:[#allocation26_spill] sm:$0xff] }
 0x8a8   :  { %3654 = vmatpush.msrb.mxu3 %v6675_v35  ;;  %v2395_v20 = vadd.f32 %v7592_v33, %v7581_v34 }
 0x8a9   :  { %3595 = vmatpush.msra.mxu0 %v6679_v44  ;;  %3615 = vmatpush.msra.mxu1 %v6681_v31 }
 0x8aa   :  { %3655 = vmatpush.msrb.mxu3 %v6687_v36 }
 0x8ab   :  { %3596 = vmatpush.msra.mxu0 %v6691_v50  ;;  %3616 = vmatpush.msra.mxu1 %v6693_v8 }
 0x8ac   :  { %3656 = vmatpush.msrb.mxu3 %v6699_v46 }
 0x8ad   :  { %3597 = vmatpush.msra.mxu0 %v6703_v17  ;;  %3617 = vmatpush.msra.mxu1 %v6705_v4  ;;  %v7593_v17 = vld [vmem:[#allocation58_spill] sm:$0xff]  ;;  %v7594_v4 = vld [vmem:[#allocation44_spill] sm:$0xff] }
 0x8ae   :  { %3657 = vmatpush.msrb.mxu3 %v7568_v38 }
 0x8af   :  { %3598 = vmatpush.msra.mxu0 %v7569_v43  ;;  %3618 = vmatpush.msra.mxu1 %v7570_v18 }
 0x8b0   :  { %3658 = vmatpush.msrb.mxu3 %v7572_v54 }
 0x8b1   :  { %3599 = vmatpush.msra.mxu0 %v7573_v55  ;;  %3619 = vmatpush.msra.mxu1 %v7574_v39 }
 0x8b2   :  { %3659 = vmatpush.msrb.mxu3 %v6733_v57 }
 0x8b3   :  { %3600 = vmatpush.msra.mxu0 %v6737_v2  ;;  %3620 = vmatpush.msra.mxu1 %v6739_v21 }
 0x8b4   :  { %3660 = vmatpush.msrb.mxu3 %v6745_v9  ;;  %v2354_v9 = vadd.f32 %v7594_v4, %v7593_v17  ;;  %v7027_v4 = vld [vmem:[#allocation13 + $0x178] sm:$0xff] }
 0x8b5   :  { %3601 = vmatpush.msra.mxu0 %v6749_v30  ;;  %3621 = vmatpush.msra.mxu1 %v6751_v51 }
 0x8b6   :  { %3661 = vmatpush.msrb.mxu3 %v6757_v24 }
 0x8b7   :  { %3802 = vmatpush.msrb.mxu0 %v6905_v27  ;;  %3822 = vmatpush.msrb.mxu1 %v6907_v58 }
 0x8b8   :  { %3862 = vmatpush.msra.mxu3 %v6909_v59 }
 0x8b9   :  { %3803 = vmatpush.msrb.mxu0 %v6914_v40  ;;  %3823 = vmatpush.msrb.mxu1 %v6916_v29 }
 0x8ba   :  { %3863 = vmatpush.msra.mxu3 %v6918_v1 }
 0x8bb   :  { %3804 = vmatpush.msrb.mxu0 %v6923_v13  ;;  %3824 = vmatpush.msrb.mxu1 %v6925_v56 }
 0x91c   :  { %v3387_v63 = vpop.f32.mrf.mxu0  ;;  %v3407_v3 = vpop.f32.mrf.mxu1 }
 0x91d   :  { %v3450_v6 = vadd.f32 %v3387_v63, %v2272_v60  ;;  %v3451_v25 = vadd.f32 %v3407_v3, %v2313_v5 }
 0x91f   :  { %v4303_v14 = vmul.f32 -1.442695, %v3450_v6  ;;  %v4304_v23 = vmul.f32 -1.442695, %v3451_v25 }
 0x921   :  { %4537 = vpow2.f32 %v4303_v14 }
 0x922   :  { %4539 = vpow2.f32 %v4304_v23 }
 0x923   :  { %v3447_v35 = vpop.f32.mrf.mxu3  ;;  %v3427_v2 = vpop.f32.mrf.mxu2 }
 0x924   :  { %v3453_v44 = vadd.f32 %v3447_v35, %v2395_v20  ;;  %v3452_v30 = vadd.f32 %v3427_v2, %v2354_v9  ;;  %v6998_v20 = vld [vmem:[#allocation13 + $0x1d0] sm:$0xff]  ;;  %v7021_v2 = vld [vmem:[#allocation13 + $0x168] sm:$0xff]  ;;  %v7031_v9 = vld [vmem:[#allocation13 + $0x140] sm:$0xff] }
 0x925   :  { %v7001_v35 = vld [vmem:[#allocation13 + $0x1b0] sm:$0xff] }
 0x926   :  { %v4305_v31 = vmul.f32 -1.442695, %v3453_v44  ;;  %v7003_v44 = vld [vmem:[#allocation13 + $0x1b8] sm:$0xff] }
 0x927   :  { %v4538_v36 = vpop.eup %4537  ;;  %3864 = vmatpush.msra.mxu3 %v7003_v44 }
 0x928   :  { %v4540_v50 = vpop.eup %4539  ;;  %v3457_v8 = vadd.f32 1.0, %v4538_v36  ;;  %4541 = vpow2.f32 %v4305_v31  ;;  %v7007_v31 = vld [vmem:[#allocation13 + $0x180] sm:$0xff]  ;;  %v7009_v36 = vld [vmem:[#allocation13 + $0x188] sm:$0xff] }
 0x929   :  { %v3476_v46 = vadd.f32 1.0, %v4540_v50  ;;  %v7011_v50 = vld [vmem:[#allocation13 + $0x190] sm:$0xff]  ;;  %3805 = vmatpush.msrb.mxu0 %v7007_v31  ;;  %3825 = vmatpush.msrb.mxu1 %v7009_v36 }
 0x92a   :  { %4543 = vrcp.f32 %v3457_v8  ;;  %v3469_v55 = vand.u32 2147483648, %v3457_v8  ;;  %v3467_v22 = vand.u32 2147483647, %v3457_v8  ;;  %vm3463_vm2 = vweird.f32 %v3457_v8 }
 0x92b   :  { %4545 = vrcp.f32 %v3476_v46  ;;  %v3488_v39 = vand.u32 2147483648, %v3476_v46  ;;  %v3486_v0 = vand.u32 2147483647, %v3476_v46  ;;  %vm3482_vm3 = vweird.f32 %v3476_v46  ;;  %3826 = vmatpush.msrb.mxu1 %v7021_v2 }
 0x92c   :  { %v3470_v16 = vor.u32 1.1754944e-38, %v3469_v55  ;;  %vm3468_vm6 = vcmp.eq.f32.partialorder %v3467_v22, 8.507059e+37  ;;  %v7057_v55 = vld [vmem:[#allocation13 + $0x108] sm:$0xff]  ;;  %v7067_v22 = vld [vmem:[#allocation13 + $0xe0] sm:$0xff] }
 0x92d   :  { %v3489_v62 = vor.u32 1.1754944e-38, %v3488_v39  ;;  %vm3487_vm7 = vcmp.eq.f32.partialorder %v3486_v0, 8.507059e+37  ;;  %v7059_v39 = vld [vmem:[#allocation13 + $0x110] sm:$0xff] }
 0x92e   :  { %v4542_v21 = vpop.eup %4541  ;;  %v7071_v0 = vld [vmem:[#allocation13 + $0xf0] sm:$0xff] }
 0x92f   :  { %v3496_v24 = vadd.f32 1.0, %v4542_v21  ;;  %v7023_v21 = vld [vmem:[#allocation13 + $0x170] sm:$0xff] }
 0x930   :  { %v4544_v57 = vpop.eup %4543 }
 0x931   :  { %v4546_v51 = vpop.eup %4545  ;;  %v3459_v38 = vmul.f32 %v4544_v57, %v3457_v8  ;;  %4547 = vrcp.f32 %v3496_v24  ;;  %vm3464_vm0 = vweird.f32 %v4544_v57  ;;  %v3508_v63 = vand.u32 2147483648, %v3496_v24  ;;  %v7015_v8 = vld [vmem:[#allocation13 + $0x198] sm:$0xff] }
 0x932   :  { %v3478_v43 = vmul.f32 %v4546_v51, %v3476_v46  ;;  %4549 = vtanh.f32 %v3452_v30  ;;  %vm3483_vm1 = vweird.f32 %v4546_v51  ;;  %vm3465_vm4 = vmor %vm3463_vm2, %vm3464_vm0  ;;  %vm3502_vm9 = vweird.f32 %v3496_v24  ;;  %3865 = vmatpush.msra.mxu3 %v7015_v8  ;;  %v7019_v46 = vld [vmem:[#allocation13 + $0x160] sm:$0xff]  ;;  %v7039_v30 = vld [vmem:[#allocation13 + $0x158] sm:$0xff] }
 0x933   :  { %v3460_v18 = vsub.f32 1.0, %v3459_v38  ;;  %vm3484_vm5 = vmor %vm3482_vm3, %vm3483_vm1  ;;  %v3506_v3 = vand.u32 2147483647, %v3496_v24  ;;  %v3509_v25 = vor.u32 1.1754944e-38, %v3508_v63  ;;  %3806 = vmatpush.msrb.mxu0 %v7019_v46  ;;  %v7045_v38 = vld [vmem:[#allocation13 + $0x128] sm:$0xff] }
 0x934   :  { %v3479_v54 = vsub.f32 1.0, %v3478_v43  ;;  %3866 = vmatpush.msra.mxu3 %v7027_v4  ;;  %v7047_v43 = vld [vmem:[#allocation13 + $0x130] sm:$0xff] }
 0x935   :  { %v3461_v11 = vmul.f32 %v4544_v57, %v3460_v18  ;;  %vm3507_vm11 = vcmp.eq.f32.partialorder %v3506_v3, 8.507059e+37  ;;  %3807 = vmatpush.msrb.mxu0 %v7031_v9  ;;  %v7051_v18 = vld [vmem:[#allocation13 + $0x138] sm:$0xff] }
 0x936   :  { %v3480_v48 = vmul.f32 %v4546_v51, %v3479_v54  ;;  %3867 = vmatpush.msra.mxu3 %v7039_v30  ;;  %v7055_v54 = vld [vmem:[#allocation13 + $0x100] sm:$0xff] }
 0x937   :  { %v4548_v42 = vpop.eup %4547  ;;  %v3462_v52 = vadd.f32 %v4544_v57, %v3461_v11  ;;  %v7063_v11 = vld [vmem:[#allocation13 + $0x118] sm:$0xff] }
 0x938   :  { %v3481_v7 = vadd.f32 %v4546_v51, %v3480_v48  ;;  %v3498_v53 = vmul.f32 %v4548_v42, %v3496_v24  ;;  %v4550_v47 = vpop.eup %4549  ;;  %vm3503_vm8 = vweird.f32 %v4548_v42  ;;  %v7033_v24 = vld [vmem:[#allocation13 + $0x148] sm:$0xff]  ;;  %3868 = vmatpush.msra.mxu3 %v7051_v18 }
 0x939   :  { %v3466_v10 = vsel %vm3465_vm4, %v4544_v57, %v3462_v52  ;;  %vm3504_vm10 = vmor %vm3502_vm9, %vm3503_vm8  ;;  %v7035_v57 = vld [vmem:[#allocation13 + $0x150] sm:$0xff]  ;;  %3827 = vmatpush.msrb.mxu1 %v7033_v24  ;;  %v7069_v48 = vld [vmem:[#allocation13 + $0xe8] sm:$0xff] }
 0x93a   :  { %v3471_v26 = vsel %vm3468_vm6, %v3470_v16, %v3466_v10  ;;  %v3485_v15 = vsel %vm3484_vm5, %v4546_v51, %v3481_v7  ;;  %v3499_v37 = vsub.f32 1.0, %v3498_v53  ;;  %v7043_v51 = vld [vmem:[#allocation13 + $0x120] sm:$0xff]  ;;  %3869 = vmatpush.msra.mxu3 %v7063_v11  ;;  %v7597_v16 = vld [vmem:[#allocation37_spill] sm:$0xff]  ;;  %v7079_v53 = vld [vmem:[#allocation13 + $0xf8] sm:$0xff] }
 0x93b   :  { %v3490_v45 = vsel %vm3487_vm7, %v3489_v62, %v3485_v15  ;;  %v3513_v32 = vmul.f32 %v4550_v47, %v3471_v26  ;;  %3808 = vmatpush.msrb.mxu0 %v7043_v51  ;;  %3828 = vmatpush.msrb.mxu1 %v7045_v38  ;;  %v2316_v7 = vadd.f32 %v7597_v16, %v7579_v49  ;;  %v7083_v47 = vld [vmem:[#allocation13 + $0xc0] sm:$0xff]  ;;  %v7085_v26 = vld [vmem:[#allocation13 + $0xc8] sm:$0xff]  ;;  %v7087_v15 = vld [vmem:[#allocation13 + $0xd0] sm:$0xff] }
 0x93c   :  { %v3512_v28 = vmul.f32 %v3490_v45, %v6896_v41  ;;  %v3500_v60 = vmul.f32 %v4548_v42, %v3499_v37  ;;  %v6995_v41 = vld [vmem:[#allocation13 + $0x1f0] sm:$0xff]  ;;  %3870 = vmatpush.msra.mxu3 %v7079_v53  ;;  %v7119_v16 = vld [vmem:[#allocation13 + $0x68] sm:$0xff] }
 0x93d   :  { %3842 = vmatpush.msrb.mxu2 %v6995_v41  ;;  %3809 = vmatpush.msrb.mxu0 %v7055_v54  ;;  %7600 = vst [vmem:[#allocation23_spill] sm:$0xff] %v7119_v16  ;;  %v7143_v49 = vld [vmem:[#allocation13 + $0x28] sm:$0xff] }
 0x93e   :  { %v6986_v61 = vadd.f32 %v3513_v32, %v3512_v28  ;;  %v3501_v5 = vadd.f32 %v4548_v42, %v3500_v60  ;;  %3829 = vmatpush.msrb.mxu1 %v7057_v55  ;;  %v7091_v32 = vld [vmem:[#allocation13 + $0xd8] sm:$0xff]  ;;  %v7095_v28 = vld [vmem:[#allocation13 + $0xa0] sm:$0xff]  ;;  %v7097_v60 = vld [vmem:[#allocation13 + $0xa8] sm:$0xff] }
 0x93f   :  { %3843 = vmatpush.msrb.mxu2 %v6998_v20  ;;  %3810 = vmatpush.msrb.mxu0 %v7067_v22 }
 0x940   :  { %4551 = vtanh.f32 %v6986_v61  ;;  %v3505_v6 = vsel %vm3504_vm10, %v4548_v42, %v3501_v5  ;;  %v7596_v42 = vld [vmem:[#allocation41_spill] sm:$0xff]  ;;  %3830 = vmatpush.msrb.mxu1 %v7069_v48  ;;  %3871 = vmatpush.msra.mxu3 %v7091_v32 }
 0x941   :  { %v3510_v23 = vsel %vm3507_vm11, %v3509_v25, %v3505_v6  ;;  %3844 = vmatpush.msrb.mxu2 %v7001_v35  ;;  %v2275_v52 = vadd.f32 %v7596_v42, %v7577_v12  ;;  %3811 = vmatpush.msrb.mxu0 %v7083_v47  ;;  %v7099_v5 = vld [vmem:[#allocation13 + $0xb0] sm:$0xff]  ;;  %v7103_v6 = vld [vmem:[#allocation13 + $0xb8] sm:$0xff]  ;;  %v7107_v25 = vld [vmem:[#allocation13 + $0x80] sm:$0xff] }
 0x942   :  { %3831 = vmatpush.msrb.mxu1 %v7085_v26  ;;  %3872 = vmatpush.msra.mxu3 %v7103_v6  ;;  %v7115_v42 = vld [vmem:[#allocation13 + $0x98] sm:$0xff]  ;;  %v7147_v12 = vld [vmem:[#allocation13 + $0x30] sm:$0xff] }
 0x943   :  { %3845 = vmatpush.msrb.mxu2 %v7011_v50  ;;  %3812 = vmatpush.msrb.mxu0 %v7095_v28  ;;  %7598 = vst [vmem:[#allocation36_spill] sm:$0xff] %v7115_v42 }
 0x944   :  { %3832 = vmatpush.msrb.mxu1 %v7097_v60  ;;  %3873 = vmatpush.msra.mxu3 %v7115_v42 }
 0x945   :  { %3846 = vmatpush.msrb.mxu2 %v7023_v21  ;;  %3813 = vmatpush.msrb.mxu0 %v7107_v25 }
 0x946   :  { %v4552_v14 = vpop.eup %4551 }
 0x947   :  { %v6989_v33 = vmul.f32 %v4552_v14, %v3510_v23  ;;  %3847 = vmatpush.msrb.mxu2 %v7035_v57  ;;  %v7109_v14 = vld [vmem:[#allocation13 + $0x88] sm:$0xff]  ;;  %v7111_v23 = vld [vmem:[#allocation13 + $0x90] sm:$0xff] }
 0x948   :  { %3833 = vmatpush.msrb.mxu1 %v7109_v14 }
 0x949   :  { %7595 = vst [vmem:[#allocation28_spill] sm:$0xff] %v6989_v33  ;;  %3602 = vmatmul.f32.vlgmr.msra.gmra.mxu0 %v6989_v33  ;;  %3622 = vmatmul.f32.vlgmr.msra.gmra.mxu1 %v6989_v33 }
 0x94a   :  { %3642 = vmatmul.f32.vlgmr.msra.gmra.mxu2 %v6989_v33  ;;  %3662 = vmatmul.f32.vlgmr.msrb.gmra.mxu3 %v6989_v33  ;;  %v7133_v33 = vld [vmem:[#allocation13 + $0x48] sm:$0xff] }
 0x94b   :  { %3848 = vmatpush.msrb.mxu2 %v7047_v43  ;;  %3834 = vmatpush.msrb.mxu1 %v7119_v16  ;;  %7605 = vst [vmem:[#allocation39_spill] sm:$0xff] %v7133_v33  ;;  %v7149_v16 = vld [vmem:[#allocation13 + $0x38] sm:$0xff] }
 0x94d   :  { %3849 = vmatpush.msrb.mxu2 %v7059_v39  ;;  %3835 = vmatpush.msrb.mxu1 %v7133_v33  ;;  %v7161_v33 = vld [vmem:[#allocation13 + $0x18] sm:$0xff] }
 0x94f   :  { %3850 = vmatpush.msrb.mxu2 %v7071_v0  ;;  %3836 = vmatpush.msrb.mxu1 %v7143_v49 }
 0x951   :  { %3851 = vmatpush.msrb.mxu2 %v7087_v15 }
 0x953   :  { %3852 = vmatpush.msrb.mxu2 %v7099_v5 }
 0x955   :  { %3853 = vmatpush.msrb.mxu2 %v7111_v23 }
 0x9c6   :  { %v3603_v62 = vpop.f32.mrf.mxu0  ;;  %v3623_v10 = vpop.f32.mrf.mxu1 }
 0x9c7   :  { %v3666_v37 = vadd.f32 %v3603_v62, %v2275_v52  ;;  %v3667_v45 = vadd.f32 %v3623_v10, %v2316_v7  ;;  %v7117_v52 = vld [vmem:[#allocation13 + $0x60] sm:$0xff]  ;;  %v7601_v7 = vld [vmem:[#allocation48_spill] sm:$0xff]  ;;  %v7125_v10 = vld [vmem:[#allocation13 + $0x70] sm:$0xff] }
 0x9c8   :  { %7599 = vst [vmem:[#allocation35_spill] sm:$0xff] %v7117_v52  ;;  %v2398_v62 = vadd.f32 %v7601_v7, %v7581_v34  ;;  %3814 = vmatpush.msrb.mxu0 %v7117_v52  ;;  %3854 = vmatpush.msrb.mxu2 %v7125_v10  ;;  %v7141_v34 = vld [vmem:[#allocation13 + $0x20] sm:$0xff] }
 0x9c9   :  { %v4306_v63 = vmul.f32 -1.442695, %v3666_v37  ;;  %v4307_v3 = vmul.f32 -1.442695, %v3667_v45  ;;  %7602 = vst [vmem:[#allocation29_spill] sm:$0xff] %v7125_v10  ;;  %v7127_v37 = vld [vmem:[#allocation13 + $0x78] sm:$0xff] }
 0x9ca   :  { %7603 = vst [vmem:[#allocation59_spill] sm:$0xff] %v7127_v37  ;;  %v7129_v45 = vld [vmem:[#allocation13 + $0x40] sm:$0xff]  ;;  %3874 = vmatpush.msra.mxu3 %v7127_v37  ;;  %3855 = vmatpush.msrb.mxu2 %v7135_v19 }
 0x9cb   :  { %4553 = vpow2.f32 %v4306_v63  ;;  %7604 = vst [vmem:[#allocation60_spill] sm:$0xff] %v7129_v45  ;;  %3815 = vmatpush.msrb.mxu0 %v7129_v45  ;;  %v7159_v45 = vld [vmem:[#allocation13 + $0x10] sm:$0xff] }
 0x9cc   :  { %4555 = vpow2.f32 %v4307_v3  ;;  %v7137_v3 = vld [vmem:[#allocation13 + $0x58] sm:$0xff]  ;;  %7606 = vst [vmem:[#allocation24_spill] sm:$0xff] %v7159_v45  ;;  %3856 = vmatpush.msrb.mxu2 %v7147_v12 }
 0x9cd   :  { %v3663_v63 = vpop.f32.mrf.mxu3  ;;  %3875 = vmatpush.msra.mxu3 %v7137_v3  ;;  %3816 = vmatpush.msrb.mxu0 %v7141_v34 }
 0x9ce   :  { %v3669_v7 = vadd.f32 %v3663_v63, %v2398_v62  ;;  %v7153_v62 = vld [vmem:[#allocation13] sm:$0xff]  ;;  %v7155_v63 = vld [vmem:[#allocation13 + $0x8] sm:$0xff]  ;;  %3857 = vmatpush.msrb.mxu2 %v7159_v45 }
 0x9cf   :  { %3876 = vmatpush.msra.mxu3 %v7149_v16  ;;  %3817 = vmatpush.msrb.mxu0 %v7153_v62 }
 0x9d0   :  { %v4308_v52 = vmul.f32 -1.442695, %v3669_v7  ;;  %3837 = vmatpush.msrb.mxu1 %v7155_v63  ;;  %4058 = vmatpush.msra.mxu2 %v6995_v41 }
 0x9d1   :  { %v4554_v37 = vpop.eup %4553  ;;  %3877 = vmatpush.msra.mxu3 %v7161_v33  ;;  %4018 = vmatpush.msra.mxu0 %v6905_v27 }
 0x9d2   :  { %v4556_v10 = vpop.eup %4555  ;;  %v7163_v42 = vadd.f32 1.0, %v4554_v37  ;;  %4557 = vpow2.f32 %v4308_v52  ;;  %4038 = vmatpush.msra.mxu1 %v6907_v58  ;;  %v3643_v52 = vpop.f32.mrf.mxu2  ;;  %v7607_v37 = vld [vmem:[#allocation50_spill] sm:$0xff]  ;;  %4059 = vmatpush.msra.mxu2 %v6998_v20 }
 0x9d3   :  { %v7167_v7 = vadd.f32 1.0, %v4556_v10  ;;  %4078 = vmatpush.msrb.mxu3 %v6909_v59  ;;  %4019 = vmatpush.msra.mxu0 %v6914_v40  ;;  %v2357_v45 = vadd.f32 %v7607_v37, %v7593_v17  ;;  %v4189_v37 = vld [vmem:[#allocation15 + $0x48] sm:$0xff] }
 0x9d4   :  { %4559 = vrcp.f32 %v7163_v42  ;;  %4039 = vmatpush.msra.mxu1 %v6916_v29  ;;  %4060 = vmatpush.msra.mxu2 %v7001_v35  ;;  %v3685_v41 = vand.u32 2147483648, %v7163_v42  ;;  %vm3679_vm14 = vweird.f32 %v7163_v42 }
 0x9d5   :  { %4561 = vrcp.f32 %v7167_v7  ;;  %4079 = vmatpush.msrb.mxu3 %v6918_v1  ;;  %4020 = vmatpush.msra.mxu0 %v6923_v13  ;;  %v3668_v59 = vadd.f32 %v3643_v52, %v2357_v45  ;;  %v3704_v20 = vand.u32 2147483648, %v7167_v7  ;;  %vm3698_vm15 = vweird.f32 %v7167_v7  ;;  %v7618_v45 = vld [vmem:[#allocation53_spill] sm:$0xff] }
 0x9d6   :  { %4040 = vmatpush.msra.mxu1 %v6925_v56  ;;  %4061 = vmatpush.msra.mxu2 %v7011_v50  ;;  %v4190_v52 = vld [vmem:[#allocation15 + $0x50] sm:$0xff] }
 0x9d7   :  { %4080 = vmatpush.msrb.mxu3 %v7003_v44  ;;  %4021 = vmatpush.msra.mxu0 %v7007_v31  ;;  %v3683_v44 = vand.u32 2147483647, %v7163_v42 }
 0x9d8   :  { %v4558_v10 = vpop.eup %4557  ;;  %4041 = vmatpush.msra.mxu1 %v7009_v36  ;;  %4062 = vmatpush.msra.mxu2 %v7023_v21  ;;  %v3702_v36 = vand.u32 2147483647, %v7167_v7 }
 0x9d9   :  { %v7185_v27 = vadd.f32 1.0, %v4558_v10  ;;  %4081 = vmatpush.msrb.mxu3 %v7015_v8  ;;  %4022 = vmatpush.msra.mxu0 %v7019_v46  ;;  %v3686_v46 = vor.u32 1.1754944e-38, %v3685_v41  ;;  %vm3684_vm2 = vcmp.eq.f32.partialorder %v3683_v44, 8.507059e+37 }
 0x9da   :  { %v4560_v58 = vpop.eup %4559  ;;  %4042 = vmatpush.msra.mxu1 %v7021_v2  ;;  %4063 = vmatpush.msra.mxu2 %v7035_v57  ;;  %vm3703_vm3 = vcmp.eq.f32.partialorder %v3702_v36, 8.507059e+37 }
 0x9db   :  { %v4562_v40 = vpop.eup %4561  ;;  %v3675_v29 = vmul.f32 %v4560_v58, %v7163_v42  ;;  %4563 = vrcp.f32 %v7185_v27  ;;  %4082 = vmatpush.msrb.mxu3 %v7027_v4  ;;  %vm3680_vm12 = vweird.f32 %v4560_v58  ;;  %4023 = vmatpush.msra.mxu0 %v7031_v9  ;;  %v3705_v4 = vor.u32 1.1754944e-38, %v3704_v20  ;;  %v7617_v42 = vld [vmem:[#allocation49_spill] sm:$0xff] }
 0x9dc   :  { %v3694_v1 = vmul.f32 %v4562_v40, %v7167_v7  ;;  %4565 = vtanh.f32 %v3668_v59  ;;  %4043 = vmatpush.msra.mxu1 %v7033_v24  ;;  %vm3699_vm13 = vweird.f32 %v4562_v40  ;;  %vm3681_vm0 = vmor %vm3679_vm14, %vm3680_vm12  ;;  %4064 = vmatpush.msra.mxu2 %v7047_v43  ;;  %vm3718_vm5 = vweird.f32 %v7185_v27  ;;  %v4188_v59 = vld [vmem:[#allocation15 + $0x40] sm:$0xff] }
 0x9dd   :  { %v3676_v13 = vsub.f32 1.0, %v3675_v29  ;;  %4083 = vmatpush.msrb.mxu3 %v7039_v30  ;;  %4024 = vmatpush.msra.mxu0 %v7043_v51  ;;  %vm3700_vm1 = vmor %vm3698_vm15, %vm3699_vm13  ;;  %v7620_v29 = vld [vmem:[#allocation56_spill] sm:$0xff] }
 0x9de   :  { %v3695_v56 = vsub.f32 1.0, %v3694_v1  ;;  %4044 = vmatpush.msra.mxu1 %v7045_v38  ;;  %4065 = vmatpush.msra.mxu2 %v7059_v39  ;;  %v3724_v39 = vand.u32 2147483648, %v7185_v27  ;;  %v7621_v1 = vld [vmem:[#allocation51_spill] sm:$0xff] }
 0x9df   :  { %v3677_v35 = vmul.f32 %v4560_v58, %v3676_v13  ;;  %4084 = vmatpush.msrb.mxu3 %v7051_v18  ;;  %4025 = vmatpush.msra.mxu0 %v7055_v54  ;;  %v2401_v13 = vadd.f32 %v7621_v1, %v7620_v29 }
 0x9e0   :  { %v3696_v31 = vmul.f32 %v4562_v40, %v3695_v56  ;;  %4045 = vmatpush.msra.mxu1 %v7057_v55  ;;  %4066 = vmatpush.msra.mxu2 %v7071_v0  ;;  %v7609_v0 = vld [vmem:[#allocation35_spill] sm:$0xff]  ;;  %v4186_v56 = vld [vmem:[#allocation15 + $0x30] sm:$0xff] }
 0x9e1   :  { %v7210_v50 = vpop.eup %4563  ;;  %v3678_v8 = vadd.f32 %v4560_v58, %v3677_v35  ;;  %4085 = vmatpush.msrb.mxu3 %v7063_v11  ;;  %4026 = vmatpush.msra.mxu0 %v7067_v22  ;;  %v3722_v11 = vand.u32 2147483647, %v7185_v27  ;;  %v7608_v22 = vld [vmem:[#allocation36_spill] sm:$0xff] }
 0x9e2   :  { %v3697_v2 = vadd.f32 %v4562_v40, %v3696_v31  ;;  %v3714_v21 = vmul.f32 %v7210_v50, %v7185_v27  ;;  %v4566_v24 = vpop.eup %4565  ;;  %4046 = vmatpush.msra.mxu1 %v7069_v48  ;;  %4067 = vmatpush.msra.mxu2 %v7087_v15  ;;  %vm3719_vm4 = vweird.f32 %v7210_v50  ;;  %v7612_v15 = vld [vmem:[#allocation59_spill] sm:$0xff]  ;;  %v4185_v35 = vld [vmem:[#allocation15 + $0x28] sm:$0xff] }
 0x9e3   :  { %v3682_v9 = vsel %vm3681_vm0, %v4560_v58, %v3678_v8  ;;  %4086 = vmatpush.msrb.mxu3 %v7079_v53  ;;  %4027 = vmatpush.msra.mxu0 %v7083_v47  ;;  %vm3720_vm6 = vmor %vm3718_vm5, %vm3719_vm4  ;;  %v7610_v53 = vld [vmem:[#allocation23_spill] sm:$0xff]  ;;  %v3725_v47 = vor.u32 1.1754944e-38, %v3724_v39  ;;  %vm3723_vm7 = vcmp.eq.f32.partialorder %v3722_v11, 8.507059e+37 }
 0x9e4   :  { %v3687_v57 = vsel %vm3684_vm2, %v3686_v46, %v3682_v9  ;;  %v3701_v30 = vsel %vm3700_vm1, %v4562_v40, %v3697_v2  ;;  %v3715_v51 = vsub.f32 1.0, %v3714_v21  ;;  %4047 = vmatpush.msra.mxu1 %v7085_v26  ;;  %4068 = vmatpush.msra.mxu2 %v7099_v5  ;;  %v7611_v26 = vld [vmem:[#allocation29_spill] sm:$0xff]  ;;  %v4187_v40 = vld [vmem:[#allocation15 + $0x38] sm:$0xff]  ;;  %v4184_v31 = vld [vmem:[#allocation15 + $0x20] sm:$0xff] }
 0x9e5   :  { %v3706_v38 = vsel %vm3703_vm3, %v3705_v4, %v3701_v30  ;;  %v3729_v43 = vmul.f32 %v4566_v24, %v3687_v57  ;;  %4087 = vmatpush.msrb.mxu3 %v7091_v32  ;;  %4028 = vmatpush.msra.mxu0 %v7095_v28  ;;  %v7613_v32 = vld [vmem:[#allocation60_spill] sm:$0xff]  ;;  %v7614_v28 = vld [vmem:[#allocation39_spill] sm:$0xff]  ;;  %v4183_v2 = vld [vmem:[#allocation15 + $0x18] sm:$0xff] }
 0x9e6   :  { %v3728_v18 = vmul.f32 %v3706_v38, %v6986_v61  ;;  %v3716_v54 = vmul.f32 %v7210_v50, %v3715_v51  ;;  %4048 = vmatpush.msra.mxu1 %v7097_v60  ;;  %4069 = vmatpush.msra.mxu2 %v7111_v23  ;;  %v7616_v23 = vld [vmem:[#allocation52_spill] sm:$0xff]  ;;  %v4182_v21 = vld [vmem:[#allocation15 + $0x10] sm:$0xff]  ;;  %v7622_v57 = vld [vmem:[#allocation54_spill] sm:$0xff] }
 0x9e7   :  { %4088 = vmatpush.msrb.mxu3 %v7103_v6  ;;  %4029 = vmatpush.msra.mxu0 %v7107_v25  ;;  %v4192_v25 = vld [vmem:[#allocation15 + $0x60] sm:$0xff]  ;;  %v4181_v4 = vld [vmem:[#allocation15 + $0x8] sm:$0xff]  ;;  %v2360_v30 = vadd.f32 %v7622_v57, %v7593_v17 }
 0x9e8   :  { %v7234_v55 = vadd.f32 %v3729_v43, %v3728_v18  ;;  %v3717_v61 = vadd.f32 %v7210_v50, %v3716_v54  ;;  %4049 = vmatpush.msra.mxu1 %v7109_v14  ;;  %4070 = vmatpush.msra.mxu2 %v7611_v26  ;;  %v4191_v14 = vld [vmem:[#allocation15 + $0x58] sm:$0xff]  ;;  %v4180_v51 = vld [vmem:[#allocation15] sm:$0xff] }
 0x9e9   :  { %4089 = vmatpush.msrb.mxu3 %v7608_v22  ;;  %4030 = vmatpush.msra.mxu0 %v7609_v0 }
 0x9ea   :  { %4567 = vtanh.f32 %v7234_v55  ;;  %v3721_v48 = vsel %vm3720_vm6, %v7210_v50, %v3717_v61  ;;  %4050 = vmatpush.msra.mxu1 %v7610_v53  ;;  %4071 = vmatpush.msra.mxu2 %v7135_v19  ;;  %v7615_v19 = vld [vmem:[#allocation24_spill] sm:$0xff] }
 0x9eb   :  { %4090 = vmatpush.msrb.mxu3 %v7612_v15  ;;  %4031 = vmatpush.msra.mxu0 %v7613_v32  ;;  %v3726_v5 = vsel %vm3723_vm7, %v3725_v47, %v3721_v48 }
 0x9ec   :  { %4051 = vmatpush.msra.mxu1 %v7614_v28  ;;  %4072 = vmatpush.msra.mxu2 %v7147_v12  ;;  %v4194_v12 = vld [vmem:[#allocation15 + $0x70] sm:$0xff] }
 0x9ed   :  { %4091 = vmatpush.msrb.mxu3 %v7137_v3  ;;  %4032 = vmatpush.msra.mxu0 %v7141_v34  ;;  %v4193_v34 = vld [vmem:[#allocation15 + $0x68] sm:$0xff]  ;;  %v7619_v3 = vld [vmem:[#allocation30_spill] sm:$0xff] }
 0x9ee   :  { %4052 = vmatpush.msra.mxu1 %v7143_v49  ;;  %4073 = vmatpush.msra.mxu2 %v7615_v19  ;;  %v4195_v49 = vld [vmem:[#allocation15 + $0x78] sm:$0xff] }
 0x9ef   :  { %4092 = vmatpush.msrb.mxu3 %v7149_v16  ;;  %4033 = vmatpush.msra.mxu0 %v7153_v62  ;;  %v2278_v16 = vadd.f32 %v7617_v42, %v7616_v23  ;;  %v2319_v62 = vadd.f32 %v7619_v3, %v7618_v45 }
 0x9f0   :  { %v4568_v60 = vpop.eup %4567  ;;  %4053 = vmatpush.msra.mxu1 %v7155_v63 }
 0x9f1   :  { %v7261_v6 = vmul.f32 %v4568_v60, %v3726_v5  ;;  %4093 = vmatpush.msrb.mxu3 %v7161_v33 }
 0x9f3   :  { %3818 = vmatmul.f32.vlgmr.msrb.gmra.mxu0 %v7261_v6  ;;  %3838 = vmatmul.f32.vlgmr.msrb.gmra.mxu1 %v7261_v6 }
 0x9f4   :  { %3858 = vmatmul.f32.vlgmr.msrb.gmra.mxu2 %v7261_v6  ;;  %3878 = vmatmul.f32.vlgmr.msra.gmra.mxu3 %v7261_v6 }
 0x9f5   :  { %4200 = vmatpush.msrb.mxu0 %v4195_v49 }
 0x9f7   :  { %4201 = vmatpush.msrb.mxu0 %v4194_v12 }
 0x9f9   :  { %4202 = vmatpush.msrb.mxu0 %v4193_v34 }
 0x9fb   :  { %4203 = vmatpush.msrb.mxu0 %v4192_v25 }
 0x9fd   :  { %4204 = vmatpush.msrb.mxu0 %v4191_v14 }
 0x9ff   :  { %4205 = vmatpush.msrb.mxu0 %v4190_v52 }
 0xa01   :  { %4206 = vmatpush.msrb.mxu0 %v4189_v37 }
 0xa03   :  { %4207 = vmatpush.msrb.mxu0 %v4188_v59 }
 0xa05   :  { %4208 = vmatpush.msrb.mxu0 %v4187_v40 }
 0xa07   :  { %4209 = vmatpush.msrb.mxu0 %v4186_v56 }
 0xa09   :  { %4210 = vmatpush.msrb.mxu0 %v4185_v35  ;;  %v7626_v35 = vld [vmem:[#allocation28_spill] sm:$0xff] }
 0xa0b   :  { %4211 = vmatpush.msrb.mxu0 %v4184_v31  ;;  %v4177_v31 = vmax.f32 %v7261_v6, 0.0  ;;  %v7299_v6 = vld [vmem:[%s7327_s8] ss:$0 sm:$0xff]  ;;  %s4815_s8 = smov [#allocation16]  }
 0xa0c   :  { %s4249_s18 = sshll.u32 %s4815_s8, 4  ;;  %s4250_s18 = int_to_ptr.vmem [resolvable:$true] %s4249_s18 }
 0xa0d   :  { %4212 = vmatpush.msrb.mxu0 %v4183_v2 }
 0xa0f   :  { %4213 = vmatpush.msrb.mxu0 %v4182_v21 }
 0xa11   :  { %4214 = vmatpush.msrb.mxu0 %v4181_v4 }
 0xa13   :  { %4215 = vmatpush.msrb.mxu0 %v4180_v51  ;;  %v7629_v51 = vld [vmem:[#allocation55_spill] sm:$0xff] }
 0xa70   :  { %v3819_v63 = vpop.f32.mrf.mxu0  ;;  %v3839_v7 = vpop.f32.mrf.mxu1 }
 0xa71   :  { %v3882_v33 = vadd.f32 %v3819_v63, %v2278_v16  ;;  %v3883_v10 = vadd.f32 %v3839_v7, %v2319_v62 }
 0xa73   :  { %v4309_v27 = vmul.f32 -1.442695, %v3882_v33  ;;  %v4310_v58 = vmul.f32 -1.442695, %v3883_v10 }
 0xa75   :  { %4569 = vpow2.f32 %v4309_v27 }
 0xa76   :  { %4571 = vpow2.f32 %v4310_v58 }
 0xa77   :  { %v3879_v41 = vpop.f32.mrf.mxu3  ;;  %v3859_v9 = vpop.f32.mrf.mxu2 }
 0xa78   :  { %v3885_v20 = vadd.f32 %v3879_v41, %v2401_v13  ;;  %v3884_v18 = vadd.f32 %v3859_v9, %v2360_v30  ;;  %v7624_v13 = vld [vmem:[#allocation38_spill] sm:$0xff] }
 0xa79   :  { %v4174_v56 = vmax.f32 %v7624_v13, 0.0  ;;  %v7625_v41 = vld [vmem:[#allocation22_spill] sm:$0xff] }
 0xa7a   :  { %v4311_v44 = vmul.f32 -1.442695, %v3885_v20  ;;  %v4175_v20 = vmax.f32 %v7625_v41, 0.0 }
 0xa7b   :  { %v4570_v36 = vpop.eup %4569 }
 0xa7c   :  { %v4572_v50 = vpop.eup %4571  ;;  %v3889_v8 = vadd.f32 1.0, %v4570_v36  ;;  %4573 = vpow2.f32 %v4311_v44  ;;  %v4176_v44 = vmax.f32 %v7626_v35, 0.0 }
 0xa7d   :  { %v3908_v46 = vadd.f32 1.0, %v4572_v50  ;;  %v7627_v50 = vld [vmem:[#allocation34_spill] sm:$0xff] }
 0xa7e   :  { %4575 = vrcp.f32 %v3889_v8  ;;  %v3901_v48 = vand.u32 2147483648, %v3889_v8  ;;  %v3899_v47 = vand.u32 2147483647, %v3889_v8  ;;  %vm3895_vm10 = vweird.f32 %v3889_v8 }
 0xa7f   :  { %4577 = vrcp.f32 %v3908_v46  ;;  %v3920_v0 = vand.u32 2147483648, %v3908_v46  ;;  %v3918_v15 = vand.u32 2147483647, %v3908_v46  ;;  %vm3914_vm11 = vweird.f32 %v3908_v46 }
 0xa80   :  { %v3902_v60 = vor.u32 1.1754944e-38, %v3901_v48  ;;  %vm3900_vm14 = vcmp.eq.f32.partialorder %v3899_v47, 8.507059e+37  ;;  %v7630_v47 = vld [vmem:[#allocation57_spill] sm:$0xff] }
 0xa81   :  { %v3921_v49 = vor.u32 1.1754944e-38, %v3920_v0  ;;  %vm3919_vm15 = vcmp.eq.f32.partialorder %v3918_v15, 8.507059e+37 }
 0xa82   :  { %v4574_v24 = vpop.eup %4573 }
 0xa83   :  { %v3928_v38 = vadd.f32 1.0, %v4574_v24 }
 0xa84   :  { %v4576_v43 = vpop.eup %4575 }
 0xa85   :  { %v4578_v54 = vpop.eup %4577  ;;  %v3891_v61 = vmul.f32 %v4576_v43, %v3889_v8  ;;  %4579 = vrcp.f32 %v3928_v38  ;;  %vm3896_vm8 = vweird.f32 %v4576_v43  ;;  %v3940_v33 = vand.u32 2147483648, %v3928_v38 }
 0xa86   :  { %v3910_v39 = vmul.f32 %v4578_v54, %v3908_v46  ;;  %4581 = vtanh.f32 %v3884_v18  ;;  %vm3915_vm9 = vweird.f32 %v4578_v54  ;;  %vm3897_vm12 = vmor %vm3895_vm10, %vm3896_vm8  ;;  %vm3934_vm1 = vweird.f32 %v3928_v38  ;;  %v7628_v46 = vld [vmem:[#allocation25_spill] sm:$0xff] }
 0xa87   :  { %v3892_v11 = vsub.f32 1.0, %v3891_v61  ;;  %vm3916_vm13 = vmor %vm3914_vm11, %vm3915_vm9  ;;  %v3938_v10 = vand.u32 2147483647, %v3928_v38  ;;  %v3941_v27 = vor.u32 1.1754944e-38, %v3940_v33  ;;  %v2281_v8 = vadd.f32 %v7627_v50, %v7616_v23 }
 0xa88   :  { %v3911_v22 = vsub.f32 1.0, %v3910_v39  ;;  %v2322_v2 = vadd.f32 %v7628_v46, %v7618_v45 }
 0xa89   :  { %v3893_v53 = vmul.f32 %v4576_v43, %v3892_v11  ;;  %vm3939_vm3 = vcmp.eq.f32.partialorder %v3938_v10, 8.507059e+37 }
 0xa8a   :  { %v3912_v26 = vmul.f32 %v4578_v54, %v3911_v22 }
 0xa8b   :  { %v4580_v32 = vpop.eup %4579  ;;  %v3894_v28 = vadd.f32 %v4576_v43, %v3893_v53 }
 0xa8c   :  { %v3913_v5 = vadd.f32 %v4578_v54, %v3912_v26  ;;  %v3930_v19 = vmul.f32 %v4580_v32, %v3928_v38  ;;  %v4582_v34 = vpop.eup %4581  ;;  %vm3935_vm0 = vweird.f32 %v4580_v32  ;;  %v2404_v38 = vadd.f32 %v7629_v51, %v7620_v29 }
 0xa8d   :  { %v3898_v12 = vsel %vm3897_vm12, %v4576_v43, %v3894_v28  ;;  %vm3936_vm2 = vmor %vm3934_vm1, %vm3935_vm0  ;;  %v2363_v26 = vadd.f32 %v7630_v47, %v7593_v17 }
 0xa8e   :  { %v3903_v25 = vsel %vm3900_vm14, %v3902_v60, %v3898_v12  ;;  %v3917_v14 = vsel %vm3916_vm13, %v4578_v54, %v3913_v5  ;;  %v3931_v42 = vsub.f32 1.0, %v3930_v19 }
 0xa8f   :  { %v3922_v16 = vsel %vm3919_vm15, %v3921_v49, %v3917_v14  ;;  %v3945_v3 = vmul.f32 %v4582_v34, %v3903_v25 }
 0xa90   :  { %v3944_v62 = vmul.f32 %v3922_v16, %v7234_v55  ;;  %v3932_v63 = vmul.f32 %v4580_v32, %v3931_v42  ;;  %v7623_v55 = vld [vmem:[#allocation42_spill] sm:$0xff] }
 0xa91   :  { %v4173_v1 = vmax.f32 %v7623_v55, 0.0 }
 0xa92   :  { %v7284_v7 = vadd.f32 %v3945_v3, %v3944_v62  ;;  %v3933_v52 = vadd.f32 %v4580_v32, %v3932_v63 }
 0xa94   :  { %4583 = vtanh.f32 %v7284_v7  ;;  %v3937_v37 = vsel %vm3936_vm2, %v4580_v32, %v3933_v52 }
 0xa95   :  { %v3942_v59 = vsel %vm3939_vm3, %v3941_v27, %v3937_v37 }
 0xa9a   :  { %v4584_v58 = vpop.eup %4583 }
 0xa9b   :  { %v3948_v40 = vmul.f32 %v4584_v58, %v3942_v59 }
 0xa9d   :  { %4034 = vmatmul.f32.vlgmr.msra.gmra.mxu0 %v3948_v40  ;;  %4054 = vmatmul.f32.vlgmr.msra.gmra.mxu1 %v3948_v40  ;;  %v4178_v36 = vmax.f32 %v3948_v40, 0.0 }
 0xa9e   :  { %4074 = vmatmul.f32.vlgmr.msra.gmra.mxu2 %v3948_v40  ;;  %4094 = vmatmul.f32.vlgmr.msrb.gmra.mxu3 %v3948_v40 }
 0xaa5   :  { %4216 = vmatmul.f32.vlgmr.msrb.gmra.mxu0 %v4173_v1 }
 0xaad   :  { %4219 = vmatmul.f32.gmra.mxu0 %v4174_v56 }
 0xab5   :  { %4222 = vmatmul.f32.gmra.mxu0 %v4175_v20 }
 0xabd   :  { %4225 = vmatmul.f32.gmra.mxu0 %v4176_v44 }
 0xac5   :  { %4228 = vmatmul.f32.gmra.mxu0 %v4177_v31 }
 0xacd   :  { %4231 = vmatmul.f32.gmra.mxu0 %v4178_v36 }
 0xb1a   :  { %v4035_v21 = vpop.f32.mrf.mxu0  ;;  %v4055_v4 = vpop.f32.mrf.mxu1 }
 0xb1b   :  { %v4098_v9 = vadd.f32 %v4035_v21, %v2281_v8  ;;  %v4099_v24 = vadd.f32 %v4055_v4, %v2322_v2 }
 0xb1d   :  { %v4312_v57 = vmul.f32 -1.442695, %v4098_v9  ;;  %v4313_v30 = vmul.f32 -1.442695, %v4099_v24 }
 0xb1f   :  { %4585 = vpow2.f32 %v4312_v57 }
 0xb20   :  { %4587 = vpow2.f32 %v4313_v30 }
 0xb21   :  { %v4095_v23 = vpop.f32.mrf.mxu3  ;;  %v4075_v0 = vpop.f32.mrf.mxu2 }
 0xb22   :  { %v4101_v43 = vadd.f32 %v4095_v23, %v2404_v38  ;;  %v4217_v18 = vpop.f32.mrf.mxu0  ;;  %v4100_v28 = vadd.f32 %v4075_v0, %v2363_v26 }
 0xb23   :  { %v4218_v45 = vadd.f32 %v7299_v6, %v4217_v18 }
 0xb24   :  { %v4314_v54 = vmul.f32 -1.442695, %v4101_v43 }
 0xb25   :  { %v4586_v61 = vpop.eup %4585  ;;  %4238 = vst [vmem:[#allocation16] sm:$0xff] %v4218_v45 }
 0xb26   :  { %v4588_v39 = vpop.eup %4587  ;;  %v4105_v11 = vadd.f32 1.0, %v4586_v61  ;;  %4589 = vpow2.f32 %v4314_v54 }
 0xb27   :  { %v4124_v22 = vadd.f32 1.0, %v4588_v39 }
 0xb28   :  { %4591 = vrcp.f32 %v4105_v11  ;;  %v4115_v34 = vand.u32 2147483647, %v4105_v11  ;;  %v4117_v25 = vand.u32 2147483648, %v4105_v11  ;;  %vm4111_vm6 = vweird.f32 %v4105_v11 }
 0xb29   :  { %4593 = vrcp.f32 %v4124_v22  ;;  %v4136_v42 = vand.u32 2147483648, %v4124_v22  ;;  %v4134_v62 = vand.u32 2147483647, %v4124_v22  ;;  %vm4130_vm7 = vweird.f32 %v4124_v22 }
 0xb2a   :  { %v4220_v48 = vpop.f32.mrf.mxu0  ;;  %v4118_v33 = vor.u32 1.1754944e-38, %v4117_v25  ;;  %vm4116_vm10 = vcmp.eq.f32.partialorder %v4115_v34, 8.507059e+37 }
 0xb2b   :  { %v4221_v53 = vadd.f32 %v7299_v6, %v4220_v48  ;;  %v4137_v27 = vor.u32 1.1754944e-38, %v4136_v42  ;;  %vm4135_vm11 = vcmp.eq.f32.partialorder %v4134_v62, 8.507059e+37 }
 0xb2c   :  { %v4590_v29 = vpop.eup %4589 }
 0xb2d   :  { %v4144_v15 = vadd.f32 1.0, %v4590_v29  ;;  %4239 = vst [vmem:[#allocation16 + $0x8] sm:$0xff] %v4221_v53 }
 0xb2e   :  { %v4592_v32 = vpop.eup %4591 }
 0xb2f   :  { %v4594_v60 = vpop.eup %4593  ;;  %v4107_v5 = vmul.f32 %v4592_v32, %v4105_v11  ;;  %4595 = vrcp.f32 %v4144_v15  ;;  %vm4112_vm4 = vweird.f32 %v4592_v32  ;;  %v4156_v50 = vand.u32 2147483648, %v4144_v15 }
 0xb30   :  { %v4126_v19 = vmul.f32 %v4594_v60, %v4124_v22  ;;  %4597 = vtanh.f32 %v4100_v28  ;;  %vm4131_vm5 = vweird.f32 %v4594_v60  ;;  %vm4113_vm8 = vmor %vm4111_vm6, %vm4112_vm4  ;;  %vm4150_vm13 = vweird.f32 %v4144_v15 }
 0xb31   :  { %v4108_v49 = vsub.f32 1.0, %v4107_v5  ;;  %vm4132_vm9 = vmor %vm4130_vm7, %vm4131_vm5  ;;  %v4154_v8 = vand.u32 2147483647, %v4144_v15  ;;  %v4157_v21 = vor.u32 1.1754944e-38, %v4156_v50 }
 0xb32   :  { %v4127_v12 = vsub.f32 1.0, %v4126_v19  ;;  %v4223_v14 = vpop.f32.mrf.mxu0 }
 0xb33   :  { %v4109_v16 = vmul.f32 %v4592_v32, %v4108_v49  ;;  %v4224_v3 = vadd.f32 %v7299_v6, %v4223_v14  ;;  %vm4155_vm15 = vcmp.eq.f32.partialorder %v4154_v8, 8.507059e+37 }
 0xb34   :  { %v4128_v17 = vmul.f32 %v4594_v60, %v4127_v12 }
 0xb35   :  { %v4596_v63 = vpop.eup %4595  ;;  %v4110_v52 = vadd.f32 %v4592_v32, %v4109_v16  ;;  %4240 = vst [vmem:[#allocation16 + $0x10] sm:$0xff] %v4224_v3 }
 0xb36   :  { %v4129_v10 = vadd.f32 %v4594_v60, %v4128_v17  ;;  %v4146_v37 = vmul.f32 %v4596_v63, %v4144_v15  ;;  %v4598_v59 = vpop.eup %4597  ;;  %vm4151_vm12 = vweird.f32 %v4596_v63 }
 0xb37   :  { %v4114_v58 = vsel %vm4113_vm8, %v4592_v32, %v4110_v52  ;;  %vm4152_vm14 = vmor %vm4150_vm13, %vm4151_vm12 }
 0xb38   :  { %v4119_v40 = vsel %vm4116_vm10, %v4118_v33, %v4114_v58  ;;  %v4133_v55 = vsel %vm4132_vm9, %v4594_v60, %v4129_v10  ;;  %v4147_v1 = vsub.f32 1.0, %v4146_v37 }
 0xb39   :  { %v4138_v13 = vsel %vm4135_vm11, %v4137_v27, %v4133_v55  ;;  %v4161_v56 = vmul.f32 %v4598_v59, %v4119_v40 }
 0xb3a   :  { %v4160_v41 = vmul.f32 %v4138_v13, %v7284_v7  ;;  %v4226_v20 = vpop.f32.mrf.mxu0  ;;  %v4148_v35 = vmul.f32 %v4596_v63, %v4147_v1 }
 0xb3b   :  { %v4227_v44 = vadd.f32 %v7299_v6, %v4226_v20 }
 0xb3c   :  { %v4162_v31 = vadd.f32 %v4161_v56, %v4160_v41  ;;  %v4149_v36 = vadd.f32 %v4596_v63, %v4148_v35 }
 0xb3d   :  { %4241 = vst [vmem:[#allocation16 + $0x18] sm:$0xff] %v4227_v44 }
 0xb3e   :  { %4599 = vtanh.f32 %v4162_v31  ;;  %v4153_v46 = vsel %vm4152_vm14, %v4596_v63, %v4149_v36 }
 0xb3f   :  { %v4158_v9 = vsel %vm4155_vm15, %v4157_v21, %v4153_v46 }
 0xb42   :  { %v4229_v2 = vpop.f32.mrf.mxu0 }
 0xb43   :  { %v4230_v4 = vadd.f32 %v7299_v6, %v4229_v2 }
 0xb44   :  { %v4600_v7 = vpop.eup %4599 }
 0xb45   :  { %4242 = vst [vmem:[#allocation16 + $0x20] sm:$0xff] %v4230_v4  ;;  %v4164_v24 = vmul.f32 %v4600_v7, %v4158_v9 }
 0xb47   :  { %v4179_v57 = vmax.f32 %v4164_v24, 0.0 }
 0xb49   :  { %4234 = vmatmul.f32.gmra.mxu0 %v4179_v57 }
 0xb4a   :  { %v4232_v30 = vpop.f32.mrf.mxu0 }
 0xb4b   :  { %v4233_v51 = vadd.f32 %v7299_v6, %v4232_v30 }
 0xb4d   :  { %4243 = vst [vmem:[#allocation16 + $0x28] sm:$0xff] %v4233_v51 }
 0xbc6   :  { %v4235_v38 = vpop.f32.mrf.mxu0 }
 0xbc7   :  { %v4236_v23 = vadd.f32 %v7299_v6, %v4235_v38 }
 0xbc9   :  { %4244 = vst [vmem:[#allocation16 + $0x30] sm:$0xff] %v4236_v23 }
 0xbca   :  { %4257 = dma.vmem_to_hbm [thread:$0]  %s4250_s18, 896, %s4252_s3, [#allocation6], %s4809_s29, %s4809_s29, %s4810_s5  }
 0xbcb   :  { %4801 = dma.done.wait [#allocation6], 896  }
 0xbcc   :  { %4802 = vsyncadd [#allocation6], 4294966400 }
 0xbcd   :  { %4262 = vsyncpa [#allocation5], 1 }
 0xbce   :  { %4263 = vsyncpa [#allocation8], 1 }
 0xbcf   :  { %4264 = vsyncpa [#allocation11], 1 }
 0xbd0   :  { %4265 = vsyncpa [#allocation14], 1 }
 0xbd1   :  { %4266 = vsyncpa [#allocation6], 1 }

</bundles_post_ra>
